<compile_context>
chip_gen: v7x
topology: tpu7x:2x2x1
jax: 0.10.0
libtpu: 0.0.40
codegen_flags: <defaults>
</compile_context>

<pallas_src>
import jax
import jax.numpy as jnp
from jax.experimental import pallas as pl
from jax.experimental.pallas import tpu as pltpu


# ----------------------------- fused kernel --------------------------------

def _lenet_kernel(
    x_ref,               # [3, 32, 32]   one NCHW sample
    band1_ref,           # [15, 32, 168] conv1 banded weights (s = ci*5 + di)
    bias1_ref,           # [1, 168]      conv1 bias, col = co*28 + wo
    s1_he_ref, s1_ho_ref,    # [14, 28]   pool1 row (H) selectors (even / odd)
    s1_we_ref, s1_wo_ref,    # [168, 84]  pool1 col (W) selectors (per-channel groups)
    band2_ref,           # [30, 14, 160] conv2 banded weights (s = ci*5 + di)
    bias2_ref,           # [1, 160]
    s2_he_ref, s2_ho_ref,    # [5, 10]
    s2_we_ref, s2_wo_ref,    # [160, 80]
    w1r_ref,             # [5, 80, 120]  fc1 weights regrouped by pooled row h'
    bfc1_ref,            # [1, 120]
    w2m_ref,             # [120, 84]     fc2 weights, already [K, N]
    bfc2_ref,            # [1, 84]
    w3m_ref,             # [84, 128]     fc3 weights, N zero-padded to 128 lanes
    bfc3_ref,            # [1, 128]
    out_ref,             # [1, 128]
):
    f32 = jnp.float32

    # ---- conv1 (5x5 valid) as 15 banded matmuls: [28,32] @ [32,168] ------
    acc1 = jnp.zeros((28, 168), f32)
    for ci in range(3):
        for di in range(5):
            lhs = x_ref[ci, di:di + 28, :]                          # [28, 32]
            acc1 += jnp.dot(lhs, band1_ref[ci * 5 + di],
                            preferred_element_type=f32)
    y1 = jnp.maximum(acc1 + bias1_ref[...], 0.0)                    # [28, 168]

    # ---- 2x2 max-pool via 0/1 selection matmuls ---------------------------
    s1_we = s1_we_ref[...]
    s1_wo = s1_wo_ref[...]
    e1 = jnp.dot(s1_he_ref[...], y1, preferred_element_type=f32)    # even rows [14,168]
    o1 = jnp.dot(s1_ho_ref[...], y1, preferred_element_type=f32)    # odd rows  [14,168]
    p1 = jnp.maximum(
        jnp.maximum(jnp.dot(e1, s1_we, preferred_element_type=f32),
                    jnp.dot(e1, s1_wo, preferred_element_type=f32)),
        jnp.maximum(jnp.dot(o1, s1_we, preferred_element_type=f32),
                    jnp.dot(o1, s1_wo, preferred_element_type=f32)),
    )                                                               # [14, 84] col = ci2*14 + w

    # ---- conv2 (5x5 valid) as 30 banded matmuls: [10,14] @ [14,160] ------
    acc2 = jnp.zeros((10, 160), f32)
    for ci in range(6):
        for di in range(5):
            lhs = p1[di:di + 10, ci * 14:(ci + 1) * 14]             # [10, 14]
            acc2 += jnp.dot(lhs, band2_ref[ci * 5 + di],
                            preferred_element_type=f32)
    y2 = jnp.maximum(acc2 + bias2_ref[...], 0.0)                    # [10, 160]

    s2_we = s2_we_ref[...]
    s2_wo = s2_wo_ref[...]
    e2 = jnp.dot(s2_he_ref[...], y2, preferred_element_type=f32)    # [5, 160]
    o2 = jnp.dot(s2_ho_ref[...], y2, preferred_element_type=f32)
    p2 = jnp.maximum(
        jnp.maximum(jnp.dot(e2, s2_we, preferred_element_type=f32),
                    jnp.dot(e2, s2_wo, preferred_element_type=f32)),
        jnp.maximum(jnp.dot(o2, s2_we, preferred_element_type=f32),
                    jnp.dot(o2, s2_wo, preferred_element_type=f32)),
    )                                                               # [5, 80] col = co*5 + w'

    # ---- fc1 (+ReLU): contraction folded over the 5 pooled rows ----------
    acc_f1 = jnp.zeros((1, 120), f32)
    for h in range(5):
        acc_f1 += jnp.dot(p2[h:h + 1, :], w1r_ref[h],
                          preferred_element_type=f32)
    f1 = jnp.maximum(acc_f1 + bfc1_ref[...], 0.0)                   # [1, 120]

    # ---- fc2 (+ReLU), fc3 (lane-dense 128-wide output) --------------------
    f2 = jnp.maximum(jnp.dot(f1, w2m_ref[...], preferred_element_type=f32)
                     + bfc2_ref[...], 0.0)                          # [1, 84]
    out_ref[...] = (jnp.dot(f2, w3m_ref[...], preferred_element_type=f32)
                    + bfc3_ref[...])                                # [1, 128]


# --------------------------- weight pre-packing -----------------------------

def _band_weights(w, w_in):
    """w: [Cout, Cin, k, k] -> [Cin*k, w_in, Cout*w_out] banded matrices s.t.
    conv(x, w)[co, h, wo] = sum_{ci,di} (x[ci, di:di+h_out, :] @ band[ci*k+di])[h, co*w_out+wo]."""
    cout, cin, k, _ = w.shape
    w_out = w_in - k + 1
    j_in = jnp.arange(w_in)[:, None]
    j_out = jnp.arange(w_out)[None, :]
    dj = j_in - j_out                                     # [w_in, w_out]
    valid = ((dj >= 0) & (dj < k)).astype(w.dtype)
    dj_c = jnp.clip(dj, 0, k - 1)
    wt = jnp.transpose(w, (1, 2, 0, 3))                   # [ci, di, co, k]
    band = wt[:, :, :, dj_c] * valid[None, None, None]    # [ci, di, co, w_in, w_out]
    band = jnp.transpose(band, (0, 1, 3, 2, 4))           # [ci, di, w_in, co, w_out]
    return band.reshape(cin * k, w_in, cout * w_out)


def _pool_row_selectors(n):
    m = n // 2
    i = jnp.arange(m)
    se = jnp.zeros((m, n), jnp.float32).at[i, 2 * i].set(1.0)
    so = jnp.zeros((m, n), jnp.float32).at[i, 2 * i + 1].set(1.0)
    return se, so


def _pool_col_selectors(channels, n):
    m = n // 2
    g = jnp.repeat(jnp.arange(channels), m)
    j = jnp.tile(jnp.arange(m), channels)
    cols = jnp.arange(channels * m)
    se = jnp.zeros((channels * n, channels * m), jnp.float32)
    so = jnp.zeros((channels * n, channels * m), jnp.float32)
    se = se.at[g * n + 2 * j, cols].set(1.0)
    so = so.at[g * n + 2 * j + 1, cols].set(1.0)
    return se, so


def prepare_params(params):
    """One-time repack of PyTorch-layout params into MXU/lane-friendly layouts."""
    p = {}
    p["band1"] = _band_weights(params["conv1_w"], 32)               # [15, 32, 168]
    p["bias1"] = jnp.repeat(params["conv1_b"], 28)[None, :]          # [1, 168]
    p["s1_he"], p["s1_ho"] = _pool_row_selectors(28)                 # [14, 28]
    p["s1_we"], p["s1_wo"] = _pool_col_selectors(6, 28)              # [168, 84]
    p["band2"] = _band_weights(params["conv2_w"], 14)                # [30, 14, 160]
    p["bias2"] = jnp.repeat(params["conv2_b"], 10)[None, :]          # [1, 160]
    p["s2_he"], p["s2_ho"] = _pool_row_selectors(10)                 # [5, 10]
    p["s2_we"], p["s2_wo"] = _pool_col_selectors(16, 10)             # [160, 80]
    w1 = params["fc1_w"].reshape(120, 16, 5, 5)                      # [n, co, h, w]
    p["w1r"] = jnp.transpose(w1, (2, 1, 3, 0)).reshape(5, 80, 120)   # [h, co*5+w, n]
    p["bfc1"] = params["fc1_b"][None, :]                             # [1, 120]
    p["w2m"] = params["fc2_w"].T                                     # [120, 84]
    p["bfc2"] = params["fc2_b"][None, :]                             # [1, 84]
    p["w3m"] = jnp.zeros((84, 128), jnp.float32).at[:, :10].set(params["fc3_w"].T)
    p["bfc3"] = jnp.zeros((1, 128), jnp.float32).at[0, :10].set(params["fc3_b"])
    return p


_PACKED_ORDER = ("band1", "bias1", "s1_he", "s1_ho", "s1_we", "s1_wo",
                 "band2", "bias2", "s2_he", "s2_ho", "s2_we", "s2_wo",
                 "w1r", "bfc1", "w2m", "bfc2", "w3m", "bfc3")


def _const_index_map(ndim):
    return lambda i, _n=ndim: (0,) * _n


@jax.jit
def net_forward(packed, x):
    """x: [B, 3, 32, 32] float32 (NCHW) -> logits [B, 10]."""
    B = x.shape[0]
    weights = [packed[k] for k in _PACKED_ORDER]
    w_specs = [pl.BlockSpec(w.shape, _const_index_map(w.ndim)) for w in weights]

    grid_spec = pltpu.PrefetchScalarGridSpec(
        num_scalar_prefetch=0,
        grid=(B,),
        in_specs=[pl.BlockSpec((None, 3, 32, 32), lambda i: (i, 0, 0, 0))] + w_specs,
        out_specs=pl.BlockSpec((None, 1, 128), lambda i: (i, 0, 0)),
    )
    out = pl.pallas_call(
        _lenet_kernel,
        out_shape=jax.ShapeDtypeStruct((B, 1, 128), jnp.float32),
        grid_spec=grid_spec,
        compiler_params=pltpu.CompilerParams(
            dimension_semantics=("parallel",)),
        cost_estimate=pl.CostEstimate(
            flops=9_000_000 * B, transcendentals=0,
            bytes_accessed=1_000_000 + 13_000 * B),
    )(x, *weights)
    return out[:, 0, :10]


# ------------------------- init + pure-JAX reference ------------------------

def init_params(key):
    """Deterministic PyTorch-default-style init (uniform +-1/sqrt(fan_in))."""
    def uniform(k, shape, fan_in):
        bound = 1.0 / float(fan_in) ** 0.5
        return jax.random.uniform(k, shape, jnp.float32, -bound, bound)

    ks = jax.random.split(key, 10)
    return {
        "conv1_w": uniform(ks[0], (6, 3, 5, 5), 3 * 5 * 5),
        "conv1_b": uniform(ks[1], (6,), 3 * 5 * 5),
        "conv2_w": uniform(ks[2], (16, 6, 5, 5), 6 * 5 * 5),
        "conv2_b": uniform(ks[3], (16,), 6 * 5 * 5),
        "fc1_w":   uniform(ks[4], (120, 400), 400),
        "fc1_b":   uniform(ks[5], (120,), 400),
        "fc2_w":   uniform(ks[6], (84, 120), 120),
        "fc2_b":   uniform(ks[7], (84,), 120),
        "fc3_w":   uniform(ks[8], (10, 84), 84),
        "fc3_b":   uniform(ks[9], (10,), 84),
    }


def reference_forward(params, x):
    hp = jax.lax.Precision.HIGHEST

    def conv(x, w, b):
        y = jax.lax.conv_general_dilated(
            x, w, window_strides=(1, 1), padding="VALID",
            dimension_numbers=("NCHW", "OIHW", "NCHW"), precision=hp)
        return jax.nn.relu(y + b[None, :, None, None])

    def pool(x):
        return jax.lax.reduce_window(x, -jnp.inf, jax.lax.max,
                                     (1, 1, 2, 2), (1, 1, 2, 2), "VALID")

    x = pool(conv(x, params["conv1_w"], params["conv1_b"]))
    x = pool(conv(x, params["conv2_w"], params["conv2_b"]))
    x = x.reshape(x.shape[0], -1)
    x = jax.nn.relu(jnp.dot(x, params["fc1_w"].T, precision=hp) + params["fc1_b"])
    x = jax.nn.relu(jnp.dot(x, params["fc2_w"].T, precision=hp) + params["fc2_b"])
    return jnp.dot(x, params["fc3_w"].T, precision=hp) + params["fc3_b"]


if __name__ == "__main__":
    key = jax.random.PRNGKey(0)
    pkey, xkey = jax.random.split(key)
    params = init_params(pkey)
    packed = prepare_params(params)            # one-time weight repack (outside hot path)
    # Net's fc1 requires 3x32x32 (CIFAR-10) input; batch kept small.
    x = jax.random.normal(xkey, (2, 3, 32, 32), jnp.float32)

    out = net_forward(packed, x)
    jax.block_until_ready(out)
    assert out.shape == (2, 10)

    ref = reference_forward(params, x)
    assert jnp.allclose(out, ref, rtol=2e-2, atol=2e-2), \
        float(jnp.max(jnp.abs(out - ref)))
    print("KERNEL_OK")
</pallas_src>

<mosaic_0001>
module attributes {stable_mosaic.version = 11 : i64} {
  func.func @_lenet_kernel(%arg0: i32, %arg1: memref<1x3x32x32xf32, #tpu.memory_space<vmem>>, %arg2: memref<15x32x168xf32, #tpu.memory_space<vmem>>, %arg3: memref<1x168xf32, #tpu.memory_space<vmem>>, %arg4: memref<14x28xf32, #tpu.memory_space<vmem>>, %arg5: memref<14x28xf32, #tpu.memory_space<vmem>>, %arg6: memref<168x84xf32, #tpu.memory_space<vmem>>, %arg7: memref<168x84xf32, #tpu.memory_space<vmem>>, %arg8: memref<30x14x160xf32, #tpu.memory_space<vmem>>, %arg9: memref<1x160xf32, #tpu.memory_space<vmem>>, %arg10: memref<5x10xf32, #tpu.memory_space<vmem>>, %arg11: memref<5x10xf32, #tpu.memory_space<vmem>>, %arg12: memref<160x80xf32, #tpu.memory_space<vmem>>, %arg13: memref<160x80xf32, #tpu.memory_space<vmem>>, %arg14: memref<5x80x120xf32, #tpu.memory_space<vmem>>, %arg15: memref<1x120xf32, #tpu.memory_space<vmem>>, %arg16: memref<120x84xf32, #tpu.memory_space<vmem>>, %arg17: memref<1x84xf32, #tpu.memory_space<vmem>>, %arg18: memref<84x128xf32, #tpu.memory_space<vmem>>, %arg19: memref<1x128xf32, #tpu.memory_space<vmem>>, %arg20: memref<1x1x128xf32, #tpu.memory_space<vmem>>) attributes {dimension_semantics = [#tpu.dimension_semantics<parallel>], iteration_bounds = array<i64: 2>, scalar_prefetch = 0 : i64, scratch_operands = 0 : i64, tpu.core_type = #tpu.core_type<tc>, window_params = [{transform_indices = @transform_0, window_bounds = array<i64: 1, 3, 32, 32>}, {pipeline_mode = #tpu.pipeline_mode<synchronous>, transform_indices = @transform_1, window_bounds = array<i64: 15, 32, 168>}, {pipeline_mode = #tpu.pipeline_mode<synchronous>, transform_indices = @transform_2, window_bounds = array<i64: 1, 168>}, {pipeline_mode = #tpu.pipeline_mode<synchronous>, transform_indices = @transform_3, window_bounds = array<i64: 14, 28>}, {pipeline_mode = #tpu.pipeline_mode<synchronous>, transform_indices = @transform_4, window_bounds = array<i64: 14, 28>}, {pipeline_mode = #tpu.pipeline_mode<synchronous>, transform_indices = @transform_5, window_bounds = array<i64: 168, 84>}, {pipeline_mode = #tpu.pipeline_mode<synchronous>, transform_indices = @transform_6, window_bounds = array<i64: 168, 84>}, {pipeline_mode = #tpu.pipeline_mode<synchronous>, transform_indices = @transform_7, window_bounds = array<i64: 30, 14, 160>}, {pipeline_mode = #tpu.pipeline_mode<synchronous>, transform_indices = @transform_8, window_bounds = array<i64: 1, 160>}, {pipeline_mode = #tpu.pipeline_mode<synchronous>, transform_indices = @transform_9, window_bounds = array<i64: 5, 10>}, {pipeline_mode = #tpu.pipeline_mode<synchronous>, transform_indices = @transform_10, window_bounds = array<i64: 5, 10>}, {pipeline_mode = #tpu.pipeline_mode<synchronous>, transform_indices = @transform_11, window_bounds = array<i64: 160, 80>}, {pipeline_mode = #tpu.pipeline_mode<synchronous>, transform_indices = @transform_12, window_bounds = array<i64: 160, 80>}, {pipeline_mode = #tpu.pipeline_mode<synchronous>, transform_indices = @transform_13, window_bounds = array<i64: 5, 80, 120>}, {pipeline_mode = #tpu.pipeline_mode<synchronous>, transform_indices = @transform_14, window_bounds = array<i64: 1, 120>}, {pipeline_mode = #tpu.pipeline_mode<synchronous>, transform_indices = @transform_15, window_bounds = array<i64: 120, 84>}, {pipeline_mode = #tpu.pipeline_mode<synchronous>, transform_indices = @transform_16, window_bounds = array<i64: 1, 84>}, {pipeline_mode = #tpu.pipeline_mode<synchronous>, transform_indices = @transform_17, window_bounds = array<i64: 84, 128>}, {pipeline_mode = #tpu.pipeline_mode<synchronous>, transform_indices = @transform_18, window_bounds = array<i64: 1, 128>}, {transform_indices = @transform_19, window_bounds = array<i64: 1, 1, 128>}]} {
    %cst = arith.constant 0.000000e+00 : f32
    %0 = vector.broadcast %cst : f32 to vector<28x168xf32>
    %c0 = arith.constant 0 : index
    %c0_0 = arith.constant 0 : index
    %c0_1 = arith.constant 0 : index
    %c0_2 = arith.constant 0 : index
    %1 = vector.load %arg1[%c0, %c0_0, %c0_1, %c0_2] : memref<1x3x32x32xf32, #tpu.memory_space<vmem>>, vector<1x1x28x32xf32>
    %2 = vector.shape_cast %1 : vector<1x1x28x32xf32> to vector<28x32xf32>
    %c0_3 = arith.constant 0 : index
    %c0_4 = arith.constant 0 : index
    %c0_5 = arith.constant 0 : index
    %3 = vector.load %arg2[%c0_3, %c0_4, %c0_5] : memref<15x32x168xf32, #tpu.memory_space<vmem>>, vector<1x32x168xf32>
    %4 = vector.shape_cast %3 : vector<1x32x168xf32> to vector<32x168xf32>
    %cst_6 = arith.constant dense<0.000000e+00> : vector<28x168xf32>
    %5 = tpu.matmul %2, %4, %cst_6 {dimension_numbers = #tpu.dot_dimension_numbers<[1], [0], [0], [1], [0, 0, 1, 1], [], []>} : vector<28x32xf32>, vector<32x168xf32>, vector<28x168xf32> -> vector<28x168xf32>
    %6 = arith.addf %0, %5 : vector<28x168xf32>
    %c0_7 = arith.constant 0 : index
    %c0_8 = arith.constant 0 : index
    %c1 = arith.constant 1 : index
    %c0_9 = arith.constant 0 : index
    %7 = vector.load %arg1[%c0_7, %c0_8, %c1, %c0_9] : memref<1x3x32x32xf32, #tpu.memory_space<vmem>>, vector<1x1x28x32xf32>
    %8 = vector.shape_cast %7 : vector<1x1x28x32xf32> to vector<28x32xf32>
    %c1_10 = arith.constant 1 : index
    %c0_11 = arith.constant 0 : index
    %c0_12 = arith.constant 0 : index
    %9 = vector.load %arg2[%c1_10, %c0_11, %c0_12] : memref<15x32x168xf32, #tpu.memory_space<vmem>>, vector<1x32x168xf32>
    %10 = vector.shape_cast %9 : vector<1x32x168xf32> to vector<32x168xf32>
    %cst_13 = arith.constant dense<0.000000e+00> : vector<28x168xf32>
    %11 = tpu.matmul %8, %10, %cst_13 {dimension_numbers = #tpu.dot_dimension_numbers<[1], [0], [0], [1], [0, 0, 1, 1], [], []>} : vector<28x32xf32>, vector<32x168xf32>, vector<28x168xf32> -> vector<28x168xf32>
    %12 = arith.addf %6, %11 : vector<28x168xf32>
    %c0_14 = arith.constant 0 : index
    %c0_15 = arith.constant 0 : index
    %c2 = arith.constant 2 : index
    %c0_16 = arith.constant 0 : index
    %13 = vector.load %arg1[%c0_14, %c0_15, %c2, %c0_16] : memref<1x3x32x32xf32, #tpu.memory_space<vmem>>, vector<1x1x28x32xf32>
    %14 = vector.shape_cast %13 : vector<1x1x28x32xf32> to vector<28x32xf32>
    %c2_17 = arith.constant 2 : index
    %c0_18 = arith.constant 0 : index
    %c0_19 = arith.constant 0 : index
    %15 = vector.load %arg2[%c2_17, %c0_18, %c0_19] : memref<15x32x168xf32, #tpu.memory_space<vmem>>, vector<1x32x168xf32>
    %16 = vector.shape_cast %15 : vector<1x32x168xf32> to vector<32x168xf32>
    %cst_20 = arith.constant dense<0.000000e+00> : vector<28x168xf32>
    %17 = tpu.matmul %14, %16, %cst_20 {dimension_numbers = #tpu.dot_dimension_numbers<[1], [0], [0], [1], [0, 0, 1, 1], [], []>} : vector<28x32xf32>, vector<32x168xf32>, vector<28x168xf32> -> vector<28x168xf32>
    %18 = arith.addf %12, %17 : vector<28x168xf32>
    %c0_21 = arith.constant 0 : index
    %c0_22 = arith.constant 0 : index
    %c3 = arith.constant 3 : index
    %c0_23 = arith.constant 0 : index
    %19 = vector.load %arg1[%c0_21, %c0_22, %c3, %c0_23] : memref<1x3x32x32xf32, #tpu.memory_space<vmem>>, vector<1x1x28x32xf32>
    %20 = vector.shape_cast %19 : vector<1x1x28x32xf32> to vector<28x32xf32>
    %c3_24 = arith.constant 3 : index
    %c0_25 = arith.constant 0 : index
    %c0_26 = arith.constant 0 : index
    %21 = vector.load %arg2[%c3_24, %c0_25, %c0_26] : memref<15x32x168xf32, #tpu.memory_space<vmem>>, vector<1x32x168xf32>
    %22 = vector.shape_cast %21 : vector<1x32x168xf32> to vector<32x168xf32>
    %cst_27 = arith.constant dense<0.000000e+00> : vector<28x168xf32>
    %23 = tpu.matmul %20, %22, %cst_27 {dimension_numbers = #tpu.dot_dimension_numbers<[1], [0], [0], [1], [0, 0, 1, 1], [], []>} : vector<28x32xf32>, vector<32x168xf32>, vector<28x168xf32> -> vector<28x168xf32>
    %24 = arith.addf %18, %23 : vector<28x168xf32>
    %c0_28 = arith.constant 0 : index
    %c0_29 = arith.constant 0 : index
    %c4 = arith.constant 4 : index
    %c0_30 = arith.constant 0 : index
    %25 = vector.load %arg1[%c0_28, %c0_29, %c4, %c0_30] : memref<1x3x32x32xf32, #tpu.memory_space<vmem>>, vector<1x1x28x32xf32>
    %26 = vector.shape_cast %25 : vector<1x1x28x32xf32> to vector<28x32xf32>
    %c4_31 = arith.constant 4 : index
    %c0_32 = arith.constant 0 : index
    %c0_33 = arith.constant 0 : index
    %27 = vector.load %arg2[%c4_31, %c0_32, %c0_33] : memref<15x32x168xf32, #tpu.memory_space<vmem>>, vector<1x32x168xf32>
    %28 = vector.shape_cast %27 : vector<1x32x168xf32> to vector<32x168xf32>
    %cst_34 = arith.constant dense<0.000000e+00> : vector<28x168xf32>
    %29 = tpu.matmul %26, %28, %cst_34 {dimension_numbers = #tpu.dot_dimension_numbers<[1], [0], [0], [1], [0, 0, 1, 1], [], []>} : vector<28x32xf32>, vector<32x168xf32>, vector<28x168xf32> -> vector<28x168xf32>
    %30 = arith.addf %24, %29 : vector<28x168xf32>
    %c0_35 = arith.constant 0 : index
    %c1_36 = arith.constant 1 : index
    %c0_37 = arith.constant 0 : index
    %c0_38 = arith.constant 0 : index
    %31 = vector.load %arg1[%c0_35, %c1_36, %c0_37, %c0_38] : memref<1x3x32x32xf32, #tpu.memory_space<vmem>>, vector<1x1x28x32xf32>
    %32 = vector.shape_cast %31 : vector<1x1x28x32xf32> to vector<28x32xf32>
    %c5 = arith.constant 5 : index
    %c0_39 = arith.constant 0 : index
    %c0_40 = arith.constant 0 : index
    %33 = vector.load %arg2[%c5, %c0_39, %c0_40] : memref<15x32x168xf32, #tpu.memory_space<vmem>>, vector<1x32x168xf32>
    %34 = vector.shape_cast %33 : vector<1x32x168xf32> to vector<32x168xf32>
    %cst_41 = arith.constant dense<0.000000e+00> : vector<28x168xf32>
    %35 = tpu.matmul %32, %34, %cst_41 {dimension_numbers = #tpu.dot_dimension_numbers<[1], [0], [0], [1], [0, 0, 1, 1], [], []>} : vector<28x32xf32>, vector<32x168xf32>, vector<28x168xf32> -> vector<28x168xf32>
    %36 = arith.addf %30, %35 : vector<28x168xf32>
    %c0_42 = arith.constant 0 : index
    %c1_43 = arith.constant 1 : index
    %c1_44 = arith.constant 1 : index
    %c0_45 = arith.constant 0 : index
    %37 = vector.load %arg1[%c0_42, %c1_43, %c1_44, %c0_45] : memref<1x3x32x32xf32, #tpu.memory_space<vmem>>, vector<1x1x28x32xf32>
    %38 = vector.shape_cast %37 : vector<1x1x28x32xf32> to vector<28x32xf32>
    %c6 = arith.constant 6 : index
    %c0_46 = arith.constant 0 : index
    %c0_47 = arith.constant 0 : index
    %39 = vector.load %arg2[%c6, %c0_46, %c0_47] : memref<15x32x168xf32, #tpu.memory_space<vmem>>, vector<1x32x168xf32>
    %40 = vector.shape_cast %39 : vector<1x32x168xf32> to vector<32x168xf32>
    %cst_48 = arith.constant dense<0.000000e+00> : vector<28x168xf32>
    %41 = tpu.matmul %38, %40, %cst_48 {dimension_numbers = #tpu.dot_dimension_numbers<[1], [0], [0], [1], [0, 0, 1, 1], [], []>} : vector<28x32xf32>, vector<32x168xf32>, vector<28x168xf32> -> vector<28x168xf32>
    %42 = arith.addf %36, %41 : vector<28x168xf32>
    %c0_49 = arith.constant 0 : index
    %c1_50 = arith.constant 1 : index
    %c2_51 = arith.constant 2 : index
    %c0_52 = arith.constant 0 : index
    %43 = vector.load %arg1[%c0_49, %c1_50, %c2_51, %c0_52] : memref<1x3x32x32xf32, #tpu.memory_space<vmem>>, vector<1x1x28x32xf32>
    %44 = vector.shape_cast %43 : vector<1x1x28x32xf32> to vector<28x32xf32>
    %c7 = arith.constant 7 : index
    %c0_53 = arith.constant 0 : index
    %c0_54 = arith.constant 0 : index
    %45 = vector.load %arg2[%c7, %c0_53, %c0_54] : memref<15x32x168xf32, #tpu.memory_space<vmem>>, vector<1x32x168xf32>
    %46 = vector.shape_cast %45 : vector<1x32x168xf32> to vector<32x168xf32>
    %cst_55 = arith.constant dense<0.000000e+00> : vector<28x168xf32>
    %47 = tpu.matmul %44, %46, %cst_55 {dimension_numbers = #tpu.dot_dimension_numbers<[1], [0], [0], [1], [0, 0, 1, 1], [], []>} : vector<28x32xf32>, vector<32x168xf32>, vector<28x168xf32> -> vector<28x168xf32>
    %48 = arith.addf %42, %47 : vector<28x168xf32>
    %c0_56 = arith.constant 0 : index
    %c1_57 = arith.constant 1 : index
    %c3_58 = arith.constant 3 : index
    %c0_59 = arith.constant 0 : index
    %49 = vector.load %arg1[%c0_56, %c1_57, %c3_58, %c0_59] : memref<1x3x32x32xf32, #tpu.memory_space<vmem>>, vector<1x1x28x32xf32>
    %50 = vector.shape_cast %49 : vector<1x1x28x32xf32> to vector<28x32xf32>
    %c8 = arith.constant 8 : index
    %c0_60 = arith.constant 0 : index
    %c0_61 = arith.constant 0 : index
    %51 = vector.load %arg2[%c8, %c0_60, %c0_61] : memref<15x32x168xf32, #tpu.memory_space<vmem>>, vector<1x32x168xf32>
    %52 = vector.shape_cast %51 : vector<1x32x168xf32> to vector<32x168xf32>
    %cst_62 = arith.constant dense<0.000000e+00> : vector<28x168xf32>
    %53 = tpu.matmul %50, %52, %cst_62 {dimension_numbers = #tpu.dot_dimension_numbers<[1], [0], [0], [1], [0, 0, 1, 1], [], []>} : vector<28x32xf32>, vector<32x168xf32>, vector<28x168xf32> -> vector<28x168xf32>
    %54 = arith.addf %48, %53 : vector<28x168xf32>
    %c0_63 = arith.constant 0 : index
    %c1_64 = arith.constant 1 : index
    %c4_65 = arith.constant 4 : index
    %c0_66 = arith.constant 0 : index
    %55 = vector.load %arg1[%c0_63, %c1_64, %c4_65, %c0_66] : memref<1x3x32x32xf32, #tpu.memory_space<vmem>>, vector<1x1x28x32xf32>
    %56 = vector.shape_cast %55 : vector<1x1x28x32xf32> to vector<28x32xf32>
    %c9 = arith.constant 9 : index
    %c0_67 = arith.constant 0 : index
    %c0_68 = arith.constant 0 : index
    %57 = vector.load %arg2[%c9, %c0_67, %c0_68] : memref<15x32x168xf32, #tpu.memory_space<vmem>>, vector<1x32x168xf32>
    %58 = vector.shape_cast %57 : vector<1x32x168xf32> to vector<32x168xf32>
    %cst_69 = arith.constant dense<0.000000e+00> : vector<28x168xf32>
    %59 = tpu.matmul %56, %58, %cst_69 {dimension_numbers = #tpu.dot_dimension_numbers<[1], [0], [0], [1], [0, 0, 1, 1], [], []>} : vector<28x32xf32>, vector<32x168xf32>, vector<28x168xf32> -> vector<28x168xf32>
    %60 = arith.addf %54, %59 : vector<28x168xf32>
    %c0_70 = arith.constant 0 : index
    %c2_71 = arith.constant 2 : index
    %c0_72 = arith.constant 0 : index
    %c0_73 = arith.constant 0 : index
    %61 = vector.load %arg1[%c0_70, %c2_71, %c0_72, %c0_73] : memref<1x3x32x32xf32, #tpu.memory_space<vmem>>, vector<1x1x28x32xf32>
    %62 = vector.shape_cast %61 : vector<1x1x28x32xf32> to vector<28x32xf32>
    %c10 = arith.constant 10 : index
    %c0_74 = arith.constant 0 : index
    %c0_75 = arith.constant 0 : index
    %63 = vector.load %arg2[%c10, %c0_74, %c0_75] : memref<15x32x168xf32, #tpu.memory_space<vmem>>, vector<1x32x168xf32>
    %64 = vector.shape_cast %63 : vector<1x32x168xf32> to vector<32x168xf32>
    %cst_76 = arith.constant dense<0.000000e+00> : vector<28x168xf32>
    %65 = tpu.matmul %62, %64, %cst_76 {dimension_numbers = #tpu.dot_dimension_numbers<[1], [0], [0], [1], [0, 0, 1, 1], [], []>} : vector<28x32xf32>, vector<32x168xf32>, vector<28x168xf32> -> vector<28x168xf32>
    %66 = arith.addf %60, %65 : vector<28x168xf32>
    %c0_77 = arith.constant 0 : index
    %c2_78 = arith.constant 2 : index
    %c1_79 = arith.constant 1 : index
    %c0_80 = arith.constant 0 : index
    %67 = vector.load %arg1[%c0_77, %c2_78, %c1_79, %c0_80] : memref<1x3x32x32xf32, #tpu.memory_space<vmem>>, vector<1x1x28x32xf32>
    %68 = vector.shape_cast %67 : vector<1x1x28x32xf32> to vector<28x32xf32>
    %c11 = arith.constant 11 : index
    %c0_81 = arith.constant 0 : index
    %c0_82 = arith.constant 0 : index
    %69 = vector.load %arg2[%c11, %c0_81, %c0_82] : memref<15x32x168xf32, #tpu.memory_space<vmem>>, vector<1x32x168xf32>
    %70 = vector.shape_cast %69 : vector<1x32x168xf32> to vector<32x168xf32>
    %cst_83 = arith.constant dense<0.000000e+00> : vector<28x168xf32>
    %71 = tpu.matmul %68, %70, %cst_83 {dimension_numbers = #tpu.dot_dimension_numbers<[1], [0], [0], [1], [0, 0, 1, 1], [], []>} : vector<28x32xf32>, vector<32x168xf32>, vector<28x168xf32> -> vector<28x168xf32>
    %72 = arith.addf %66, %71 : vector<28x168xf32>
    %c0_84 = arith.constant 0 : index
    %c2_85 = arith.constant 2 : index
    %c2_86 = arith.constant 2 : index
    %c0_87 = arith.constant 0 : index
    %73 = vector.load %arg1[%c0_84, %c2_85, %c2_86, %c0_87] : memref<1x3x32x32xf32, #tpu.memory_space<vmem>>, vector<1x1x28x32xf32>
    %74 = vector.shape_cast %73 : vector<1x1x28x32xf32> to vector<28x32xf32>
    %c12 = arith.constant 12 : index
    %c0_88 = arith.constant 0 : index
    %c0_89 = arith.constant 0 : index
    %75 = vector.load %arg2[%c12, %c0_88, %c0_89] : memref<15x32x168xf32, #tpu.memory_space<vmem>>, vector<1x32x168xf32>
    %76 = vector.shape_cast %75 : vector<1x32x168xf32> to vector<32x168xf32>
    %cst_90 = arith.constant dense<0.000000e+00> : vector<28x168xf32>
    %77 = tpu.matmul %74, %76, %cst_90 {dimension_numbers = #tpu.dot_dimension_numbers<[1], [0], [0], [1], [0, 0, 1, 1], [], []>} : vector<28x32xf32>, vector<32x168xf32>, vector<28x168xf32> -> vector<28x168xf32>
    %78 = arith.addf %72, %77 : vector<28x168xf32>
    %c0_91 = arith.constant 0 : index
    %c2_92 = arith.constant 2 : index
    %c3_93 = arith.constant 3 : index
    %c0_94 = arith.constant 0 : index
    %79 = vector.load %arg1[%c0_91, %c2_92, %c3_93, %c0_94] : memref<1x3x32x32xf32, #tpu.memory_space<vmem>>, vector<1x1x28x32xf32>
    %80 = vector.shape_cast %79 : vector<1x1x28x32xf32> to vector<28x32xf32>
    %c13 = arith.constant 13 : index
    %c0_95 = arith.constant 0 : index
    %c0_96 = arith.constant 0 : index
    %81 = vector.load %arg2[%c13, %c0_95, %c0_96] : memref<15x32x168xf32, #tpu.memory_space<vmem>>, vector<1x32x168xf32>
    %82 = vector.shape_cast %81 : vector<1x32x168xf32> to vector<32x168xf32>
    %cst_97 = arith.constant dense<0.000000e+00> : vector<28x168xf32>
    %83 = tpu.matmul %80, %82, %cst_97 {dimension_numbers = #tpu.dot_dimension_numbers<[1], [0], [0], [1], [0, 0, 1, 1], [], []>} : vector<28x32xf32>, vector<32x168xf32>, vector<28x168xf32> -> vector<28x168xf32>
    %84 = arith.addf %78, %83 : vector<28x168xf32>
    %c0_98 = arith.constant 0 : index
    %c2_99 = arith.constant 2 : index
    %c4_100 = arith.constant 4 : index
    %c0_101 = arith.constant 0 : index
    %85 = vector.load %arg1[%c0_98, %c2_99, %c4_100, %c0_101] : memref<1x3x32x32xf32, #tpu.memory_space<vmem>>, vector<1x1x28x32xf32>
    %86 = vector.shape_cast %85 : vector<1x1x28x32xf32> to vector<28x32xf32>
    %c14 = arith.constant 14 : index
    %c0_102 = arith.constant 0 : index
    %c0_103 = arith.constant 0 : index
    %87 = vector.load %arg2[%c14, %c0_102, %c0_103] : memref<15x32x168xf32, #tpu.memory_space<vmem>>, vector<1x32x168xf32>
    %88 = vector.shape_cast %87 : vector<1x32x168xf32> to vector<32x168xf32>
    %cst_104 = arith.constant dense<0.000000e+00> : vector<28x168xf32>
    %89 = tpu.matmul %86, %88, %cst_104 {dimension_numbers = #tpu.dot_dimension_numbers<[1], [0], [0], [1], [0, 0, 1, 1], [], []>} : vector<28x32xf32>, vector<32x168xf32>, vector<28x168xf32> -> vector<28x168xf32>
    %90 = arith.addf %84, %89 : vector<28x168xf32>
    %c0_105 = arith.constant 0 : index
    %c0_106 = arith.constant 0 : index
    %91 = vector.load %arg3[%c0_105, %c0_106] : memref<1x168xf32, #tpu.memory_space<vmem>>, vector<1x168xf32>
    %92 = vector.broadcast %91 : vector<1x168xf32> to vector<28x168xf32>
    %93 = arith.addf %90, %92 : vector<28x168xf32>
    %cst_107 = arith.constant 0.000000e+00 : f32
    %94 = vector.broadcast %cst_107 : f32 to vector<28x168xf32>
    %95 = arith.maximumf %93, %94 : vector<28x168xf32>
    %c0_108 = arith.constant 0 : index
    %c0_109 = arith.constant 0 : index
    %96 = vector.load %arg6[%c0_108, %c0_109] : memref<168x84xf32, #tpu.memory_space<vmem>>, vector<168x84xf32>
    %c0_110 = arith.constant 0 : index
    %c0_111 = arith.constant 0 : index
    %97 = vector.load %arg7[%c0_110, %c0_111] : memref<168x84xf32, #tpu.memory_space<vmem>>, vector<168x84xf32>
    %c0_112 = arith.constant 0 : index
    %c0_113 = arith.constant 0 : index
    %98 = vector.load %arg4[%c0_112, %c0_113] : memref<14x28xf32, #tpu.memory_space<vmem>>, vector<14x28xf32>
    %cst_114 = arith.constant dense<0.000000e+00> : vector<14x168xf32>
    %99 = tpu.matmul %98, %95, %cst_114 {dimension_numbers = #tpu.dot_dimension_numbers<[1], [0], [0], [1], [0, 0, 1, 1], [], []>} : vector<14x28xf32>, vector<28x168xf32>, vector<14x168xf32> -> vector<14x168xf32>
    %c0_115 = arith.constant 0 : index
    %c0_116 = arith.constant 0 : index
    %100 = vector.load %arg5[%c0_115, %c0_116] : memref<14x28xf32, #tpu.memory_space<vmem>>, vector<14x28xf32>
    %cst_117 = arith.constant dense<0.000000e+00> : vector<14x168xf32>
    %101 = tpu.matmul %100, %95, %cst_117 {dimension_numbers = #tpu.dot_dimension_numbers<[1], [0], [0], [1], [0, 0, 1, 1], [], []>} : vector<14x28xf32>, vector<28x168xf32>, vector<14x168xf32> -> vector<14x168xf32>
    %cst_118 = arith.constant dense<0.000000e+00> : vector<14x84xf32>
    %102 = tpu.matmul %99, %96, %cst_118 {dimension_numbers = #tpu.dot_dimension_numbers<[1], [0], [0], [1], [0, 0, 1, 1], [], []>} : vector<14x168xf32>, vector<168x84xf32>, vector<14x84xf32> -> vector<14x84xf32>
    %cst_119 = arith.constant dense<0.000000e+00> : vector<14x84xf32>
    %103 = tpu.matmul %99, %97, %cst_119 {dimension_numbers = #tpu.dot_dimension_numbers<[1], [0], [0], [1], [0, 0, 1, 1], [], []>} : vector<14x168xf32>, vector<168x84xf32>, vector<14x84xf32> -> vector<14x84xf32>
    %104 = arith.maximumf %102, %103 : vector<14x84xf32>
    %cst_120 = arith.constant dense<0.000000e+00> : vector<14x84xf32>
    %105 = tpu.matmul %101, %96, %cst_120 {dimension_numbers = #tpu.dot_dimension_numbers<[1], [0], [0], [1], [0, 0, 1, 1], [], []>} : vector<14x168xf32>, vector<168x84xf32>, vector<14x84xf32> -> vector<14x84xf32>
    %cst_121 = arith.constant dense<0.000000e+00> : vector<14x84xf32>
    %106 = tpu.matmul %101, %97, %cst_121 {dimension_numbers = #tpu.dot_dimension_numbers<[1], [0], [0], [1], [0, 0, 1, 1], [], []>} : vector<14x168xf32>, vector<168x84xf32>, vector<14x84xf32> -> vector<14x84xf32>
    %107 = arith.maximumf %105, %106 : vector<14x84xf32>
    %108 = arith.maximumf %104, %107 : vector<14x84xf32>
    %cst_122 = arith.constant 0.000000e+00 : f32
    %109 = vector.broadcast %cst_122 : f32 to vector<10x160xf32>
    %110 = vector.extract_strided_slice %108 {offsets = [0, 0], sizes = [10, 14], strides = [1, 1]} : vector<14x84xf32> to vector<10x14xf32>
    %c0_123 = arith.constant 0 : index
    %c0_124 = arith.constant 0 : index
    %c0_125 = arith.constant 0 : index
    %111 = vector.load %arg8[%c0_123, %c0_124, %c0_125] : memref<30x14x160xf32, #tpu.memory_space<vmem>>, vector<1x14x160xf32>
    %112 = vector.shape_cast %111 : vector<1x14x160xf32> to vector<14x160xf32>
    %cst_126 = arith.constant dense<0.000000e+00> : vector<10x160xf32>
    %113 = tpu.matmul %110, %112, %cst_126 {dimension_numbers = #tpu.dot_dimension_numbers<[1], [0], [0], [1], [0, 0, 1, 1], [], []>} : vector<10x14xf32>, vector<14x160xf32>, vector<10x160xf32> -> vector<10x160xf32>
    %114 = arith.addf %109, %113 : vector<10x160xf32>
    %115 = vector.extract_strided_slice %108 {offsets = [1, 0], sizes = [10, 14], strides = [1, 1]} : vector<14x84xf32> to vector<10x14xf32>
    %c1_127 = arith.constant 1 : index
    %c0_128 = arith.constant 0 : index
    %c0_129 = arith.constant 0 : index
    %116 = vector.load %arg8[%c1_127, %c0_128, %c0_129] : memref<30x14x160xf32, #tpu.memory_space<vmem>>, vector<1x14x160xf32>
    %117 = vector.shape_cast %116 : vector<1x14x160xf32> to vector<14x160xf32>
    %cst_130 = arith.constant dense<0.000000e+00> : vector<10x160xf32>
    %118 = tpu.matmul %115, %117, %cst_130 {dimension_numbers = #tpu.dot_dimension_numbers<[1], [0], [0], [1], [0, 0, 1, 1], [], []>} : vector<10x14xf32>, vector<14x160xf32>, vector<10x160xf32> -> vector<10x160xf32>
    %119 = arith.addf %114, %118 : vector<10x160xf32>
    %120 = vector.extract_strided_slice %108 {offsets = [2, 0], sizes = [10, 14], strides = [1, 1]} : vector<14x84xf32> to vector<10x14xf32>
    %c2_131 = arith.constant 2 : index
    %c0_132 = arith.constant 0 : index
    %c0_133 = arith.constant 0 : index
    %121 = vector.load %arg8[%c2_131, %c0_132, %c0_133] : memref<30x14x160xf32, #tpu.memory_space<vmem>>, vector<1x14x160xf32>
    %122 = vector.shape_cast %121 : vector<1x14x160xf32> to vector<14x160xf32>
    %cst_134 = arith.constant dense<0.000000e+00> : vector<10x160xf32>
    %123 = tpu.matmul %120, %122, %cst_134 {dimension_numbers = #tpu.dot_dimension_numbers<[1], [0], [0], [1], [0, 0, 1, 1], [], []>} : vector<10x14xf32>, vector<14x160xf32>, vector<10x160xf32> -> vector<10x160xf32>
    %124 = arith.addf %119, %123 : vector<10x160xf32>
    %125 = vector.extract_strided_slice %108 {offsets = [3, 0], sizes = [10, 14], strides = [1, 1]} : vector<14x84xf32> to vector<10x14xf32>
    %c3_135 = arith.constant 3 : index
    %c0_136 = arith.constant 0 : index
    %c0_137 = arith.constant 0 : index
    %126 = vector.load %arg8[%c3_135, %c0_136, %c0_137] : memref<30x14x160xf32, #tpu.memory_space<vmem>>, vector<1x14x160xf32>
    %127 = vector.shape_cast %126 : vector<1x14x160xf32> to vector<14x160xf32>
    %cst_138 = arith.constant dense<0.000000e+00> : vector<10x160xf32>
    %128 = tpu.matmul %125, %127, %cst_138 {dimension_numbers = #tpu.dot_dimension_numbers<[1], [0], [0], [1], [0, 0, 1, 1], [], []>} : vector<10x14xf32>, vector<14x160xf32>, vector<10x160xf32> -> vector<10x160xf32>
    %129 = arith.addf %124, %128 : vector<10x160xf32>
    %130 = vector.extract_strided_slice %108 {offsets = [4, 0], sizes = [10, 14], strides = [1, 1]} : vector<14x84xf32> to vector<10x14xf32>
    %c4_139 = arith.constant 4 : index
    %c0_140 = arith.constant 0 : index
    %c0_141 = arith.constant 0 : index
    %131 = vector.load %arg8[%c4_139, %c0_140, %c0_141] : memref<30x14x160xf32, #tpu.memory_space<vmem>>, vector<1x14x160xf32>
    %132 = vector.shape_cast %131 : vector<1x14x160xf32> to vector<14x160xf32>
    %cst_142 = arith.constant dense<0.000000e+00> : vector<10x160xf32>
    %133 = tpu.matmul %130, %132, %cst_142 {dimension_numbers = #tpu.dot_dimension_numbers<[1], [0], [0], [1], [0, 0, 1, 1], [], []>} : vector<10x14xf32>, vector<14x160xf32>, vector<10x160xf32> -> vector<10x160xf32>
    %134 = arith.addf %129, %133 : vector<10x160xf32>
    %135 = vector.extract_strided_slice %108 {offsets = [0, 14], sizes = [10, 14], strides = [1, 1]} : vector<14x84xf32> to vector<10x14xf32>
    %c5_143 = arith.constant 5 : index
    %c0_144 = arith.constant 0 : index
    %c0_145 = arith.constant 0 : index
    %136 = vector.load %arg8[%c5_143, %c0_144, %c0_145] : memref<30x14x160xf32, #tpu.memory_space<vmem>>, vector<1x14x160xf32>
    %137 = vector.shape_cast %136 : vector<1x14x160xf32> to vector<14x160xf32>
    %cst_146 = arith.constant dense<0.000000e+00> : vector<10x160xf32>
    %138 = tpu.matmul %135, %137, %cst_146 {dimension_numbers = #tpu.dot_dimension_numbers<[1], [0], [0], [1], [0, 0, 1, 1], [], []>} : vector<10x14xf32>, vector<14x160xf32>, vector<10x160xf32> -> vector<10x160xf32>
    %139 = arith.addf %134, %138 : vector<10x160xf32>
    %140 = vector.extract_strided_slice %108 {offsets = [1, 14], sizes = [10, 14], strides = [1, 1]} : vector<14x84xf32> to vector<10x14xf32>
    %c6_147 = arith.constant 6 : index
    %c0_148 = arith.constant 0 : index
    %c0_149 = arith.constant 0 : index
    %141 = vector.load %arg8[%c6_147, %c0_148, %c0_149] : memref<30x14x160xf32, #tpu.memory_space<vmem>>, vector<1x14x160xf32>
    %142 = vector.shape_cast %141 : vector<1x14x160xf32> to vector<14x160xf32>
    %cst_150 = arith.constant dense<0.000000e+00> : vector<10x160xf32>
    %143 = tpu.matmul %140, %142, %cst_150 {dimension_numbers = #tpu.dot_dimension_numbers<[1], [0], [0], [1], [0, 0, 1, 1], [], []>} : vector<10x14xf32>, vector<14x160xf32>, vector<10x160xf32> -> vector<10x160xf32>
    %144 = arith.addf %139, %143 : vector<10x160xf32>
    %145 = vector.extract_strided_slice %108 {offsets = [2, 14], sizes = [10, 14], strides = [1, 1]} : vector<14x84xf32> to vector<10x14xf32>
    %c7_151 = arith.constant 7 : index
    %c0_152 = arith.constant 0 : index
    %c0_153 = arith.constant 0 : index
    %146 = vector.load %arg8[%c7_151, %c0_152, %c0_153] : memref<30x14x160xf32, #tpu.memory_space<vmem>>, vector<1x14x160xf32>
    %147 = vector.shape_cast %146 : vector<1x14x160xf32> to vector<14x160xf32>
    %cst_154 = arith.constant dense<0.000000e+00> : vector<10x160xf32>
    %148 = tpu.matmul %145, %147, %cst_154 {dimension_numbers = #tpu.dot_dimension_numbers<[1], [0], [0], [1], [0, 0, 1, 1], [], []>} : vector<10x14xf32>, vector<14x160xf32>, vector<10x160xf32> -> vector<10x160xf32>
    %149 = arith.addf %144, %148 : vector<10x160xf32>
    %150 = vector.extract_strided_slice %108 {offsets = [3, 14], sizes = [10, 14], strides = [1, 1]} : vector<14x84xf32> to vector<10x14xf32>
    %c8_155 = arith.constant 8 : index
    %c0_156 = arith.constant 0 : index
    %c0_157 = arith.constant 0 : index
    %151 = vector.load %arg8[%c8_155, %c0_156, %c0_157] : memref<30x14x160xf32, #tpu.memory_space<vmem>>, vector<1x14x160xf32>
    %152 = vector.shape_cast %151 : vector<1x14x160xf32> to vector<14x160xf32>
    %cst_158 = arith.constant dense<0.000000e+00> : vector<10x160xf32>
    %153 = tpu.matmul %150, %152, %cst_158 {dimension_numbers = #tpu.dot_dimension_numbers<[1], [0], [0], [1], [0, 0, 1, 1], [], []>} : vector<10x14xf32>, vector<14x160xf32>, vector<10x160xf32> -> vector<10x160xf32>
    %154 = arith.addf %149, %153 : vector<10x160xf32>
    %155 = vector.extract_strided_slice %108 {offsets = [4, 14], sizes = [10, 14], strides = [1, 1]} : vector<14x84xf32> to vector<10x14xf32>
    %c9_159 = arith.constant 9 : index
    %c0_160 = arith.constant 0 : index
    %c0_161 = arith.constant 0 : index
    %156 = vector.load %arg8[%c9_159, %c0_160, %c0_161] : memref<30x14x160xf32, #tpu.memory_space<vmem>>, vector<1x14x160xf32>
    %157 = vector.shape_cast %156 : vector<1x14x160xf32> to vector<14x160xf32>
    %cst_162 = arith.constant dense<0.000000e+00> : vector<10x160xf32>
    %158 = tpu.matmul %155, %157, %cst_162 {dimension_numbers = #tpu.dot_dimension_numbers<[1], [0], [0], [1], [0, 0, 1, 1], [], []>} : vector<10x14xf32>, vector<14x160xf32>, vector<10x160xf32> -> vector<10x160xf32>
    %159 = arith.addf %154, %158 : vector<10x160xf32>
    %160 = vector.extract_strided_slice %108 {offsets = [0, 28], sizes = [10, 14], strides = [1, 1]} : vector<14x84xf32> to vector<10x14xf32>
    %c10_163 = arith.constant 10 : index
    %c0_164 = arith.constant 0 : index
    %c0_165 = arith.constant 0 : index
    %161 = vector.load %arg8[%c10_163, %c0_164, %c0_165] : memref<30x14x160xf32, #tpu.memory_space<vmem>>, vector<1x14x160xf32>
    %162 = vector.shape_cast %161 : vector<1x14x160xf32> to vector<14x160xf32>
    %cst_166 = arith.constant dense<0.000000e+00> : vector<10x160xf32>
    %163 = tpu.matmul %160, %162, %cst_166 {dimension_numbers = #tpu.dot_dimension_numbers<[1], [0], [0], [1], [0, 0, 1, 1], [], []>} : vector<10x14xf32>, vector<14x160xf32>, vector<10x160xf32> -> vector<10x160xf32>
    %164 = arith.addf %159, %163 : vector<10x160xf32>
    %165 = vector.extract_strided_slice %108 {offsets = [1, 28], sizes = [10, 14], strides = [1, 1]} : vector<14x84xf32> to vector<10x14xf32>
    %c11_167 = arith.constant 11 : index
    %c0_168 = arith.constant 0 : index
    %c0_169 = arith.constant 0 : index
    %166 = vector.load %arg8[%c11_167, %c0_168, %c0_169] : memref<30x14x160xf32, #tpu.memory_space<vmem>>, vector<1x14x160xf32>
    %167 = vector.shape_cast %166 : vector<1x14x160xf32> to vector<14x160xf32>
    %cst_170 = arith.constant dense<0.000000e+00> : vector<10x160xf32>
    %168 = tpu.matmul %165, %167, %cst_170 {dimension_numbers = #tpu.dot_dimension_numbers<[1], [0], [0], [1], [0, 0, 1, 1], [], []>} : vector<10x14xf32>, vector<14x160xf32>, vector<10x160xf32> -> vector<10x160xf32>
    %169 = arith.addf %164, %168 : vector<10x160xf32>
    %170 = vector.extract_strided_slice %108 {offsets = [2, 28], sizes = [10, 14], strides = [1, 1]} : vector<14x84xf32> to vector<10x14xf32>
    %c12_171 = arith.constant 12 : index
    %c0_172 = arith.constant 0 : index
    %c0_173 = arith.constant 0 : index
    %171 = vector.load %arg8[%c12_171, %c0_172, %c0_173] : memref<30x14x160xf32, #tpu.memory_space<vmem>>, vector<1x14x160xf32>
    %172 = vector.shape_cast %171 : vector<1x14x160xf32> to vector<14x160xf32>
    %cst_174 = arith.constant dense<0.000000e+00> : vector<10x160xf32>
    %173 = tpu.matmul %170, %172, %cst_174 {dimension_numbers = #tpu.dot_dimension_numbers<[1], [0], [0], [1], [0, 0, 1, 1], [], []>} : vector<10x14xf32>, vector<14x160xf32>, vector<10x160xf32> -> vector<10x160xf32>
    %174 = arith.addf %169, %173 : vector<10x160xf32>
    %175 = vector.extract_strided_slice %108 {offsets = [3, 28], sizes = [10, 14], strides = [1, 1]} : vector<14x84xf32> to vector<10x14xf32>
    %c13_175 = arith.constant 13 : index
    %c0_176 = arith.constant 0 : index
    %c0_177 = arith.constant 0 : index
    %176 = vector.load %arg8[%c13_175, %c0_176, %c0_177] : memref<30x14x160xf32, #tpu.memory_space<vmem>>, vector<1x14x160xf32>
    %177 = vector.shape_cast %176 : vector<1x14x160xf32> to vector<14x160xf32>
    %cst_178 = arith.constant dense<0.000000e+00> : vector<10x160xf32>
    %178 = tpu.matmul %175, %177, %cst_178 {dimension_numbers = #tpu.dot_dimension_numbers<[1], [0], [0], [1], [0, 0, 1, 1], [], []>} : vector<10x14xf32>, vector<14x160xf32>, vector<10x160xf32> -> vector<10x160xf32>
    %179 = arith.addf %174, %178 : vector<10x160xf32>
    %180 = vector.extract_strided_slice %108 {offsets = [4, 28], sizes = [10, 14], strides = [1, 1]} : vector<14x84xf32> to vector<10x14xf32>
    %c14_179 = arith.constant 14 : index
    %c0_180 = arith.constant 0 : index
    %c0_181 = arith.constant 0 : index
    %181 = vector.load %arg8[%c14_179, %c0_180, %c0_181] : memref<30x14x160xf32, #tpu.memory_space<vmem>>, vector<1x14x160xf32>
    %182 = vector.shape_cast %181 : vector<1x14x160xf32> to vector<14x160xf32>
    %cst_182 = arith.constant dense<0.000000e+00> : vector<10x160xf32>
    %183 = tpu.matmul %180, %182, %cst_182 {dimension_numbers = #tpu.dot_dimension_numbers<[1], [0], [0], [1], [0, 0, 1, 1], [], []>} : vector<10x14xf32>, vector<14x160xf32>, vector<10x160xf32> -> vector<10x160xf32>
    %184 = arith.addf %179, %183 : vector<10x160xf32>
    %185 = vector.extract_strided_slice %108 {offsets = [0, 42], sizes = [10, 14], strides = [1, 1]} : vector<14x84xf32> to vector<10x14xf32>
    %c15 = arith.constant 15 : index
    %c0_183 = arith.constant 0 : index
    %c0_184 = arith.constant 0 : index
    %186 = vector.load %arg8[%c15, %c0_183, %c0_184] : memref<30x14x160xf32, #tpu.memory_space<vmem>>, vector<1x14x160xf32>
    %187 = vector.shape_cast %186 : vector<1x14x160xf32> to vector<14x160xf32>
    %cst_185 = arith.constant dense<0.000000e+00> : vector<10x160xf32>
    %188 = tpu.matmul %185, %187, %cst_185 {dimension_numbers = #tpu.dot_dimension_numbers<[1], [0], [0], [1], [0, 0, 1, 1], [], []>} : vector<10x14xf32>, vector<14x160xf32>, vector<10x160xf32> -> vector<10x160xf32>
    %189 = arith.addf %184, %188 : vector<10x160xf32>
    %190 = vector.extract_strided_slice %108 {offsets = [1, 42], sizes = [10, 14], strides = [1, 1]} : vector<14x84xf32> to vector<10x14xf32>
    %c16 = arith.constant 16 : index
    %c0_186 = arith.constant 0 : index
    %c0_187 = arith.constant 0 : index
    %191 = vector.load %arg8[%c16, %c0_186, %c0_187] : memref<30x14x160xf32, #tpu.memory_space<vmem>>, vector<1x14x160xf32>
    %192 = vector.shape_cast %191 : vector<1x14x160xf32> to vector<14x160xf32>
    %cst_188 = arith.constant dense<0.000000e+00> : vector<10x160xf32>
    %193 = tpu.matmul %190, %192, %cst_188 {dimension_numbers = #tpu.dot_dimension_numbers<[1], [0], [0], [1], [0, 0, 1, 1], [], []>} : vector<10x14xf32>, vector<14x160xf32>, vector<10x160xf32> -> vector<10x160xf32>
    %194 = arith.addf %189, %193 : vector<10x160xf32>
    %195 = vector.extract_strided_slice %108 {offsets = [2, 42], sizes = [10, 14], strides = [1, 1]} : vector<14x84xf32> to vector<10x14xf32>
    %c17 = arith.constant 17 : index
    %c0_189 = arith.constant 0 : index
    %c0_190 = arith.constant 0 : index
    %196 = vector.load %arg8[%c17, %c0_189, %c0_190] : memref<30x14x160xf32, #tpu.memory_space<vmem>>, vector<1x14x160xf32>
    %197 = vector.shape_cast %196 : vector<1x14x160xf32> to vector<14x160xf32>
    %cst_191 = arith.constant dense<0.000000e+00> : vector<10x160xf32>
    %198 = tpu.matmul %195, %197, %cst_191 {dimension_numbers = #tpu.dot_dimension_numbers<[1], [0], [0], [1], [0, 0, 1, 1], [], []>} : vector<10x14xf32>, vector<14x160xf32>, vector<10x160xf32> -> vector<10x160xf32>
    %199 = arith.addf %194, %198 : vector<10x160xf32>
    %200 = vector.extract_strided_slice %108 {offsets = [3, 42], sizes = [10, 14], strides = [1, 1]} : vector<14x84xf32> to vector<10x14xf32>
    %c18 = arith.constant 18 : index
    %c0_192 = arith.constant 0 : index
    %c0_193 = arith.constant 0 : index
    %201 = vector.load %arg8[%c18, %c0_192, %c0_193] : memref<30x14x160xf32, #tpu.memory_space<vmem>>, vector<1x14x160xf32>
    %202 = vector.shape_cast %201 : vector<1x14x160xf32> to vector<14x160xf32>
    %cst_194 = arith.constant dense<0.000000e+00> : vector<10x160xf32>
    %203 = tpu.matmul %200, %202, %cst_194 {dimension_numbers = #tpu.dot_dimension_numbers<[1], [0], [0], [1], [0, 0, 1, 1], [], []>} : vector<10x14xf32>, vector<14x160xf32>, vector<10x160xf32> -> vector<10x160xf32>
    %204 = arith.addf %199, %203 : vector<10x160xf32>
    %205 = vector.extract_strided_slice %108 {offsets = [4, 42], sizes = [10, 14], strides = [1, 1]} : vector<14x84xf32> to vector<10x14xf32>
    %c19 = arith.constant 19 : index
    %c0_195 = arith.constant 0 : index
    %c0_196 = arith.constant 0 : index
    %206 = vector.load %arg8[%c19, %c0_195, %c0_196] : memref<30x14x160xf32, #tpu.memory_space<vmem>>, vector<1x14x160xf32>
    %207 = vector.shape_cast %206 : vector<1x14x160xf32> to vector<14x160xf32>
    %cst_197 = arith.constant dense<0.000000e+00> : vector<10x160xf32>
    %208 = tpu.matmul %205, %207, %cst_197 {dimension_numbers = #tpu.dot_dimension_numbers<[1], [0], [0], [1], [0, 0, 1, 1], [], []>} : vector<10x14xf32>, vector<14x160xf32>, vector<10x160xf32> -> vector<10x160xf32>
    %209 = arith.addf %204, %208 : vector<10x160xf32>
    %210 = vector.extract_strided_slice %108 {offsets = [0, 56], sizes = [10, 14], strides = [1, 1]} : vector<14x84xf32> to vector<10x14xf32>
    %c20 = arith.constant 20 : index
    %c0_198 = arith.constant 0 : index
    %c0_199 = arith.constant 0 : index
    %211 = vector.load %arg8[%c20, %c0_198, %c0_199] : memref<30x14x160xf32, #tpu.memory_space<vmem>>, vector<1x14x160xf32>
    %212 = vector.shape_cast %211 : vector<1x14x160xf32> to vector<14x160xf32>
    %cst_200 = arith.constant dense<0.000000e+00> : vector<10x160xf32>
    %213 = tpu.matmul %210, %212, %cst_200 {dimension_numbers = #tpu.dot_dimension_numbers<[1], [0], [0], [1], [0, 0, 1, 1], [], []>} : vector<10x14xf32>, vector<14x160xf32>, vector<10x160xf32> -> vector<10x160xf32>
    %214 = arith.addf %209, %213 : vector<10x160xf32>
    %215 = vector.extract_strided_slice %108 {offsets = [1, 56], sizes = [10, 14], strides = [1, 1]} : vector<14x84xf32> to vector<10x14xf32>
    %c21 = arith.constant 21 : index
    %c0_201 = arith.constant 0 : index
    %c0_202 = arith.constant 0 : index
    %216 = vector.load %arg8[%c21, %c0_201, %c0_202] : memref<30x14x160xf32, #tpu.memory_space<vmem>>, vector<1x14x160xf32>
    %217 = vector.shape_cast %216 : vector<1x14x160xf32> to vector<14x160xf32>
    %cst_203 = arith.constant dense<0.000000e+00> : vector<10x160xf32>
    %218 = tpu.matmul %215, %217, %cst_203 {dimension_numbers = #tpu.dot_dimension_numbers<[1], [0], [0], [1], [0, 0, 1, 1], [], []>} : vector<10x14xf32>, vector<14x160xf32>, vector<10x160xf32> -> vector<10x160xf32>
    %219 = arith.addf %214, %218 : vector<10x160xf32>
    %220 = vector.extract_strided_slice %108 {offsets = [2, 56], sizes = [10, 14], strides = [1, 1]} : vector<14x84xf32> to vector<10x14xf32>
    %c22 = arith.constant 22 : index
    %c0_204 = arith.constant 0 : index
    %c0_205 = arith.constant 0 : index
    %221 = vector.load %arg8[%c22, %c0_204, %c0_205] : memref<30x14x160xf32, #tpu.memory_space<vmem>>, vector<1x14x160xf32>
    %222 = vector.shape_cast %221 : vector<1x14x160xf32> to vector<14x160xf32>
    %cst_206 = arith.constant dense<0.000000e+00> : vector<10x160xf32>
    %223 = tpu.matmul %220, %222, %cst_206 {dimension_numbers = #tpu.dot_dimension_numbers<[1], [0], [0], [1], [0, 0, 1, 1], [], []>} : vector<10x14xf32>, vector<14x160xf32>, vector<10x160xf32> -> vector<10x160xf32>
    %224 = arith.addf %219, %223 : vector<10x160xf32>
    %225 = vector.extract_strided_slice %108 {offsets = [3, 56], sizes = [10, 14], strides = [1, 1]} : vector<14x84xf32> to vector<10x14xf32>
    %c23 = arith.constant 23 : index
    %c0_207 = arith.constant 0 : index
    %c0_208 = arith.constant 0 : index
    %226 = vector.load %arg8[%c23, %c0_207, %c0_208] : memref<30x14x160xf32, #tpu.memory_space<vmem>>, vector<1x14x160xf32>
    %227 = vector.shape_cast %226 : vector<1x14x160xf32> to vector<14x160xf32>
    %cst_209 = arith.constant dense<0.000000e+00> : vector<10x160xf32>
    %228 = tpu.matmul %225, %227, %cst_209 {dimension_numbers = #tpu.dot_dimension_numbers<[1], [0], [0], [1], [0, 0, 1, 1], [], []>} : vector<10x14xf32>, vector<14x160xf32>, vector<10x160xf32> -> vector<10x160xf32>
    %229 = arith.addf %224, %228 : vector<10x160xf32>
    %230 = vector.extract_strided_slice %108 {offsets = [4, 56], sizes = [10, 14], strides = [1, 1]} : vector<14x84xf32> to vector<10x14xf32>
    %c24 = arith.constant 24 : index
    %c0_210 = arith.constant 0 : index
    %c0_211 = arith.constant 0 : index
    %231 = vector.load %arg8[%c24, %c0_210, %c0_211] : memref<30x14x160xf32, #tpu.memory_space<vmem>>, vector<1x14x160xf32>
    %232 = vector.shape_cast %231 : vector<1x14x160xf32> to vector<14x160xf32>
    %cst_212 = arith.constant dense<0.000000e+00> : vector<10x160xf32>
    %233 = tpu.matmul %230, %232, %cst_212 {dimension_numbers = #tpu.dot_dimension_numbers<[1], [0], [0], [1], [0, 0, 1, 1], [], []>} : vector<10x14xf32>, vector<14x160xf32>, vector<10x160xf32> -> vector<10x160xf32>
    %234 = arith.addf %229, %233 : vector<10x160xf32>
    %235 = vector.extract_strided_slice %108 {offsets = [0, 70], sizes = [10, 14], strides = [1, 1]} : vector<14x84xf32> to vector<10x14xf32>
    %c25 = arith.constant 25 : index
    %c0_213 = arith.constant 0 : index
    %c0_214 = arith.constant 0 : index
    %236 = vector.load %arg8[%c25, %c0_213, %c0_214] : memref<30x14x160xf32, #tpu.memory_space<vmem>>, vector<1x14x160xf32>
    %237 = vector.shape_cast %236 : vector<1x14x160xf32> to vector<14x160xf32>
    %cst_215 = arith.constant dense<0.000000e+00> : vector<10x160xf32>
    %238 = tpu.matmul %235, %237, %cst_215 {dimension_numbers = #tpu.dot_dimension_numbers<[1], [0], [0], [1], [0, 0, 1, 1], [], []>} : vector<10x14xf32>, vector<14x160xf32>, vector<10x160xf32> -> vector<10x160xf32>
    %239 = arith.addf %234, %238 : vector<10x160xf32>
    %240 = vector.extract_strided_slice %108 {offsets = [1, 70], sizes = [10, 14], strides = [1, 1]} : vector<14x84xf32> to vector<10x14xf32>
    %c26 = arith.constant 26 : index
    %c0_216 = arith.constant 0 : index
    %c0_217 = arith.constant 0 : index
    %241 = vector.load %arg8[%c26, %c0_216, %c0_217] : memref<30x14x160xf32, #tpu.memory_space<vmem>>, vector<1x14x160xf32>
    %242 = vector.shape_cast %241 : vector<1x14x160xf32> to vector<14x160xf32>
    %cst_218 = arith.constant dense<0.000000e+00> : vector<10x160xf32>
    %243 = tpu.matmul %240, %242, %cst_218 {dimension_numbers = #tpu.dot_dimension_numbers<[1], [0], [0], [1], [0, 0, 1, 1], [], []>} : vector<10x14xf32>, vector<14x160xf32>, vector<10x160xf32> -> vector<10x160xf32>
    %244 = arith.addf %239, %243 : vector<10x160xf32>
    %245 = vector.extract_strided_slice %108 {offsets = [2, 70], sizes = [10, 14], strides = [1, 1]} : vector<14x84xf32> to vector<10x14xf32>
    %c27 = arith.constant 27 : index
    %c0_219 = arith.constant 0 : index
    %c0_220 = arith.constant 0 : index
    %246 = vector.load %arg8[%c27, %c0_219, %c0_220] : memref<30x14x160xf32, #tpu.memory_space<vmem>>, vector<1x14x160xf32>
    %247 = vector.shape_cast %246 : vector<1x14x160xf32> to vector<14x160xf32>
    %cst_221 = arith.constant dense<0.000000e+00> : vector<10x160xf32>
    %248 = tpu.matmul %245, %247, %cst_221 {dimension_numbers = #tpu.dot_dimension_numbers<[1], [0], [0], [1], [0, 0, 1, 1], [], []>} : vector<10x14xf32>, vector<14x160xf32>, vector<10x160xf32> -> vector<10x160xf32>
    %249 = arith.addf %244, %248 : vector<10x160xf32>
    %250 = vector.extract_strided_slice %108 {offsets = [3, 70], sizes = [10, 14], strides = [1, 1]} : vector<14x84xf32> to vector<10x14xf32>
    %c28 = arith.constant 28 : index
    %c0_222 = arith.constant 0 : index
    %c0_223 = arith.constant 0 : index
    %251 = vector.load %arg8[%c28, %c0_222, %c0_223] : memref<30x14x160xf32, #tpu.memory_space<vmem>>, vector<1x14x160xf32>
    %252 = vector.shape_cast %251 : vector<1x14x160xf32> to vector<14x160xf32>
    %cst_224 = arith.constant dense<0.000000e+00> : vector<10x160xf32>
    %253 = tpu.matmul %250, %252, %cst_224 {dimension_numbers = #tpu.dot_dimension_numbers<[1], [0], [0], [1], [0, 0, 1, 1], [], []>} : vector<10x14xf32>, vector<14x160xf32>, vector<10x160xf32> -> vector<10x160xf32>
    %254 = arith.addf %249, %253 : vector<10x160xf32>
    %255 = vector.extract_strided_slice %108 {offsets = [4, 70], sizes = [10, 14], strides = [1, 1]} : vector<14x84xf32> to vector<10x14xf32>
    %c29 = arith.constant 29 : index
    %c0_225 = arith.constant 0 : index
    %c0_226 = arith.constant 0 : index
    %256 = vector.load %arg8[%c29, %c0_225, %c0_226] : memref<30x14x160xf32, #tpu.memory_space<vmem>>, vector<1x14x160xf32>
    %257 = vector.shape_cast %256 : vector<1x14x160xf32> to vector<14x160xf32>
    %cst_227 = arith.constant dense<0.000000e+00> : vector<10x160xf32>
    %258 = tpu.matmul %255, %257, %cst_227 {dimension_numbers = #tpu.dot_dimension_numbers<[1], [0], [0], [1], [0, 0, 1, 1], [], []>} : vector<10x14xf32>, vector<14x160xf32>, vector<10x160xf32> -> vector<10x160xf32>
    %259 = arith.addf %254, %258 : vector<10x160xf32>
    %c0_228 = arith.constant 0 : index
    %c0_229 = arith.constant 0 : index
    %260 = vector.load %arg9[%c0_228, %c0_229] : memref<1x160xf32, #tpu.memory_space<vmem>>, vector<1x160xf32>
    %261 = vector.broadcast %260 : vector<1x160xf32> to vector<10x160xf32>
    %262 = arith.addf %259, %261 : vector<10x160xf32>
    %cst_230 = arith.constant 0.000000e+00 : f32
    %263 = vector.broadcast %cst_230 : f32 to vector<10x160xf32>
    %264 = arith.maximumf %262, %263 : vector<10x160xf32>
    %c0_231 = arith.constant 0 : index
    %c0_232 = arith.constant 0 : index
    %265 = vector.load %arg12[%c0_231, %c0_232] : memref<160x80xf32, #tpu.memory_space<vmem>>, vector<160x80xf32>
    %c0_233 = arith.constant 0 : index
    %c0_234 = arith.constant 0 : index
    %266 = vector.load %arg13[%c0_233, %c0_234] : memref<160x80xf32, #tpu.memory_space<vmem>>, vector<160x80xf32>
    %c0_235 = arith.constant 0 : index
    %c0_236 = arith.constant 0 : index
    %267 = vector.load %arg10[%c0_235, %c0_236] : memref<5x10xf32, #tpu.memory_space<vmem>>, vector<5x10xf32>
    %cst_237 = arith.constant dense<0.000000e+00> : vector<5x160xf32>
    %268 = tpu.matmul %267, %264, %cst_237 {dimension_numbers = #tpu.dot_dimension_numbers<[1], [0], [0], [1], [0, 0, 1, 1], [], []>} : vector<5x10xf32>, vector<10x160xf32>, vector<5x160xf32> -> vector<5x160xf32>
    %c0_238 = arith.constant 0 : index
    %c0_239 = arith.constant 0 : index
    %269 = vector.load %arg11[%c0_238, %c0_239] : memref<5x10xf32, #tpu.memory_space<vmem>>, vector<5x10xf32>
    %cst_240 = arith.constant dense<0.000000e+00> : vector<5x160xf32>
    %270 = tpu.matmul %269, %264, %cst_240 {dimension_numbers = #tpu.dot_dimension_numbers<[1], [0], [0], [1], [0, 0, 1, 1], [], []>} : vector<5x10xf32>, vector<10x160xf32>, vector<5x160xf32> -> vector<5x160xf32>
    %cst_241 = arith.constant dense<0.000000e+00> : vector<5x80xf32>
    %271 = tpu.matmul %268, %265, %cst_241 {dimension_numbers = #tpu.dot_dimension_numbers<[1], [0], [0], [1], [0, 0, 1, 1], [], []>} : vector<5x160xf32>, vector<160x80xf32>, vector<5x80xf32> -> vector<5x80xf32>
    %cst_242 = arith.constant dense<0.000000e+00> : vector<5x80xf32>
    %272 = tpu.matmul %268, %266, %cst_242 {dimension_numbers = #tpu.dot_dimension_numbers<[1], [0], [0], [1], [0, 0, 1, 1], [], []>} : vector<5x160xf32>, vector<160x80xf32>, vector<5x80xf32> -> vector<5x80xf32>
    %273 = arith.maximumf %271, %272 : vector<5x80xf32>
    %cst_243 = arith.constant dense<0.000000e+00> : vector<5x80xf32>
    %274 = tpu.matmul %270, %265, %cst_243 {dimension_numbers = #tpu.dot_dimension_numbers<[1], [0], [0], [1], [0, 0, 1, 1], [], []>} : vector<5x160xf32>, vector<160x80xf32>, vector<5x80xf32> -> vector<5x80xf32>
    %cst_244 = arith.constant dense<0.000000e+00> : vector<5x80xf32>
    %275 = tpu.matmul %270, %266, %cst_244 {dimension_numbers = #tpu.dot_dimension_numbers<[1], [0], [0], [1], [0, 0, 1, 1], [], []>} : vector<5x160xf32>, vector<160x80xf32>, vector<5x80xf32> -> vector<5x80xf32>
    %276 = arith.maximumf %274, %275 : vector<5x80xf32>
    %277 = arith.maximumf %273, %276 : vector<5x80xf32>
    %cst_245 = arith.constant 0.000000e+00 : f32
    %278 = vector.broadcast %cst_245 : f32 to vector<1x120xf32>
    %279 = vector.extract_strided_slice %277 {offsets = [0, 0], sizes = [1, 80], strides = [1, 1]} : vector<5x80xf32> to vector<1x80xf32>
    %c0_246 = arith.constant 0 : index
    %c0_247 = arith.constant 0 : index
    %c0_248 = arith.constant 0 : index
    %280 = vector.load %arg14[%c0_246, %c0_247, %c0_248] : memref<5x80x120xf32, #tpu.memory_space<vmem>>, vector<1x80x120xf32>
    %281 = vector.shape_cast %280 : vector<1x80x120xf32> to vector<80x120xf32>
    %cst_249 = arith.constant dense<0.000000e+00> : vector<1x120xf32>
    %282 = tpu.matmul %279, %281, %cst_249 {dimension_numbers = #tpu.dot_dimension_numbers<[1], [0], [0], [1], [0, 0, 1, 1], [], []>} : vector<1x80xf32>, vector<80x120xf32>, vector<1x120xf32> -> vector<1x120xf32>
    %283 = arith.addf %278, %282 : vector<1x120xf32>
    %284 = vector.extract_strided_slice %277 {offsets = [1, 0], sizes = [1, 80], strides = [1, 1]} : vector<5x80xf32> to vector<1x80xf32>
    %c1_250 = arith.constant 1 : index
    %c0_251 = arith.constant 0 : index
    %c0_252 = arith.constant 0 : index
    %285 = vector.load %arg14[%c1_250, %c0_251, %c0_252] : memref<5x80x120xf32, #tpu.memory_space<vmem>>, vector<1x80x120xf32>
    %286 = vector.shape_cast %285 : vector<1x80x120xf32> to vector<80x120xf32>
    %cst_253 = arith.constant dense<0.000000e+00> : vector<1x120xf32>
    %287 = tpu.matmul %284, %286, %cst_253 {dimension_numbers = #tpu.dot_dimension_numbers<[1], [0], [0], [1], [0, 0, 1, 1], [], []>} : vector<1x80xf32>, vector<80x120xf32>, vector<1x120xf32> -> vector<1x120xf32>
    %288 = arith.addf %283, %287 : vector<1x120xf32>
    %289 = vector.extract_strided_slice %277 {offsets = [2, 0], sizes = [1, 80], strides = [1, 1]} : vector<5x80xf32> to vector<1x80xf32>
    %c2_254 = arith.constant 2 : index
    %c0_255 = arith.constant 0 : index
    %c0_256 = arith.constant 0 : index
    %290 = vector.load %arg14[%c2_254, %c0_255, %c0_256] : memref<5x80x120xf32, #tpu.memory_space<vmem>>, vector<1x80x120xf32>
    %291 = vector.shape_cast %290 : vector<1x80x120xf32> to vector<80x120xf32>
    %cst_257 = arith.constant dense<0.000000e+00> : vector<1x120xf32>
    %292 = tpu.matmul %289, %291, %cst_257 {dimension_numbers = #tpu.dot_dimension_numbers<[1], [0], [0], [1], [0, 0, 1, 1], [], []>} : vector<1x80xf32>, vector<80x120xf32>, vector<1x120xf32> -> vector<1x120xf32>
    %293 = arith.addf %288, %292 : vector<1x120xf32>
    %294 = vector.extract_strided_slice %277 {offsets = [3, 0], sizes = [1, 80], strides = [1, 1]} : vector<5x80xf32> to vector<1x80xf32>
    %c3_258 = arith.constant 3 : index
    %c0_259 = arith.constant 0 : index
    %c0_260 = arith.constant 0 : index
    %295 = vector.load %arg14[%c3_258, %c0_259, %c0_260] : memref<5x80x120xf32, #tpu.memory_space<vmem>>, vector<1x80x120xf32>
    %296 = vector.shape_cast %295 : vector<1x80x120xf32> to vector<80x120xf32>
    %cst_261 = arith.constant dense<0.000000e+00> : vector<1x120xf32>
    %297 = tpu.matmul %294, %296, %cst_261 {dimension_numbers = #tpu.dot_dimension_numbers<[1], [0], [0], [1], [0, 0, 1, 1], [], []>} : vector<1x80xf32>, vector<80x120xf32>, vector<1x120xf32> -> vector<1x120xf32>
    %298 = arith.addf %293, %297 : vector<1x120xf32>
    %299 = vector.extract_strided_slice %277 {offsets = [4, 0], sizes = [1, 80], strides = [1, 1]} : vector<5x80xf32> to vector<1x80xf32>
    %c4_262 = arith.constant 4 : index
    %c0_263 = arith.constant 0 : index
    %c0_264 = arith.constant 0 : index
    %300 = vector.load %arg14[%c4_262, %c0_263, %c0_264] : memref<5x80x120xf32, #tpu.memory_space<vmem>>, vector<1x80x120xf32>
    %301 = vector.shape_cast %300 : vector<1x80x120xf32> to vector<80x120xf32>
    %cst_265 = arith.constant dense<0.000000e+00> : vector<1x120xf32>
    %302 = tpu.matmul %299, %301, %cst_265 {dimension_numbers = #tpu.dot_dimension_numbers<[1], [0], [0], [1], [0, 0, 1, 1], [], []>} : vector<1x80xf32>, vector<80x120xf32>, vector<1x120xf32> -> vector<1x120xf32>
    %303 = arith.addf %298, %302 : vector<1x120xf32>
    %c0_266 = arith.constant 0 : index
    %c0_267 = arith.constant 0 : index
    %304 = vector.load %arg15[%c0_266, %c0_267] : memref<1x120xf32, #tpu.memory_space<vmem>>, vector<1x120xf32>
    %305 = arith.addf %303, %304 : vector<1x120xf32>
    %cst_268 = arith.constant 0.000000e+00 : f32
    %306 = vector.broadcast %cst_268 : f32 to vector<1x120xf32>
    %307 = arith.maximumf %305, %306 : vector<1x120xf32>
    %c0_269 = arith.constant 0 : index
    %c0_270 = arith.constant 0 : index
    %308 = vector.load %arg16[%c0_269, %c0_270] : memref<120x84xf32, #tpu.memory_space<vmem>>, vector<120x84xf32>
    %cst_271 = arith.constant dense<0.000000e+00> : vector<1x84xf32>
    %309 = tpu.matmul %307, %308, %cst_271 {dimension_numbers = #tpu.dot_dimension_numbers<[1], [0], [0], [1], [0, 0, 1, 1], [], []>} : vector<1x120xf32>, vector<120x84xf32>, vector<1x84xf32> -> vector<1x84xf32>
    %c0_272 = arith.constant 0 : index
    %c0_273 = arith.constant 0 : index
    %310 = vector.load %arg17[%c0_272, %c0_273] : memref<1x84xf32, #tpu.memory_space<vmem>>, vector<1x84xf32>
    %311 = arith.addf %309, %310 : vector<1x84xf32>
    %cst_274 = arith.constant 0.000000e+00 : f32
    %312 = vector.broadcast %cst_274 : f32 to vector<1x84xf32>
    %313 = arith.maximumf %311, %312 : vector<1x84xf32>
    %c0_275 = arith.constant 0 : index
    %c0_276 = arith.constant 0 : index
    %314 = vector.load %arg18[%c0_275, %c0_276] : memref<84x128xf32, #tpu.memory_space<vmem>>, vector<84x128xf32>
    %cst_277 = arith.constant dense<0.000000e+00> : vector<1x128xf32>
    %315 = tpu.matmul %313, %314, %cst_277 {dimension_numbers = #tpu.dot_dimension_numbers<[1], [0], [0], [1], [0, 0, 1, 1], [], []>} : vector<1x84xf32>, vector<84x128xf32>, vector<1x128xf32> -> vector<1x128xf32>
    %c0_278 = arith.constant 0 : index
    %c0_279 = arith.constant 0 : index
    %316 = vector.load %arg19[%c0_278, %c0_279] : memref<1x128xf32, #tpu.memory_space<vmem>>, vector<1x128xf32>
    %317 = arith.addf %315, %316 : vector<1x128xf32>
    %c0_280 = arith.constant 0 : index
    %c0_281 = arith.constant 0 : index
    %c0_282 = arith.constant 0 : index
    %318 = vector.load %arg20[%c0_280, %c0_281, %c0_282] : memref<1x1x128xf32, #tpu.memory_space<vmem>>, vector<1x1x128xf32>
    %319 = vector.shape_cast %318 : vector<1x1x128xf32> to vector<1x128xf32>
    %320 = vector.shape_cast %317 : vector<1x128xf32> to vector<1x1x128xf32>
    tpu.vector_store %arg20[%c0_280, %c0_281, %c0_282], %320 {strides = array<i32>} : memref<1x1x128xf32, #tpu.memory_space<vmem>>, vector<1x1x128xf32>,
    return
  }
  func.func @transform_0(%arg0: i32) -> (i32, i32, i32, i32) {
    %c0_i32 = arith.constant 0 : i32
    %c0_i32_0 = arith.constant 0 : i32
    %c0_i32_1 = arith.constant 0 : i32
    %c0_i32_2 = arith.constant 0 : i32
    return %arg0, %c0_i32, %c0_i32_0, %c0_i32_1 : i32, i32, i32, i32
  }
  func.func @transform_1(%arg0: i32) -> (i32, i32, i32) {
    %c0_i32 = arith.constant 0 : i32
    %c0_i32_0 = arith.constant 0 : i32
    %c0_i32_1 = arith.constant 0 : i32
    %c0_i32_2 = arith.constant 0 : i32
    return %c0_i32, %c0_i32_0, %c0_i32_1 : i32, i32, i32
  }
  func.func @transform_2(%arg0: i32) -> (i32, i32) {
    %c0_i32 = arith.constant 0 : i32
    %c0_i32_0 = arith.constant 0 : i32
    %c0_i32_1 = arith.constant 0 : i32
    return %c0_i32, %c0_i32_0 : i32, i32
  }
  func.func @transform_3(%arg0: i32) -> (i32, i32) {
    %c0_i32 = arith.constant 0 : i32
    %c0_i32_0 = arith.constant 0 : i32
    %c0_i32_1 = arith.constant 0 : i32
    return %c0_i32, %c0_i32_0 : i32, i32
  }
  func.func @transform_4(%arg0: i32) -> (i32, i32) {
    %c0_i32 = arith.constant 0 : i32
    %c0_i32_0 = arith.constant 0 : i32
    %c0_i32_1 = arith.constant 0 : i32
    return %c0_i32, %c0_i32_0 : i32, i32
  }
  func.func @transform_5(%arg0: i32) -> (i32, i32) {
    %c0_i32 = arith.constant 0 : i32
    %c0_i32_0 = arith.constant 0 : i32
    %c0_i32_1 = arith.constant 0 : i32
    return %c0_i32, %c0_i32_0 : i32, i32
  }
  func.func @transform_6(%arg0: i32) -> (i32, i32) {
    %c0_i32 = arith.constant 0 : i32
    %c0_i32_0 = arith.constant 0 : i32
    %c0_i32_1 = arith.constant 0 : i32
    return %c0_i32, %c0_i32_0 : i32, i32
  }
  func.func @transform_7(%arg0: i32) -> (i32, i32, i32) {
    %c0_i32 = arith.constant 0 : i32
    %c0_i32_0 = arith.constant 0 : i32
    %c0_i32_1 = arith.constant 0 : i32
    %c0_i32_2 = arith.constant 0 : i32
    return %c0_i32, %c0_i32_0, %c0_i32_1 : i32, i32, i32
  }
  func.func @transform_8(%arg0: i32) -> (i32, i32) {
    %c0_i32 = arith.constant 0 : i32
    %c0_i32_0 = arith.constant 0 : i32
    %c0_i32_1 = arith.constant 0 : i32
    return %c0_i32, %c0_i32_0 : i32, i32
  }
  func.func @transform_9(%arg0: i32) -> (i32, i32) {
    %c0_i32 = arith.constant 0 : i32
    %c0_i32_0 = arith.constant 0 : i32
    %c0_i32_1 = arith.constant 0 : i32
    return %c0_i32, %c0_i32_0 : i32, i32
  }
  func.func @transform_10(%arg0: i32) -> (i32, i32) {
    %c0_i32 = arith.constant 0 : i32
    %c0_i32_0 = arith.constant 0 : i32
    %c0_i32_1 = arith.constant 0 : i32
    return %c0_i32, %c0_i32_0 : i32, i32
  }
  func.func @transform_11(%arg0: i32) -> (i32, i32) {
    %c0_i32 = arith.constant 0 : i32
    %c0_i32_0 = arith.constant 0 : i32
    %c0_i32_1 = arith.constant 0 : i32
    return %c0_i32, %c0_i32_0 : i32, i32
  }
  func.func @transform_12(%arg0: i32) -> (i32, i32) {
    %c0_i32 = arith.constant 0 : i32
    %c0_i32_0 = arith.constant 0 : i32
    %c0_i32_1 = arith.constant 0 : i32
    return %c0_i32, %c0_i32_0 : i32, i32
  }
  func.func @transform_13(%arg0: i32) -> (i32, i32, i32) {
    %c0_i32 = arith.constant 0 : i32
    %c0_i32_0 = arith.constant 0 : i32
    %c0_i32_1 = arith.constant 0 : i32
    %c0_i32_2 = arith.constant 0 : i32
    return %c0_i32, %c0_i32_0, %c0_i32_1 : i32, i32, i32
  }
  func.func @transform_14(%arg0: i32) -> (i32, i32) {
    %c0_i32 = arith.constant 0 : i32
    %c0_i32_0 = arith.constant 0 : i32
    %c0_i32_1 = arith.constant 0 : i32
    return %c0_i32, %c0_i32_0 : i32, i32
  }
  func.func @transform_15(%arg0: i32) -> (i32, i32) {
    %c0_i32 = arith.constant 0 : i32
    %c0_i32_0 = arith.constant 0 : i32
    %c0_i32_1 = arith.constant 0 : i32
    return %c0_i32, %c0_i32_0 : i32, i32
  }
  func.func @transform_16(%arg0: i32) -> (i32, i32) {
    %c0_i32 = arith.constant 0 : i32
    %c0_i32_0 = arith.constant 0 : i32
    %c0_i32_1 = arith.constant 0 : i32
    return %c0_i32, %c0_i32_0 : i32, i32
  }
  func.func @transform_17(%arg0: i32) -> (i32, i32) {
    %c0_i32 = arith.constant 0 : i32
    %c0_i32_0 = arith.constant 0 : i32
    %c0_i32_1 = arith.constant 0 : i32
    return %c0_i32, %c0_i32_0 : i32, i32
  }
  func.func @transform_18(%arg0: i32) -> (i32, i32) {
    %c0_i32 = arith.constant 0 : i32
    %c0_i32_0 = arith.constant 0 : i32
    %c0_i32_1 = arith.constant 0 : i32
    return %c0_i32, %c0_i32_0 : i32, i32
  }
  func.func @transform_19(%arg0: i32) -> (i32, i32, i32) {
    %c0_i32 = arith.constant 0 : i32
    %c0_i32_0 = arith.constant 0 : i32
    %c0_i32_1 = arith.constant 0 : i32
    return %arg0, %c0_i32, %c0_i32_0 : i32, i32, i32
  }
}

</mosaic_0001>

<bundles_post_ra>
// kernel: net_forward.1
= control target key start
LH: loop header
LB: loop body
LE: loop exit
PB: predicated region body
PF: predicated region fallthrough
CT: control target
= control target key end

     0   :  { %s11823_s0 = inlined_call_operand.vmem [shape: f32[2,3,32,32], index: 0, kind: input, shape index: {}]   ;;  %s11824_s1 = inlined_call_operand.vmem [shape: f32[15,32,168], index: 1, kind: input, shape index: {}]   ;;  %s11825_s2 = inlined_call_operand.hbm [shape: f32[1,168], index: 2, kind: input, shape index: {}]   ;;  %s11826_s3 = inlined_call_operand.vmem [shape: f32[14,28], index: 3, kind: input, shape index: {}]   ;;  %s11827_s4 = inlined_call_operand.vmem [shape: f32[14,28], index: 4, kind: input, shape index: {}]   ;;  %s11828_s5 = inlined_call_operand.vmem [shape: f32[168,84], index: 5, kind: input, shape index: {}]   ;;  %s11829_s6 = inlined_call_operand.vmem [shape: f32[168,84], index: 6, kind: input, shape index: {}]   ;;  %s11830_s7 = inlined_call_operand.vmem [shape: f32[30,14,160], index: 7, kind: input, shape index: {}]   ;;  %s11831_s8 = inlined_call_operand.vmem [shape: f32[1,160], index: 8, kind: input, shape index: {}]   ;;  %s11832_s9 = inlined_call_operand.hbm [shape: f32[5,10], index: 9, kind: input, shape index: {}]   ;;  %s11833_s10 = inlined_call_operand.vmem [shape: f32[5,10], index: 10, kind: input, shape index: {}]   ;;  %s11834_s11 = inlined_call_operand.vmem [shape: f32[160,80], index: 11, kind: input, shape index: {}]   ;;  %s11835_s12 = inlined_call_operand.hbm [shape: f32[160,80], index: 12, kind: input, shape index: {}]   ;;  %s11836_s13 = inlined_call_operand.vmem [shape: f32[5,80,120], index: 13, kind: input, shape index: {}]   ;;  %s11837_s14 = inlined_call_operand.hbm [shape: f32[1,120], index: 14, kind: input, shape index: {}]   ;;  %s11838_s15 = inlined_call_operand.vmem [shape: f32[120,84], index: 15, kind: input, shape index: {}]   ;;  %s11839_s16 = inlined_call_operand.hbm [shape: f32[1,84], index: 16, kind: input, shape index: {}]   ;;  %s11840_s17 = inlined_call_operand.hbm [shape: f32[84,128], index: 17, kind: input, shape index: {}]   ;;  %s11841_s18 = inlined_call_operand.hbm [shape: f32[1,128], index: 18, kind: input, shape index: {}]   ;;  %s11842_s19 = inlined_call_operand.hbm [shape: f32[2,1,128], index: 19, kind: output, shape index: {}]  }
   0x1   :  { %11861 = sst [smem:[#allocation28_spill]] %s11823_s0 }
   0x2   :  { %11862 = sst [smem:[#allocation29_spill]] %s11824_s1 }
   0x3   :  { %11863 = sst [smem:[#allocation30_spill]] %s11825_s2 }
   0x4   :  { %11864 = sst [smem:[#allocation31_spill]] %s11826_s3 }
   0x5   :  { %11865 = sst [smem:[#allocation32_spill]] %s11832_s9 }
   0x6   :  { %11866 = sst [smem:[#allocation33_spill]] %s11833_s10 }
   0x7   :  { %11867 = sst [smem:[#allocation34_spill]] %s11836_s13 }
   0x8   :  { %11868 = sst [smem:[#allocation35_spill]] %s11837_s14 }
   0x9   :  { %11869 = sst [smem:[#allocation36_spill]] %s11838_s15 }
   0xa   :  { %11870 = sst [smem:[#allocation37_spill]] %s11842_s19 }
   0xb   :  { %24 = vsyncpa [#allocation3], 0 }
   0xc   :  { %25 = vsyncpa [#allocation6], 0 }
   0xd   :  { %26 = vsyncpa [#allocation9], 0 }
   0xe   :  { %27 = vsyncpa [#allocation12], 0 }
   0xf   :  { %28 = vsyncpa [#allocation4], 0 }
  0x10   :  { %30 = vsyncpa [#allocation4 + $0x1], 0  ;;  %s9543_s0 = smov 0   ;;  %s9545_s30 = smov 0  }
  0x11   :  { %s9547_s20 = smov 0   ;;  %s9549_s21 = smov 0  }
  0x12 LB: > { %11871 = sst [smem:[#allocation20_spill]] %s9410_s0  ;;  %s9564_s1 = sadd.s32 4294967295, %s9422_s21   ;;  %s9422_s21 = sphi %s9549_s21, %s11913_s21   ;;  %s9418_s20 = sphi %s9547_s20, %s11916_s20   ;;  %s9414_s30 = sphi %s9545_s30, %s11915_s30   ;;  %s9410_s0 = sphi %s9543_s0, %s11914_s0  }
  0x13   : > { %11872 = sst [smem:[#allocation21_spill]] %s9414_s30  ;;  %s7315_s22 = sadd.s32 4294967294, %s9422_s21  }
  0x14   : > { %11873 = sst [smem:[#allocation22_spill]] %s9418_s20  ;;  %s9568_s2 = sadd.s32 1, %s9422_s21  }
  0x15   : > { %11874 = sst [smem:[#allocation23_spill]] %s9422_s21  ;;  %s447_s23 = sadd.s32 1, %s9418_s20 }
  0x16   : > { %11875 = sst [smem:[#allocation24_spill]] %s9568_s2  ;;  %s444_s24 = ssub.s32 %s9422_s21, %s9568_s2 }
  0x17   : > { %p457_p0 = scmp.ne.s32.totalorder %s9418_s20, %s9414_s30  ;;  %p445_p1 = scmp.eq.s32.totalorder %s444_s24, 0 }
  0x18   : > { %p458_p2 = scmp.eq.s32.totalorder %s9564_s1, 1  ;;  %p463_p3 = scmp.ne.s32.totalorder %s9414_s30, %s9410_s0 }
  0x19   : > { %p464_p4 = scmp.eq.s32.totalorder %s7315_s22, 1  ;;  %p7316_p7 = scmp.ge.s32.totalorder %s9422_s21, 1 }
  0x1a   : > { %s9579_s25 = scalar_select %p445_p1, %s9418_s20, %s447_s23  }
  0x1b   : > { %p9581_p5 = por %p458_p2, %p457_p0  ;;  %p9585_p6 = por %p464_p4, %p463_p3 }
  0x1c   : > { %11876 = sst [smem:[#allocation25_spill]] %s9579_s25  ;;  %p471_p8 = scmp.lt.s32.totalorder %s9422_s21, 3 }
  0x1d   : > { %s11877_s3 = scalar_select %p9581_p5, 1, 0 }
  0x1e   : > { %s11879_s26 = scalar_select %p9585_p6, 1, 0 }
  0x1f   : > { %11878 = sst [smem:[#allocation26_spill]] %s11877_s3  ;;  %p11853_p9 = scmp.eq.s32.totalorder %s9564_s1, 0 }
  0x20   : > { %11880 = sst [smem:[#allocation27_spill]] %s11879_s26  ;;  %p9592_p10 = pnand %p7316_p7, %p471_p8 }
  0x21   : > { %s9424_s28 = smov [#allocation5]   ;;  %s9425_s22 = smov [#allocation8]  }
  0x22   : > { %s11881_s27 = scalar_select %p9592_p10, 1, 0 }
  0x23   : > { %s516_s29 = sshll.u32 %s9424_s28, 4  ;;  %p9057_p11 = pneg %p9592_p10  ;;  %s517_s29 = int_to_ptr.vmem [resolvable:$true] %s516_s29 }
  0x24   : > { %s549_s23 = sshll.u32 %s9425_s22, 4  ;;  %s9426_s25 = smov [#allocation11]   ;;  %s9604_s23 = int_to_ptr.vmem [resolvable:$true] %s549_s23 }
  0x25   : > { %p9600_p12 = pnand %p11853_p9, %p9057_p11  ;;  %s9606_s20 = sshll.u32 %s9426_s25, 4  ;;  %s574_s20 = int_to_ptr.vmem [resolvable:$true] %s9606_s20 }
  0x26   : > { %s11883_s9 = sld [smem:[#allocation32_spill]] }
  0x27   : > { %p9616_p0 = pneg %p9600_p12 }
  0x2c   : > { %s9148_s28 = scalar_lea.hbm %s11883_s9, 128 }
  0x2d   : > { %p9149_p13 = scmp.ne.s32.totalorder %s11883_s9, %s9148_s28  ;;  %p9155_p3 = scmp.lt.u32.totalorder %s9148_s28, %s11883_s9 }
  0x2f   : > { %p9151_p1 = pnand %p9616_p0, %p9149_p13 }
  0x31   : > { %p9152_p2 = pneg %p9151_p1 }
  0x33   : > { %p9157_p4 = pnand %p9155_p3, %p9152_p2 }
  0x35   : > { %9160 = shalt.err (!%p9157_p4)
}
  0x36   : > { %s9161_s2 = scalar_lea.vmem %s517_s29, 128  ;;  %p9169_p9 = scmp.lt.s32.totalorder %s517_s29, %s517_s29 }
  0x37   : > { %p9162_p7 = scmp.ne.s32.totalorder %s517_s29, %s9161_s2  ;;  %p9170_p6 = scmp.lt.s32.totalorder %s9161_s2, %s9161_s2 }
  0x39   : > { %p9164_p8 = pnand %p9162_p7, %p9616_p0  ;;  %p9171_p5 = por %p9170_p6, %p9169_p9 }
  0x3b   : > { %p9165_p11 = pneg %p9164_p8 }
  0x3d   : > { %p9172_p10 = pnand %p9171_p5, %p9165_p11 }
  0x3f   : > { %9175 = shalt.err (!%p9172_p10)
}
  0x40   : > { %9063 = dma.hbm_to_vmem [thread:$0]  (!%p9600_p12), %s11883_s9, 128, %s517_s29, [#allocation6]  }
  0x41   : > { %s11885_s14 = sld [smem:[#allocation35_spill]] }
  0x47   : > { %s9176_s28 = scalar_lea.hbm %s11885_s14, 16 }
  0x48   : > { %p9177_p13 = scmp.ne.s32.totalorder %s11885_s14, %s9176_s28  ;;  %p9183_p5 = scmp.lt.u32.totalorder %s9176_s28, %s11885_s14 }
  0x4a   : > { %p9179_p1 = pnand %p9177_p13, %p9616_p0 }
  0x4c   : > { %p9180_p6 = pneg %p9179_p1 }
  0x4e   : > { %p9185_p9 = pnand %p9183_p5, %p9180_p6 }
  0x50   : > { %9188 = shalt.err (!%p9185_p9)
}
  0x51   : > { %s9189_s29 = scalar_lea.vmem %s9604_s23, 16  ;;  %s9196_s3 = scalar_lea.vmem %s9604_s23, 32 }
  0x52   : > { %p9190_p10 = scmp.ne.s32.totalorder %s9604_s23, %s9189_s29  ;;  %p9197_p4 = scmp.lt.s32.totalorder %s9604_s23, %s9604_s23 }
  0x53   : > { %p9198_p7 = scmp.lt.s32.totalorder %s9196_s3, %s9189_s29 }
  0x54   : > { %p9192_p2 = pnand %p9190_p10, %p9616_p0 }
  0x55   : > { %p9199_p8 = por %p9198_p7, %p9197_p4 }
  0x56   : > { %p9193_p3 = pneg %p9192_p2 }
  0x58   : > { %p9200_p11 = pnand %p9199_p8, %p9193_p3 }
  0x5a   : > { %9203 = shalt.err (!%p9200_p11)
}
  0x5b   : > { %9069 = dma.hbm_to_vmem [thread:$0]  (!%p9600_p12), %s11885_s14, 16, %s9604_s23, [#allocation9]  }
  0x5c   : > { %s9204_s26 = scalar_lea.hbm %s11840_s17, 1408 }
  0x5d   : > { %p9205_p13 = scmp.ne.s32.totalorder %s11840_s17, %s9204_s26  ;;  %p9211_p5 = scmp.lt.u32.totalorder %s9204_s26, %s11840_s17 }
  0x5f   : > { %p9207_p1 = pnand %p9205_p13, %p9616_p0 }
  0x61   : > { %p9208_p6 = pneg %p9207_p1 }
  0x63   : > { %p9213_p9 = pnand %p9211_p5, %p9208_p6 }
  0x65   : > { %9216 = shalt.err (!%p9213_p9)
}
  0x66   : > { %s9217_s3 = scalar_lea.vmem %s574_s20, 1408  ;;  %p9225_p4 = scmp.lt.s32.totalorder %s574_s20, %s574_s20 }
  0x67   : > { %p9218_p10 = scmp.ne.s32.totalorder %s574_s20, %s9217_s3  ;;  %p9226_p7 = scmp.lt.s32.totalorder %s9217_s3, %s9217_s3 }
  0x69   : > { %p9220_p2 = pnand %p9218_p10, %p9616_p0  ;;  %p9227_p8 = por %p9226_p7, %p9225_p4 }
  0x6b   : > { %p9221_p3 = pneg %p9220_p2 }
  0x6d   : > { %p9228_p11 = pnand %p9227_p8, %p9221_p3 }
  0x6f   : > { %9231 = shalt.err (!%p9228_p11)
}
  0x70   : > { %s9427_s23 = smov 128   ;;  %s9428_s30 = smov 8  }
  0x71   : > { %9075 = dma.hbm_to_vmem [thread:$0]  (!%p9600_p12), %s11840_s17, 1408, %s574_s20, [#allocation12], %s9427_s23, %s9427_s23, %s9428_s30  }
  0x72   : > { %s9429_s19 = smov [#allocation2]   ;;  %s9430_s28 = smov [#allocation7]  }
  0x73   : > { %s487_s26 = sshll.u32 %s9429_s19, 4  ;;  %s532_s25 = sshll.u32 %s9430_s28, 4  ;;  %s488_s26 = int_to_ptr.vmem [resolvable:$true] %s487_s26  ;;  %s533_s25 = int_to_ptr.vmem [resolvable:$true] %s532_s25 }
  0x74   : > { %s11886_s3 = sld [smem:[#allocation30_spill]] }
  0x7a   : > { %s9232_s9 = scalar_lea.hbm %s11886_s3, 32 }
  0x7b   : > { %p9233_p13 = scmp.ne.s32.totalorder %s11886_s3, %s9232_s9  ;;  %p9239_p5 = scmp.lt.u32.totalorder %s9232_s9, %s11886_s3 }
  0x7d   : > { %p9235_p1 = pnand %p9233_p13, %p9616_p0 }
  0x7f   : > { %p9236_p6 = pneg %p9235_p1 }
  0x81   : > { %p9241_p9 = pnand %p9239_p5, %p9236_p6 }
  0x83   : > { %9244 = shalt.err (!%p9241_p9)
}
  0x84   : > { %s9245_s20 = scalar_lea.vmem %s488_s26, 32  ;;  %p9253_p4 = scmp.lt.s32.totalorder %s488_s26, %s488_s26 }
  0x85   : > { %p9246_p10 = scmp.ne.s32.totalorder %s488_s26, %s9245_s20  ;;  %p9254_p7 = scmp.lt.s32.totalorder %s9245_s20, %s9245_s20 }
  0x87   : > { %p9248_p2 = pnand %p9246_p10, %p9616_p0  ;;  %p9255_p8 = por %p9254_p7, %p9253_p4 }
  0x89   : > { %p9249_p3 = pneg %p9248_p2 }
  0x8b   : > { %p9256_p11 = pnand %p9255_p8, %p9249_p3 }
  0x8d   : > { %9259 = shalt.err (!%p9256_p11)
}
  0x8e   : > { %9060 = dma.hbm_to_vmem [thread:$0]  (!%p9600_p12), %s11886_s3, 32, %s488_s26, [#allocation3]  }
  0x8f   : > { %s9260_s13 = scalar_lea.hbm %s11835_s12, 2560 }
  0x90   : > { %p9261_p13 = scmp.ne.s32.totalorder %s11835_s12, %s9260_s13  ;;  %p9267_p5 = scmp.lt.u32.totalorder %s9260_s13, %s11835_s12 }
  0x92   : > { %p9263_p1 = pnand %p9261_p13, %p9616_p0 }
  0x94   : > { %p9264_p6 = pneg %p9263_p1 }
  0x96   : > { %p9269_p9 = pnand %p9267_p5, %p9264_p6 }
  0x98   : > { %9272 = shalt.err (!%p9269_p9)
}
  0x99   : > { %s9273_s2 = scalar_lea.vmem %s533_s25, 2560  ;;  %p9281_p4 = scmp.lt.s32.totalorder %s533_s25, %s533_s25 }
  0x9a   : > { %p9274_p10 = scmp.ne.s32.totalorder %s533_s25, %s9273_s2  ;;  %p9282_p7 = scmp.lt.s32.totalorder %s9273_s2, %s9273_s2 }
  0x9c   : > { %p9276_p2 = pnand %p9274_p10, %p9616_p0  ;;  %p9283_p8 = por %p9282_p7, %p9281_p4 }
  0x9e   : > { %p9277_p3 = pneg %p9276_p2 }
  0xa0   : > { %p9284_p11 = pnand %p9283_p8, %p9277_p3 }
  0xa2   : > { %9287 = shalt.err (!%p9284_p11)
}
  0xa3   : > { %9066 = dma.hbm_to_vmem [thread:$0]  (!%p9600_p12), %s11835_s12, 2560, %s533_s25, [#allocation6], %s9427_s23, %s9427_s23, %s9428_s30  }
  0xa4   : > { %s9431_s20 = smov [#allocation10]   ;;  %s9432_s15 = smov [#allocation13]  }
  0xa5   : > { %s563_s14 = sshll.u32 %s9431_s20, 4  ;;  %s587_s9 = sshll.u32 %s9432_s15, 4  ;;  %s564_s14 = int_to_ptr.vmem [resolvable:$true] %s563_s14  ;;  %s588_s9 = int_to_ptr.vmem [resolvable:$true] %s587_s9 }
  0xa6   : > { %s9288_s0 = scalar_lea.hbm %s11839_s16, 16 }
  0xa7   : > { %p9289_p13 = scmp.ne.s32.totalorder %s11839_s16, %s9288_s0  ;;  %p9295_p5 = scmp.lt.u32.totalorder %s9288_s0, %s11839_s16 }
  0xa9   : > { %p9291_p1 = pnand %p9289_p13, %p9616_p0 }
  0xab   : > { %p9292_p6 = pneg %p9291_p1 }
  0xad   : > { %p9297_p9 = pnand %p9295_p5, %p9292_p6 }
  0xaf   : > { %9300 = shalt.err (!%p9297_p9)
}
  0xb0   : > { %s9301_s23 = scalar_lea.vmem %s564_s14, 16  ;;  %s9308_s30 = scalar_lea.vmem %s564_s14, 32 }
  0xb1   : > { %p9302_p10 = scmp.ne.s32.totalorder %s564_s14, %s9301_s23  ;;  %p9309_p4 = scmp.lt.s32.totalorder %s564_s14, %s564_s14 }
  0xb2   : > { %p9310_p7 = scmp.lt.s32.totalorder %s9308_s30, %s9301_s23 }
  0xb3   : > { %p9304_p2 = pnand %p9302_p10, %p9616_p0 }
  0xb4   : > { %p9311_p8 = por %p9310_p7, %p9309_p4 }
  0xb5   : > { %p9305_p3 = pneg %p9304_p2 }
  0xb7   : > { %p9312_p11 = pnand %p9311_p8, %p9305_p3 }
  0xb9   : > { %9315 = shalt.err (!%p9312_p11)
}
  0xba   : > { %9072 = dma.hbm_to_vmem [thread:$0]  (!%p9600_p12), %s11839_s16, 16, %s564_s14, [#allocation9]  }
  0xbb   : > { %s9316_s15 = scalar_lea.hbm %s11841_s18, 16 }
  0xbc   : > { %p9317_p13 = scmp.ne.s32.totalorder %s11841_s18, %s9316_s15  ;;  %p9323_p5 = scmp.lt.u32.totalorder %s9316_s15, %s11841_s18 }
  0xbe   : > { %p9319_p1 = pnand %p9317_p13, %p9616_p0 }
  0xc0   : > { %p9320_p6 = pneg %p9319_p1 }
  0xc2   : > { %p9325_p9 = pnand %p9323_p5, %p9320_p6 }
  0xc4   : > { %9328 = shalt.err (!%p9325_p9)
}
  0xc5   : > { %s9329_s19 = scalar_lea.vmem %s588_s9, 16  ;;  %s9336_s14 = scalar_lea.vmem %s588_s9, 32 }
  0xc6   : > { %p9330_p10 = scmp.ne.s32.totalorder %s588_s9, %s9329_s19  ;;  %p9337_p4 = scmp.lt.s32.totalorder %s588_s9, %s588_s9 }
  0xc7   : > { %p9338_p7 = scmp.lt.s32.totalorder %s9336_s14, %s9329_s19 }
  0xc8   : > { %p9332_p2 = pnand %p9330_p10, %p9616_p0 }
  0xc9   : > { %p9339_p8 = por %p9338_p7, %p9337_p4 }
  0xca   : > { %p9333_p3 = pneg %p9332_p2 }
  0xcc   : > { %p9340_p11 = pnand %p9339_p8, %p9333_p3 }
  0xce   : > { %9343 = shalt.err (!%p9340_p11)
}
  0xcf   : > { %9078 = dma.hbm_to_vmem [thread:$0]  (!%p9600_p12), %s11841_s18, 16, %s588_s9, [#allocation12]  }
  0xd0   : > { %p11887_p13 = scmp.ne.s32.totalorder %s11881_s27, 0 }
  0xd1   : > { %p11888_p1 = scmp.eq.s32.totalorder (!%p11887_p13), %s9564_s1, 0 }
  0xd2   : > { %608 = sbr.rel (%p11887_p13) target bundleno = 3048 (0xbe8), region = 96 }
  0xd9   : > { %9389 = dma.done.wait (%p11888_p1), [#allocation3], 32   ;;  %p11889_p0 = pmov %p11888_p1 }
  0xdb   : > { %9391 = vsyncadd (%p11889_p0), [#allocation3], 4294967264  ;;  %p11890_p6 = pmov %p11889_p0 }
  0xdc   : > { %p11891_p5 = pmov %p11889_p0 }
  0xdd   : > { %9393 = dma.done.wait (%p11890_p6), [#allocation6], 2688  }
  0xde   : > { %9395 = vsyncadd (%p11891_p5), [#allocation6], 4294964608  ;;  %p11892_p9 = pmov %p11889_p0 }
  0xdf   : > { %p11893_p12 = pmov %p11889_p0 }
  0xe0   : > { %9397 = dma.done.wait (%p11892_p9), [#allocation9], 32  }
  0xe1   : > { %9399 = vsyncadd (%p11893_p12), [#allocation9], 4294967264  ;;  %p11894_p10 = pmov %p11889_p0 }
  0xe2   : > { %p11895_p2 = pmov %p11889_p0 }
  0xe3   : > { %9401 = dma.done.wait (%p11894_p10), [#allocation12], 1424  }
  0xe4   : > { %9403 = vsyncadd (%p11895_p2), [#allocation12], 4294965872  ;;  %p687_p3 = scmp.lt.s32.totalorder %s9564_s1, 1  ;;  %v9433_v0 = vmov 0.0   ;;  %s11896_s9 = sld [smem:[#allocation29_spill]]  ;;  %vm717_vm0 = vcmask 261120  }
  0xe5   : > { %794 = vmatprep.mubr.f32.mxu0 %v9433_v0  ;;  %2658 = vmatprep.mubr.f32.mxu1 %v9433_v0  ;;  %s11897_s26 = sld [smem:[#allocation28_spill]]  ;;  %vm2587_vm1 = vcmask 1043456   ;;  %vm9434_vm2 = vmmov 1   ;;  %s11898_s20 = sld [smem:[#allocation31_spill]]  ;;  %vm2580_vm4 = vcmask 228352   ;;  %vm2756_vm5 = vcmask 326656  }
  0xe6   : > { %s688_s27 = scalar_select %p687_p3, %s9564_s1, 1  ;;  %vm8240_vm3 = vmpackc.low %vm2587_vm1, %vm9434_vm2  ;;  %vm3095_vm6 = vcmask 1045504   ;;  %vm3086_vm8 = vcmask 1046528   ;;  %vm3090_vm9 = vcmask 113664   ;;  %vm3370_vm10 = vcmask 1044480  }
  0xe7   : > { %vm10618_vm7 = vmpackc.low %vm3095_vm6, %vm9434_vm2  ;;  %s9436_s10 = smov 114   ;;  %s9437_s22 = smov 100   ;;  %vm6129_vm11 = vcmask 1041408   ;;  %vm6125_vm13 = vcmask 80896   ;;  %vm9441_vm14 = vmmov 0   ;;  %vm6594_vm15 = vcmask 654336  }
  0xe8   : > { %s9026_s21 = smul.u32 96, %s688_s27  ;;  %s9438_s23 = smov 86   ;;  %vm8556_vm12 = vmpackc.low %vm6129_vm11, %vm9434_vm2  ;;  %vm7100_vm2 = vcmask 687104  }
  0xe9   : > { %s9440_s30 = smov 58   ;;  %s11902_s14 = sld [smem:[#allocation33_spill]] }
  0xea   : > { %v7335_v1 = vld [vmem:[%s11896_s9 + $0x48] sm:$0xff]  ;;  %v7337_v2 = vld [vmem:[%s11896_s9 + $0x58] sm:$0xff]  ;;  %v7334_v3 = vld [vmem:[%s11896_s9 + $0x40] sm:$0xff]  ;;  %s11904_s25 = sld [smem:[#allocation36_spill]]  ;;  %s11905_s27 = sld [smem:[#allocation21_spill]] }
  0xeb   : > { %v8115_v4 = vpack.c.bf16 %v7337_v2, %v7335_v1  ;;  %v7336_v5 = vld [vmem:[%s11896_s9 + $0x50] sm:$0xff]  ;;  %v7339_v6 = vld [vmem:[%s11896_s9 + $0x68] sm:$0xff]  ;;  %v7341_v7 = vld [vmem:[%s11896_s9 + $0x78] sm:$0xff]  ;;  %s9808_s29 = scalar_lea.vmem %s11897_s26, %s9026_s21  ;;  %s11899_s15 = smov %s11898_s20 }
  0xec   : > { %v8117_v8 = vpack.c.bf16 %v7336_v5, %v7334_v3  ;;  %v8119_v9 = vpack.c.bf16 %v7341_v7, %v7339_v6  ;;  %v7338_v10 = vld [vmem:[%s11896_s9 + $0x60] sm:$0xff]  ;;  %v7340_v11 = vld [vmem:[%s11896_s9 + $0x70] sm:$0xff]  ;;  %v697_v12 = vld [vmem:[%s11896_s9 + $0x8] sm:$0xff]  ;;  %s7856_s26 = sshll.u32 %s9564_s1, 4  ;;  %s9442_s1 = smov [#allocation14]  }
  0xed   : > { %8116 = vmatprep.subr.bf16.mxu0 %v8115_v4  ;;  %v8121_v13 = vpack.c.bf16 %v7340_v11, %v7338_v10  ;;  %v699_v14 = vld [vmem:[%s11896_s9 + $0x18] sm:$0xff]  ;;  %v696_v16 = vld [vmem:[%s11896_s9] sm:$0xff]  ;;  %v698_v17 = vld [vmem:[%s11896_s9 + $0x10] sm:$0xff]  ;;  %s9348_s24 = sshll.u32 %s9442_s1, 4  ;;  %s9349_s24 = int_to_ptr.vmem [resolvable:$false] %s9348_s24 }
  0xee   : > { %8118 = vmatpush1.bf16.msra.mxu0 %v8117_v8  ;;  %v8123_v15 = vpack.c.bf16 %v699_v14, %v697_v12  ;;  %v701_v18 = vld [vmem:[%s11896_s9 + $0x28] sm:$0xff]  ;;  %v703_v19 = vld [vmem:[%s11896_s9 + $0x38] sm:$0xff]  ;;  %v8125_v21 = vpack.c.bf16 %v698_v17, %v696_v16  ;;  %v700_v23 = vld [vmem:[%s11896_s9 + $0x20] sm:$0xff] }
  0xef   : > { %8120 = vmatprep.subr.bf16.mxu0 %v8119_v9  ;;  %v704_v20 = vld [vmem:[%s9808_s29 + $0x1] sm:$0xff]  ;;  %v8127_v22 = vpack.c.bf16 %v703_v19, %v701_v18  ;;  %v702_v24 = vld [vmem:[%s11896_s9 + $0x30] sm:$0xff]  ;;  %v7353_v26 = vld [vmem:[%s11896_s9 + $0x98] sm:$0xff] }
  0xf0   : > { %v7351_v25 = vld [vmem:[%s11896_s9 + $0x88] sm:$0xff]  ;;  %v8129_v28 = vpack.c.bf16 %v702_v24, %v700_v23  ;;  %v706_v30 = vld [vmem:[%s9808_s29 + $0x11] sm:$0xff]  ;;  %v707_v31 = vld [vmem:[%s9808_s29 + $0x19] sm:$0xf] }
  0xf1   : > { %v705_v27 = vld [vmem:[%s9808_s29 + $0x9] sm:$0xff]  ;;  %v8131_v29 = vpack.c.bf16 %v7353_v26, %v7351_v25  ;;  %v7350_v32 = vld [vmem:[%s11896_s9 + $0x80] sm:$0xff]  ;;  %v7357_v35 = vld [vmem:[%s11896_s9 + $0xb8] sm:$0xff] }
  0xf2   : > { %8122 = vmatpush1.bf16.msra.mxu0 %v8121_v13  ;;  %v7352_v33 = vld [vmem:[%s11896_s9 + $0x90] sm:$0xff]  ;;  %v7355_v34 = vld [vmem:[%s11896_s9 + $0xa8] sm:$0xff]  ;;  %v692_v36 = vld [vmem:[%s9808_s29] sm:$0xff] }
  0xf3   : > { %8124 = vmatprep.subr.bf16.mxu0 %v8123_v15  ;;  %v8133_v37 = vpack.c.bf16 %v7352_v33, %v7350_v32  ;;  %v8135_v38 = vpack.c.bf16 %v7357_v35, %v7355_v34  ;;  %v7354_v39 = vld [vmem:[%s11896_s9 + $0xa0] sm:$0xff]  ;;  %v7356_v40 = vld [vmem:[%s11896_s9 + $0xb0] sm:$0xff]  ;;  %v7363_v41 = vld [vmem:[%s11896_s9 + $0xc8] sm:$0xff] }
  0xf4   : > { %v7365_v42 = vld [vmem:[%s11896_s9 + $0xd8] sm:$0xff]  ;;  %v693_v43 = vld [vmem:[%s9808_s29 + $0x8] sm:$0xff]  ;;  %v8137_v44 = vpack.c.bf16 %v7356_v40, %v7354_v39  ;;  %v694_v46 = vld [vmem:[%s9808_s29 + $0x10] sm:$0xff] }
  0xf5   : > { %7342 = vmatmul.mubr.msk.f32.vlgmr.msra.gmra.mrb[0].mxu0 %vm717_vm0, %v704_v20  ;;  %v8139_v45 = vpack.c.bf16 %v7365_v42, %v7363_v41  ;;  %v695_v47 = vld [vmem:[%s9808_s29 + $0x18] sm:$0xf]  ;;  %v7362_v48 = vld [vmem:[%s11896_s9 + $0xc0] sm:$0xff]  ;;  %v7364_v49 = vld [vmem:[%s11896_s9 + $0xd0] sm:$0xff] }
  0xf6   : > { %800 = vmatprep.mubr.f32.mxu0 %v9433_v0  ;;  %8126 = vmatpush1.bf16.msra.mxu0 %v8125_v21  ;;  %v7367_v50 = vld [vmem:[%s11896_s9 + $0xe8] sm:$0xff]  ;;  %v7369_v51 = vld [vmem:[%s11896_s9 + $0xf8] sm:$0xff]  ;;  %v8141_v53 = vpack.c.bf16 %v7364_v49, %v7362_v48  ;;  %v7366_v55 = vld [vmem:[%s11896_s9 + $0xe0] sm:$0xff] }
  0xf7   : > { %8128 = vmatprep.subr.bf16.mxu0 %v8127_v22  ;;  %v920_v52 = vld [vmem:[%s9808_s29 + $0x2] sm:$0xff]  ;;  %v8143_v54 = vpack.c.bf16 %v7369_v51, %v7367_v50  ;;  %v7368_v56 = vld [vmem:[%s11896_s9 + $0xf0] sm:$0xff]  ;;  %v7377_v58 = vld [vmem:[%s11896_s9 + $0x118] sm:$0xff] }
  0xf8   : > { %v7375_v57 = vld [vmem:[%s11896_s9 + $0x108] sm:$0xff]  ;;  %v8145_v60 = vpack.c.bf16 %v7368_v56, %v7366_v55  ;;  %v922_v62 = vld [vmem:[%s9808_s29 + $0x12] sm:$0xff]  ;;  %v923_v63 = vld [vmem:[%s9808_s29 + $0x1a] sm:$0xf] }
  0xf9   : > { %7343 = vmatmul.mubr.msk.f32.gmra.mrb[2].mxu0 %vm717_vm0, %v705_v27  ;;  %v921_v59 = vld [vmem:[%s9808_s29 + $0xa] sm:$0xff]  ;;  %v8147_v61 = vpack.c.bf16 %v7377_v58, %v7375_v57  ;;  %v7374_v1 = vld [vmem:[%s11896_s9 + $0x100] sm:$0xff]  ;;  %v7381_v4 = vld [vmem:[%s11896_s9 + $0x138] sm:$0xff] }
  0xfa   : > { %806 = vmatprep.mubr.f32.mxu0 %v9433_v0  ;;  %8130 = vmatpush1.bf16.msra.mxu0 %v8129_v28  ;;  %v7376_v2 = vld [vmem:[%s11896_s9 + $0x110] sm:$0xff]  ;;  %v7379_v3 = vld [vmem:[%s11896_s9 + $0x128] sm:$0xff]  ;;  %v7378_v8 = vld [vmem:[%s11896_s9 + $0x120] sm:$0xff] }
  0xfb   : > { %8132 = vmatprep.subr.bf16.mxu0 %v8131_v29  ;;  %v1042_v5 = vld [vmem:[%s9808_s29 + $0x3] sm:$0xff]  ;;  %v8149_v6 = vpack.c.bf16 %v7376_v2, %v7374_v1  ;;  %v8151_v7 = vpack.c.bf16 %v7381_v4, %v7379_v3  ;;  %v7380_v9 = vld [vmem:[%s11896_s9 + $0x130] sm:$0xff]  ;;  %v7393_v11 = vld [vmem:[%s11896_s9 + $0x158] sm:$0xff] }
  0xfc   : > { %v7391_v10 = vld [vmem:[%s11896_s9 + $0x148] sm:$0xff]  ;;  %v8153_v13 = vpack.c.bf16 %v7380_v9, %v7378_v8  ;;  %v1044_v15 = vld [vmem:[%s9808_s29 + $0x13] sm:$0xff]  ;;  %v1045_v16 = vld [vmem:[%s9808_s29 + $0x1b] sm:$0xf] }
  0xfd   : > { %7344 = vmatmul.mubr.msk.f32.gmra.mrb[4].mxu0 %vm717_vm0, %v706_v30  ;;  %v1043_v12 = vld [vmem:[%s9808_s29 + $0xb] sm:$0xff]  ;;  %v8155_v14 = vpack.c.bf16 %v7393_v11, %v7391_v10  ;;  %v7390_v17 = vld [vmem:[%s11896_s9 + $0x140] sm:$0xff]  ;;  %v7397_v20 = vld [vmem:[%s11896_s9 + $0x178] sm:$0xff] }
  0xfe   : > { %812 = vmatprep.mubr.f32.mxu0 %v9433_v0  ;;  %v7392_v18 = vld [vmem:[%s11896_s9 + $0x150] sm:$0xff]  ;;  %v7395_v19 = vld [vmem:[%s11896_s9 + $0x168] sm:$0xff]  ;;  %v7394_v24 = vld [vmem:[%s11896_s9 + $0x160] sm:$0xff] }
  0xff   : > { %v1164_v21 = vld [vmem:[%s9808_s29 + $0x4] sm:$0xff]  ;;  %v8157_v22 = vpack.c.bf16 %v7392_v18, %v7390_v17  ;;  %v8159_v23 = vpack.c.bf16 %v7397_v20, %v7395_v19  ;;  %v7396_v25 = vld [vmem:[%s11896_s9 + $0x170] sm:$0xff]  ;;  %v7409_v27 = vld [vmem:[%s11896_s9 + $0x198] sm:$0xff] }
 0x100   : > { %v7407_v26 = vld [vmem:[%s11896_s9 + $0x188] sm:$0xff]  ;;  %v8161_v29 = vpack.c.bf16 %v7396_v25, %v7394_v24  ;;  %v1167_v32 = vld [vmem:[%s9808_s29 + $0x1c] sm:$0xf]  ;;  %v7406_v33 = vld [vmem:[%s11896_s9 + $0x180] sm:$0xff] }
 0x101   : > { %7345 = vmatmul.mubr.msk.f32.gmra.mrb[6].mxu0 %vm717_vm0, %v707_v31  ;;  %v1165_v28 = vld [vmem:[%s9808_s29 + $0xc] sm:$0xff]  ;;  %v8163_v30 = vpack.c.bf16 %v7409_v27, %v7407_v26  ;;  %v1166_v31 = vld [vmem:[%s9808_s29 + $0x14] sm:$0xff]  ;;  %v7410_v40 = vld [vmem:[%s11896_s9 + $0x1a0] sm:$0xff] }
 0x102   : > { %895 = vmatprep.mubr.f32.mxu0 %v9433_v0  ;;  %v7408_v34 = vld [vmem:[%s11896_s9 + $0x190] sm:$0xff]  ;;  %v7411_v35 = vld [vmem:[%s11896_s9 + $0x1a8] sm:$0xff]  ;;  %v7389_v48 = vld [vmem:[%s9808_s29 + $0x38] sm:$0xf] }
 0x103   : > { %v7412_v41 = vld [vmem:[%s11896_s9 + $0x1b0] sm:$0xff]  ;;  %v7423_v42 = vld [vmem:[%s11896_s9 + $0x1c8] sm:$0xff]  ;;  %v7422_v49 = vld [vmem:[%s11896_s9 + $0x1c0] sm:$0xff] }
 0x104   : > { %v7424_v50 = vld [vmem:[%s11896_s9 + $0x1d0] sm:$0xff]  ;;  %v7427_v51 = vld [vmem:[%s11896_s9 + $0x1e8] sm:$0xff]  ;;  %v7426_v56 = vld [vmem:[%s11896_s9 + $0x1e0] sm:$0xff] }
 0x105   : > { %7346 = vmatmul.mubr.msk.f32.vlgmr.msra.gmra.mrb[0].mxu0 %vm717_vm0, %v692_v36  ;;  %v7413_v36 = vld [vmem:[%s11896_s9 + $0x1b8] sm:$0xff]  ;;  %v7428_v57 = vld [vmem:[%s11896_s9 + $0x1f0] sm:$0xff]  ;;  %v7439_v58 = vld [vmem:[%s11896_s9 + $0x208] sm:$0xff] }
 0x106   : > { %901 = vmatprep.mubr.f32.mxu0 %v9433_v0  ;;  %8134 = vmatpush1.bf16.msra.mxu0 %v8133_v37  ;;  %v7386_v37 = vld [vmem:[%s9808_s29 + $0x20] sm:$0xff]  ;;  %v8167_v39 = vpack.c.bf16 %v7413_v36, %v7411_v35  ;;  %v7405_v1 = vld [vmem:[%s9808_s29 + $0x39] sm:$0xf]  ;;  %v7440_v3 = vld [vmem:[%s11896_s9 + $0x210] sm:$0xff] }
 0x107   : > { %8136 = vmatprep.subr.bf16.mxu0 %v8135_v38  ;;  %v8165_v38 = vpack.c.bf16 %v7408_v34, %v7406_v33  ;;  %v7438_v2 = vld [vmem:[%s11896_s9 + $0x200] sm:$0xff]  ;;  %v7443_v4 = vld [vmem:[%s11896_s9 + $0x228] sm:$0xff]  ;;  %v7444_v10 = vld [vmem:[%s11896_s9 + $0x230] sm:$0xff] }
 0x108   : > { %v7442_v9 = vld [vmem:[%s11896_s9 + $0x220] sm:$0xff]  ;;  %v7455_v11 = vld [vmem:[%s11896_s9 + $0x248] sm:$0xff]  ;;  %v7421_v17 = vld [vmem:[%s9808_s29 + $0x3a] sm:$0xf] }
 0x109   : > { %7347 = vmatmul.mubr.msk.f32.gmra.mrb[2].mxu0 %vm717_vm0, %v693_v43  ;;  %v7425_v43 = vld [vmem:[%s11896_s9 + $0x1d8] sm:$0xff]  ;;  %v7454_v18 = vld [vmem:[%s11896_s9 + $0x240] sm:$0xff]  ;;  %v7456_v19 = vld [vmem:[%s11896_s9 + $0x250] sm:$0xff] }
 0x10a   : > { %907 = vmatprep.mubr.f32.mxu0 %v9433_v0  ;;  %8138 = vmatpush1.bf16.msra.mxu0 %v8137_v44  ;;  %v7387_v44 = vld [vmem:[%s9808_s29 + $0x28] sm:$0xff]  ;;  %v7458_v25 = vld [vmem:[%s11896_s9 + $0x260] sm:$0xff]  ;;  %v7460_v26 = vld [vmem:[%s11896_s9 + $0x270] sm:$0xff] }
 0x10b   : > { %8140 = vmatprep.subr.bf16.mxu0 %v8139_v45  ;;  %v8169_v45 = vpack.c.bf16 %v7412_v41, %v7410_v40  ;;  %v7459_v20 = vld [vmem:[%s11896_s9 + $0x268] sm:$0xff]  ;;  %v7437_v33 = vld [vmem:[%s9808_s29 + $0x3b] sm:$0xf]  ;;  %v7470_v34 = vld [vmem:[%s11896_s9 + $0x280] sm:$0xff] }
 0x10c   : > { %v7471_v27 = vld [vmem:[%s11896_s9 + $0x288] sm:$0xff]  ;;  %v7472_v35 = vld [vmem:[%s11896_s9 + $0x290] sm:$0xff]  ;;  %v7474_v41 = vld [vmem:[%s11896_s9 + $0x2a0] sm:$0xff] }
 0x10d   : > { %7348 = vmatmul.mubr.msk.f32.gmra.mrb[4].mxu0 %vm717_vm0, %v694_v46  ;;  %v8171_v46 = vpack.c.bf16 %v7425_v43, %v7423_v42  ;;  %v7475_v36 = vld [vmem:[%s11896_s9 + $0x2a8] sm:$0xff]  ;;  %v7476_v42 = vld [vmem:[%s11896_s9 + $0x2b0] sm:$0xff] }
 0x10e   : > { %913 = vmatprep.mubr.f32.mxu0 %v9433_v0  ;;  %v7487_v43 = vld [vmem:[%s11896_s9 + $0x2c8] sm:$0xff] }
 0x111   : > { %7349 = vmatmul.mubr.msk.f32.gmra.mrb[6].mxu0 %vm717_vm0, %v695_v47  ;;  %v7388_v47 = vld [vmem:[%s9808_s29 + $0x30] sm:$0xff] }
 0x112   : > { %1009 = vmatprep.mubr.f32.mxu0 %v9433_v0 }
 0x115   : > { %7358 = vmatmul.mubr.msk.f32.vlgmr.msra.gmra.mrb[0].mxu0 %vm717_vm0, %v920_v52  ;;  %v7429_v52 = vld [vmem:[%s11896_s9 + $0x1f8] sm:$0xff] }
 0x116   : > { %1015 = vmatprep.mubr.f32.mxu0 %v9433_v0  ;;  %8142 = vmatpush1.bf16.msra.mxu0 %v8141_v53  ;;  %v7402_v53 = vld [vmem:[%s9808_s29 + $0x21] sm:$0xff]  ;;  %v8175_v55 = vpack.c.bf16 %v7429_v52, %v7427_v51  ;;  %v7488_v51 = vld [vmem:[%s11896_s9 + $0x2d0] sm:$0xff] }
 0x117   : > { %8144 = vmatprep.subr.bf16.mxu0 %v8143_v54  ;;  %v8173_v54 = vpack.c.bf16 %v7424_v50, %v7422_v49  ;;  %v7453_v49 = vld [vmem:[%s9808_s29 + $0x3c] sm:$0xf]  ;;  %v7486_v50 = vld [vmem:[%s11896_s9 + $0x2c0] sm:$0xff]  ;;  %v7491_v52 = vld [vmem:[%s11896_s9 + $0x2e8] sm:$0xff] }
 0x119   : > { %7359 = vmatmul.mubr.msk.f32.gmra.mrb[2].mxu0 %vm717_vm0, %v921_v59  ;;  %v7441_v59 = vld [vmem:[%s11896_s9 + $0x218] sm:$0xff] }
 0x11a   : > { %1021 = vmatprep.mubr.f32.mxu0 %v9433_v0  ;;  %8146 = vmatpush1.bf16.msra.mxu0 %v8145_v60  ;;  %v7403_v60 = vld [vmem:[%s9808_s29 + $0x29] sm:$0xff] }
 0x11b   : > { %8148 = vmatprep.subr.bf16.mxu0 %v8147_v61  ;;  %v8177_v61 = vpack.c.bf16 %v7428_v57, %v7426_v56  ;;  %v7490_v57 = vld [vmem:[%s11896_s9 + $0x2e0] sm:$0xff] }
 0x11d   : > { %7360 = vmatmul.mubr.msk.f32.gmra.mrb[4].mxu0 %vm717_vm0, %v922_v62  ;;  %v8179_v62 = vpack.c.bf16 %v7441_v59, %v7439_v58  ;;  %v7492_v58 = vld [vmem:[%s11896_s9 + $0x2f0] sm:$0xff]  ;;  %v7503_v59 = vld [vmem:[%s11896_s9 + $0x308] sm:$0xff] }
 0x11e   : > { %1027 = vmatprep.mubr.f32.mxu0 %v9433_v0 }
 0x121   : > { %7361 = vmatmul.mubr.msk.f32.gmra.mrb[6].mxu0 %vm717_vm0, %v923_v63  ;;  %v7404_v63 = vld [vmem:[%s9808_s29 + $0x31] sm:$0xff] }
 0x122   : > { %1131 = vmatprep.mubr.f32.mxu0 %v9433_v0 }
 0x125   : > { %7370 = vmatmul.mubr.msk.f32.vlgmr.msra.gmra.mrb[0].mxu0 %vm717_vm0, %v1042_v5  ;;  %v7445_v5 = vld [vmem:[%s11896_s9 + $0x238] sm:$0xff] }
 0x126   : > { %1137 = vmatprep.mubr.f32.mxu0 %v9433_v0  ;;  %8150 = vmatpush1.bf16.msra.mxu0 %v8149_v6  ;;  %v7418_v6 = vld [vmem:[%s9808_s29 + $0x22] sm:$0xff]  ;;  %v8183_v8 = vpack.c.bf16 %v7445_v5, %v7443_v4  ;;  %v7504_v4 = vld [vmem:[%s11896_s9 + $0x310] sm:$0xff] }
 0x127   : > { %8152 = vmatprep.subr.bf16.mxu0 %v8151_v7  ;;  %v8181_v7 = vpack.c.bf16 %v7440_v3, %v7438_v2  ;;  %v7469_v2 = vld [vmem:[%s9808_s29 + $0x58] sm:$0xf]  ;;  %v7502_v3 = vld [vmem:[%s11896_s9 + $0x300] sm:$0xff]  ;;  %v7507_v5 = vld [vmem:[%s11896_s9 + $0x328] sm:$0xff] }
 0x129   : > { %7371 = vmatmul.mubr.msk.f32.gmra.mrb[2].mxu0 %vm717_vm0, %v1043_v12  ;;  %v7457_v12 = vld [vmem:[%s11896_s9 + $0x258] sm:$0xff] }
 0x12a   : > { %1143 = vmatprep.mubr.f32.mxu0 %v9433_v0  ;;  %8154 = vmatpush1.bf16.msra.mxu0 %v8153_v13  ;;  %v7419_v13 = vld [vmem:[%s9808_s29 + $0x2a] sm:$0xff] }
 0x12b   : > { %8156 = vmatprep.subr.bf16.mxu0 %v8155_v14  ;;  %v8185_v14 = vpack.c.bf16 %v7444_v10, %v7442_v9  ;;  %v7506_v10 = vld [vmem:[%s11896_s9 + $0x320] sm:$0xff] }
 0x12d   : > { %7372 = vmatmul.mubr.msk.f32.gmra.mrb[4].mxu0 %vm717_vm0, %v1044_v15  ;;  %v8187_v15 = vpack.c.bf16 %v7457_v12, %v7455_v11  ;;  %v7508_v11 = vld [vmem:[%s11896_s9 + $0x330] sm:$0xff]  ;;  %v7519_v12 = vld [vmem:[%s11896_s9 + $0x348] sm:$0xff] }
 0x12e   : > { %1149 = vmatprep.mubr.f32.mxu0 %v9433_v0 }
 0x131   : > { %7373 = vmatmul.mubr.msk.f32.gmra.mrb[6].mxu0 %vm717_vm0, %v1045_v16  ;;  %v7420_v16 = vld [vmem:[%s9808_s29 + $0x32] sm:$0xff] }
 0x132   : > { %1253 = vmatprep.mubr.f32.mxu0 %v9433_v0 }
 0x135   : > { %7382 = vmatmul.mubr.msk.f32.vlgmr.msra.gmra.mrb[0].mxu0 %vm717_vm0, %v1164_v21  ;;  %v7461_v21 = vld [vmem:[%s11896_s9 + $0x278] sm:$0xff] }
 0x136   : > { %1259 = vmatprep.mubr.f32.mxu0 %v9433_v0  ;;  %8158 = vmatpush1.bf16.msra.mxu0 %v8157_v22  ;;  %v7434_v22 = vld [vmem:[%s9808_s29 + $0x23] sm:$0xff]  ;;  %v8191_v24 = vpack.c.bf16 %v7461_v21, %v7459_v20  ;;  %v7520_v20 = vld [vmem:[%s11896_s9 + $0x350] sm:$0xff] }
 0x137   : > { %8160 = vmatprep.subr.bf16.mxu0 %v8159_v23  ;;  %v8189_v23 = vpack.c.bf16 %v7456_v19, %v7454_v18  ;;  %v7485_v18 = vld [vmem:[%s9808_s29 + $0x59] sm:$0xf]  ;;  %v7518_v19 = vld [vmem:[%s11896_s9 + $0x340] sm:$0xff]  ;;  %v7523_v21 = vld [vmem:[%s11896_s9 + $0x368] sm:$0xff] }
 0x139   : > { %7383 = vmatmul.mubr.msk.f32.gmra.mrb[2].mxu0 %vm717_vm0, %v1165_v28  ;;  %v7473_v28 = vld [vmem:[%s11896_s9 + $0x298] sm:$0xff] }
 0x13a   : > { %1265 = vmatprep.mubr.f32.mxu0 %v9433_v0  ;;  %8162 = vmatpush1.bf16.msra.mxu0 %v8161_v29  ;;  %v7435_v29 = vld [vmem:[%s9808_s29 + $0x2b] sm:$0xff] }
 0x13b   : > { %8164 = vmatprep.subr.bf16.mxu0 %v8163_v30  ;;  %v8193_v30 = vpack.c.bf16 %v7460_v26, %v7458_v25  ;;  %v7522_v26 = vld [vmem:[%s11896_s9 + $0x360] sm:$0xff] }
 0x13d   : > { %7384 = vmatmul.mubr.msk.f32.gmra.mrb[4].mxu0 %vm717_vm0, %v1166_v31  ;;  %v8195_v31 = vpack.c.bf16 %v7473_v28, %v7471_v27  ;;  %v7524_v27 = vld [vmem:[%s11896_s9 + $0x370] sm:$0xff]  ;;  %v7535_v28 = vld [vmem:[%s11896_s9 + $0x388] sm:$0xff] }
 0x13e   : > { %1271 = vmatprep.mubr.f32.mxu0 %v9433_v0 }
 0x141   : > { %7385 = vmatmul.mubr.msk.f32.gmra.mrb[6].mxu0 %vm717_vm0, %v1167_v32  ;;  %v7436_v32 = vld [vmem:[%s9808_s29 + $0x33] sm:$0xff] }
 0x142   : > { %1376 = vmatprep.mubr.f32.mxu0 %v9433_v0 }
 0x145   : > { %7398 = vmatmul.mubr.msk.f32.vlgmr.msra.gmra.mrb[0].mxu0 %vm717_vm0, %v7386_v37  ;;  %v7477_v37 = vld [vmem:[%s11896_s9 + $0x2b8] sm:$0xff] }
 0x146   : > { %1382 = vmatprep.mubr.f32.mxu0 %v9433_v0  ;;  %8166 = vmatpush1.bf16.msra.mxu0 %v8165_v38  ;;  %v7450_v38 = vld [vmem:[%s9808_s29 + $0x24] sm:$0xff]  ;;  %v8199_v40 = vpack.c.bf16 %v7477_v37, %v7475_v36  ;;  %v7536_v36 = vld [vmem:[%s11896_s9 + $0x390] sm:$0xff] }
 0x147   : > { %8168 = vmatprep.subr.bf16.mxu0 %v8167_v39  ;;  %v8197_v39 = vpack.c.bf16 %v7472_v35, %v7470_v34  ;;  %v7501_v34 = vld [vmem:[%s9808_s29 + $0x5a] sm:$0xf]  ;;  %v7534_v35 = vld [vmem:[%s11896_s9 + $0x380] sm:$0xff]  ;;  %v7539_v37 = vld [vmem:[%s11896_s9 + $0x3a8] sm:$0xff] }
 0x149   : > { %7399 = vmatmul.mubr.msk.f32.gmra.mrb[2].mxu0 %vm717_vm0, %v7387_v44  ;;  %v7489_v44 = vld [vmem:[%s11896_s9 + $0x2d8] sm:$0xff] }
 0x14a   : > { %1388 = vmatprep.mubr.f32.mxu0 %v9433_v0  ;;  %8170 = vmatpush1.bf16.msra.mxu0 %v8169_v45  ;;  %v7451_v45 = vld [vmem:[%s9808_s29 + $0x2c] sm:$0xff] }
 0x14b   : > { %8172 = vmatprep.subr.bf16.mxu0 %v8171_v46  ;;  %v8201_v46 = vpack.c.bf16 %v7476_v42, %v7474_v41  ;;  %v7538_v42 = vld [vmem:[%s11896_s9 + $0x3a0] sm:$0xff] }
 0x14d   : > { %7400 = vmatmul.mubr.msk.f32.gmra.mrb[4].mxu0 %vm717_vm0, %v7388_v47  ;;  %v8203_v47 = vpack.c.bf16 %v7489_v44, %v7487_v43  ;;  %v7540_v43 = vld [vmem:[%s11896_s9 + $0x3b0] sm:$0xff] }
 0x14e   : > { %1394 = vmatprep.mubr.f32.mxu0 %v9433_v0  ;;  %v7515_v44 = vld [vmem:[%s9808_s29 + $0x4b] sm:$0xff] }
 0x151   : > { %7401 = vmatmul.mubr.msk.f32.gmra.mrb[6].mxu0 %vm717_vm0, %v7389_v48  ;;  %v7452_v48 = vld [vmem:[%s9808_s29 + $0x34] sm:$0xff] }
 0x152   : > { %1498 = vmatprep.mubr.f32.mxu0 %v9433_v0 }
 0x155   : > { %7414 = vmatmul.mubr.msk.f32.vlgmr.msra.gmra.mrb[0].mxu0 %vm717_vm0, %v7402_v53  ;;  %v7493_v53 = vld [vmem:[%s11896_s9 + $0x2f8] sm:$0xff] }
 0x156   : > { %1504 = vmatprep.mubr.f32.mxu0 %v9433_v0  ;;  %8174 = vmatpush1.bf16.msra.mxu0 %v8173_v54  ;;  %v7466_v54 = vld [vmem:[%s9808_s29 + $0x40] sm:$0xff]  ;;  %v8207_v56 = vpack.c.bf16 %v7493_v53, %v7491_v52  ;;  %v2510_v52 = vlaneseq }
 0x157   : > { %8176 = vmatprep.subr.bf16.mxu0 %v8175_v55  ;;  %v8205_v55 = vpack.c.bf16 %v7488_v51, %v7486_v50  ;;  %v7532_v50 = vld [vmem:[%s9808_s29 + $0x54] sm:$0xff]  ;;  %v7533_v51 = vld [vmem:[%s9808_s29 + $0x5c] sm:$0xf] }
 0x158   : > { %v10320_v53 = vshrl.u32 %v2510_v52, 7 }
 0x159   : > { %7415 = vmatmul.mubr.msk.f32.gmra.mrb[2].mxu0 %vm717_vm0, %v7403_v60  ;;  %v7505_v60 = vld [vmem:[%s11896_s9 + $0x318] sm:$0xff] }
 0x15a   : > { %1510 = vmatprep.mubr.f32.mxu0 %v9433_v0  ;;  %8178 = vmatpush1.bf16.msra.mxu0 %v8177_v61  ;;  %v7467_v61 = vld [vmem:[%s9808_s29 + $0x48] sm:$0xff] }
 0x15b   : > { %8180 = vmatprep.subr.bf16.mxu0 %v8179_v62  ;;  %v8209_v62 = vpack.c.bf16 %v7492_v58, %v7490_v57 }
 0x15d   : > { %7416 = vmatmul.mubr.msk.f32.gmra.mrb[4].mxu0 %vm717_vm0, %v7404_v63  ;;  %v8211_v63 = vpack.c.bf16 %v7505_v60, %v7503_v59 }
 0x15e   : > { %1516 = vmatprep.mubr.f32.mxu0 %v9433_v0 }
 0x161   : > { %7417 = vmatmul.mubr.msk.f32.gmra.mrb[6].mxu0 %vm717_vm0, %v7405_v1  ;;  %v7468_v1 = vld [vmem:[%s9808_s29 + $0x50] sm:$0xff] }
 0x162   : > { %1620 = vmatprep.mubr.f32.mxu0 %v9433_v0 }
 0x165   : > { %7430 = vmatmul.mubr.msk.f32.vlgmr.msra.gmra.mrb[0].mxu0 %vm717_vm0, %v7418_v6  ;;  %v7509_v6 = vld [vmem:[%s11896_s9 + $0x338] sm:$0xff] }
 0x166   : > { %1626 = vmatprep.mubr.f32.mxu0 %v9433_v0  ;;  %8182 = vmatpush1.bf16.msra.mxu0 %v8181_v7  ;;  %v7482_v7 = vld [vmem:[%s9808_s29 + $0x41] sm:$0xff]  ;;  %v8215_v9 = vpack.c.bf16 %v7509_v6, %v7507_v5 }
 0x167   : > { %8184 = vmatprep.subr.bf16.mxu0 %v8183_v8  ;;  %v8213_v8 = vpack.c.bf16 %v7504_v4, %v7502_v3 }
 0x169   : > { %7431 = vmatmul.mubr.msk.f32.gmra.mrb[2].mxu0 %vm717_vm0, %v7419_v13  ;;  %v7521_v13 = vld [vmem:[%s11896_s9 + $0x358] sm:$0xff] }
 0x16a   : > { %1632 = vmatprep.mubr.f32.mxu0 %v9433_v0  ;;  %8186 = vmatpush1.bf16.msra.mxu0 %v8185_v14  ;;  %v7483_v14 = vld [vmem:[%s9808_s29 + $0x49] sm:$0xff] }
 0x16b   : > { %8188 = vmatprep.subr.bf16.mxu0 %v8187_v15  ;;  %v8217_v15 = vpack.c.bf16 %v7508_v11, %v7506_v10 }
 0x16d   : > { %7432 = vmatmul.mubr.msk.f32.gmra.mrb[4].mxu0 %vm717_vm0, %v7420_v16  ;;  %v8219_v16 = vpack.c.bf16 %v7521_v13, %v7519_v12 }
 0x16e   : > { %1638 = vmatprep.mubr.f32.mxu0 %v9433_v0 }
 0x171   : > { %7433 = vmatmul.mubr.msk.f32.gmra.mrb[6].mxu0 %vm717_vm0, %v7421_v17  ;;  %v7484_v17 = vld [vmem:[%s9808_s29 + $0x51] sm:$0xff] }
 0x172   : > { %1742 = vmatprep.mubr.f32.mxu0 %v9433_v0 }
 0x175   : > { %7446 = vmatmul.mubr.msk.f32.vlgmr.msra.gmra.mrb[0].mxu0 %vm717_vm0, %v7434_v22  ;;  %v7525_v22 = vld [vmem:[%s11896_s9 + $0x378] sm:$0xff] }
 0x176   : > { %1748 = vmatprep.mubr.f32.mxu0 %v9433_v0  ;;  %8190 = vmatpush1.bf16.msra.mxu0 %v8189_v23  ;;  %v7498_v23 = vld [vmem:[%s9808_s29 + $0x42] sm:$0xff]  ;;  %v8223_v25 = vpack.c.bf16 %v7525_v22, %v7523_v21 }
 0x177   : > { %8192 = vmatprep.subr.bf16.mxu0 %v8191_v24  ;;  %v8221_v24 = vpack.c.bf16 %v7520_v20, %v7518_v19 }
 0x179   : > { %7447 = vmatmul.mubr.msk.f32.gmra.mrb[2].mxu0 %vm717_vm0, %v7435_v29  ;;  %v7537_v29 = vld [vmem:[%s11896_s9 + $0x398] sm:$0xff] }
 0x17a   : > { %1754 = vmatprep.mubr.f32.mxu0 %v9433_v0  ;;  %8194 = vmatpush1.bf16.msra.mxu0 %v8193_v30  ;;  %v7499_v30 = vld [vmem:[%s9808_s29 + $0x4a] sm:$0xff] }
 0x17b   : > { %8196 = vmatprep.subr.bf16.mxu0 %v8195_v31  ;;  %v8225_v31 = vpack.c.bf16 %v7524_v27, %v7522_v26  ;;  %v2536_v26 = vld [vmem:[%s11828_s5] sm:$0xff]  ;;  %v2537_v27 = vld [vmem:[%s11828_s5 + $0x8] sm:$0xff] }
 0x17d   : > { %7448 = vmatmul.mubr.msk.f32.gmra.mrb[4].mxu0 %vm717_vm0, %v7436_v32  ;;  %v8227_v32 = vpack.c.bf16 %v7537_v29, %v7535_v28  ;;  %v2671_v28 = vld [vmem:[%s11827_s4] sm:$0xff]  ;;  %v10349_v29 = vpack.c.bf16 %v2537_v27, %v2536_v26  ;;  %v2570_v27 = vld [vmem:[%s11829_s6 + $0x68] sm:$0xff] }
 0x17e   : > { %1760 = vmatprep.mubr.f32.mxu0 %v9433_v0  ;;  %v2569_v26 = vld [vmem:[%s11829_s6 + $0x60] sm:$0xff] }
 0x181   : > { %7449 = vmatmul.mubr.msk.f32.gmra.mrb[6].mxu0 %vm717_vm0, %v7437_v33  ;;  %v7500_v33 = vld [vmem:[%s9808_s29 + $0x52] sm:$0xff] }
 0x182   : > { %1864 = vmatprep.mubr.f32.mxu0 %v9433_v0 }
 0x185   : > { %7462 = vmatmul.mubr.msk.f32.vlgmr.msra.gmra.mrb[0].mxu0 %vm717_vm0, %v7450_v38  ;;  %v7541_v38 = vld [vmem:[%s11896_s9 + $0x3b8] sm:$0xff] }
 0x186   : > { %1870 = vmatprep.mubr.f32.mxu0 %v9433_v0  ;;  %8198 = vmatpush1.bf16.msra.mxu0 %v8197_v39  ;;  %v7514_v39 = vld [vmem:[%s9808_s29 + $0x43] sm:$0xff]  ;;  %v8231_v41 = vpack.c.bf16 %v7541_v38, %v7539_v37  ;;  %v2542_v38 = vld [vmem:[%s11828_s5 + $0x30] sm:$0xff] }
 0x187   : > { %8200 = vmatprep.subr.bf16.mxu0 %v8199_v40  ;;  %v8229_v40 = vpack.c.bf16 %v7536_v36, %v7534_v35  ;;  %v2540_v35 = vld [vmem:[%s11828_s5 + $0x20] sm:$0xff]  ;;  %v2541_v36 = vld [vmem:[%s11828_s5 + $0x28] sm:$0xff] }
 0x188   : > { %v10375_v37 = vpack.c.bf16 %v2541_v36, %v2540_v35  ;;  %v2573_v35 = vld [vmem:[%s11829_s6 + $0x80] sm:$0xff]  ;;  %v2574_v36 = vld [vmem:[%s11829_s6 + $0x88] sm:$0xff] }
 0x189   : > { %7463 = vmatmul.mubr.msk.f32.gmra.mrb[2].mxu0 %vm717_vm0, %v7451_v45  ;;  %v8233_v45 = vpack.c.bf16 %v7540_v43, %v7538_v42  ;;  %v2545_v42 = vld [vmem:[%s11828_s5 + $0x48] sm:$0xff] }
 0x18a   : > { %1876 = vmatprep.mubr.f32.mxu0 %v9433_v0  ;;  %8202 = vmatpush1.bf16.msra.mxu0 %v8201_v46  ;;  %v7516_v46 = vld [vmem:[%s9808_s29 + $0x53] sm:$0xff] }
 0x18b   : > { %8204 = vmatprep.subr.bf16.mxu0 %v8203_v47  ;;  %v7517_v47 = vld [vmem:[%s9808_s29 + $0x5b] sm:$0xf] }
 0x18d   : > { %7464 = vmatmul.mubr.msk.f32.gmra.mrb[4].mxu0 %vm717_vm0, %v7452_v48  ;;  %v7530_v48 = vld [vmem:[%s9808_s29 + $0x44] sm:$0xff] }
 0x18e   : > { %1882 = vmatprep.mubr.f32.mxu0 %v9433_v0 }
 0x191   : > { %7465 = vmatmul.mubr.msk.f32.gmra.mrb[6].mxu0 %vm717_vm0, %v7453_v49  ;;  %v7531_v49 = vld [vmem:[%s9808_s29 + $0x4c] sm:$0xff]  ;;  %s685_s29 = sand.u32 1, %s11905_s27  }
 0x192   : > { %1987 = vmatprep.mubr.f32.mxu0 %v9433_v0  ;;  %s7179_s21 = scalar_lea.sflag [#allocation4], %s685_s29 }
 0x195   : > { %7478 = vmatmul.mubr.msk.f32.vlgmr.msra.gmra.mrb[0].mxu0 %vm717_vm0, %v7466_v54  ;;  %v2512_v54 = vsub.s32 0, %v10320_v53 }
 0x196   : > { %1993 = vmatprep.mubr.f32.mxu0 %v9433_v0  ;;  %8206 = vmatpush1.bf16.msra.mxu0 %v8205_v55  ;;  %v2508_v55 = vld [vmem:[#allocation2] sm:$0x3] }
 0x197   : > { %8208 = vmatprep.subr.bf16.mxu0 %v8207_v56  ;;  %v2516_v56 = vsub.s32 1, %v10320_v53  ;;  %v2513_v57 = vrot.slane %v2508_v55, %v2512_v54  ;;  %v6124_v53 = vld [vmem:[#allocation5] sm:$0x1f] }
 0x199   : > { %7479 = vmatmul.mubr.msk.f32.gmra.mrb[2].mxu0 %vm717_vm0, %v7467_v61  ;;  %v2517_v59 = vrot.slane %v2508_v55, %v2516_v56  ;;  %v2552_v55 = vld [vmem:[%s11828_s5 + $0x80] sm:$0xff] }
 0x19a   : > { %1999 = vmatprep.mubr.f32.mxu0 %v9433_v0  ;;  %8210 = vmatpush1.bf16.msra.mxu0 %v8209_v62 }
 0x19b   : > { %8212 = vmatprep.subr.bf16.mxu0 %v8211_v63 }
 0x19d   : > { %7480 = vmatmul.mubr.msk.f32.gmra.mrb[4].mxu0 %vm717_vm0, %v7468_v1 }
 0x19e   : > { %2005 = vmatprep.mubr.f32.mxu0 %v9433_v0 }
 0x1a1   : > { %7481 = vmatmul.mubr.msk.f32.gmra.mrb[6].mxu0 %vm717_vm0, %v7469_v2 }
 0x1a2   : > { %2109 = vmatprep.mubr.f32.mxu0 %v9433_v0 }
 0x1a5   : > { %7494 = vmatmul.mubr.msk.f32.vlgmr.msra.gmra.mrb[0].mxu0 %vm717_vm0, %v7482_v7 }
 0x1a6   : > { %2115 = vmatprep.mubr.f32.mxu0 %v9433_v0  ;;  %8214 = vmatpush1.bf16.msra.mxu0 %v8213_v8 }
 0x1a7   : > { %8216 = vmatprep.subr.bf16.mxu0 %v8215_v9 }
 0x1a9   : > { %7495 = vmatmul.mubr.msk.f32.gmra.mrb[2].mxu0 %vm717_vm0, %v7483_v14 }
 0x1aa   : > { %2121 = vmatprep.mubr.f32.mxu0 %v9433_v0  ;;  %8218 = vmatpush1.bf16.msra.mxu0 %v8217_v15 }
 0x1ab   : > { %8220 = vmatprep.subr.bf16.mxu0 %v8219_v16 }
 0x1ad   : > { %7496 = vmatmul.mubr.msk.f32.gmra.mrb[4].mxu0 %vm717_vm0, %v7484_v17 }
 0x1ae   : > { %2127 = vmatprep.mubr.f32.mxu0 %v9433_v0 }
 0x1b1   : > { %7497 = vmatmul.mubr.msk.f32.gmra.mrb[6].mxu0 %vm717_vm0, %v7485_v18 }
 0x1b2   : > { %2231 = vmatprep.mubr.f32.mxu0 %v9433_v0 }
 0x1b5   : > { %7510 = vmatmul.mubr.msk.f32.vlgmr.msra.gmra.mrb[0].mxu0 %vm717_vm0, %v7498_v23 }
 0x1b6   : > { %2237 = vmatprep.mubr.f32.mxu0 %v9433_v0  ;;  %8222 = vmatpush1.bf16.msra.mxu0 %v8221_v24  ;;  %v2578_v24 = vld [vmem:[%s11898_s20] sm:$0xff]  ;;  %s686_s20 = scalar_lea.vmem [#allocation14], %s685_s29 }
 0x1b7   : > { %8224 = vmatprep.subr.bf16.mxu0 %v8223_v25  ;;  %v2579_v25 = vld [vmem:[%s11899_s15 + $0x8] sm:$0x3f]  ;;  %s7191_s13 = sshll.u32 %s686_s20, 4  ;;  %s11783_s13 = int_to_ptr.vmem [resolvable:$true] %s7191_s13 }
 0x1b8   : > { %s9344_s2 = scalar_lea.vmem %s11783_s13, 16  ;;  %p9351_p13 = scmp.lt.s32.totalorder %s11783_s13, %s9349_s24 }
 0x1b9   : > { %7511 = vmatmul.mubr.msk.f32.gmra.mrb[2].mxu0 %vm717_vm0, %v7499_v30  ;;  %v9435_v30 = vmov 0.0|0.0   ;;  %p9345_p4 = scmp.ne.s32.totalorder %s11783_s13, %s9344_s2 }
 0x1ba   : > { %2243 = vmatprep.mubr.f32.mxu0 %v9433_v0  ;;  %8226 = vmatpush1.bf16.msra.mxu0 %v8225_v31  ;;  %v2538_v31 = vld [vmem:[%s11828_s5 + $0x10] sm:$0xff] }
 0x1bb   : > { %8228 = vmatprep.subr.bf16.mxu0 %v8227_v32  ;;  %v2539_v32 = vld [vmem:[%s11828_s5 + $0x18] sm:$0xff] }
 0x1bd   : > { %7512 = vmatmul.mubr.msk.f32.gmra.mrb[4].mxu0 %vm717_vm0, %v7500_v33  ;;  %v2672_v33 = vld [vmem:[%s11827_s4 + $0x8] sm:$0x3f] }
 0x1be   : > { %2249 = vmatprep.mubr.f32.mxu0 %v9433_v0 }
 0x1c1   : > { %7513 = vmatmul.mubr.msk.f32.gmra.mrb[6].mxu0 %vm717_vm0, %v7501_v34  ;;  %v10364_v34 = vpack.c.bf16 %v2539_v32, %v2538_v31  ;;  %v2571_v31 = vld [vmem:[%s11829_s6 + $0x70] sm:$0xff]  ;;  %v2572_v32 = vld [vmem:[%s11829_s6 + $0x78] sm:$0xff] }
 0x1c2   : > { %2353 = vmatprep.mubr.f32.mxu0 %v9433_v0 }
 0x1c5   : > { %7526 = vmatmul.mubr.msk.f32.vlgmr.msra.gmra.mrb[0].mxu0 %vm717_vm0, %v7514_v39  ;;  %v2543_v39 = vld [vmem:[%s11828_s5 + $0x38] sm:$0xff] }
 0x1c6   : > { %2359 = vmatprep.mubr.f32.mxu0 %v9433_v0  ;;  %8230 = vmatpush1.bf16.msra.mxu0 %v8229_v40  ;;  %v10385_v40 = vpack.c.bf16 %v2543_v39, %v2542_v38  ;;  %v8310_v38 = vpack.c.bf16 %v2574_v36, %v2573_v35  ;;  %v2575_v39 = vld [vmem:[%s11829_s6 + $0x90] sm:$0xff] }
 0x1c7   : > { %8232 = vmatprep.subr.bf16.mxu0 %v8231_v41  ;;  %v2544_v41 = vld [vmem:[%s11828_s5 + $0x40] sm:$0xff] }
 0x1c8   : > { %v10395_v43 = vpack.c.bf16 %v2545_v42, %v2544_v41  ;;  %v2576_v41 = vld [vmem:[%s11829_s6 + $0x98] sm:$0xff] }
 0x1c9   : > { %7527 = vmatmul.mubr.msk.f32.gmra.mrb[2].mxu0 %vm717_vm0, %v7515_v44  ;;  %v2546_v44 = vld [vmem:[%s11828_s5 + $0x50] sm:$0xff]  ;;  %v8313_v42 = vpack.c.bf16 %v2576_v41, %v2575_v39  ;;  %v7582_v41 = vld [vmem:[%s11830_s7 + $0x60] sm:$0xff] }
 0x1ca   : > { %2365 = vmatprep.mubr.f32.mxu0 %v9433_v0  ;;  %8234 = vmatpush1.bf16.msra.mxu0 %v8233_v45  ;;  %v2547_v45 = vld [vmem:[%s11828_s5 + $0x58] sm:$0xff] }
 0x1cd   : > { %7528 = vmatmul.mubr.msk.f32.gmra.mrb[4].mxu0 %vm717_vm0, %v7516_v46  ;;  %v10405_v46 = vpack.c.bf16 %v2547_v45, %v2546_v44  ;;  %v2577_v44 = vld [vmem:[%s11829_s6 + $0xa0] sm:$0xff] }
 0x1ce   : > { %2371 = vmatprep.mubr.f32.mxu0 %v9433_v0 }
 0x1d1   : > { %7529 = vmatmul.mubr.msk.f32.gmra.mrb[6].mxu0 %vm717_vm0, %v7517_v47  ;;  %v2548_v47 = vld [vmem:[%s11828_s5 + $0x60] sm:$0xff] }
 0x1d2   : > { %2475 = vmatprep.mubr.f32.mxu0 %v9433_v0 }
 0x1d5   : > { %7542 = vmatmul.mubr.msk.f32.vlgmr.msra.gmra.mrb[0].mxu0 %vm717_vm0, %v7530_v48  ;;  %v2549_v48 = vld [vmem:[%s11828_s5 + $0x68] sm:$0xff] }
 0x1d6   : > { %2481 = vmatprep.mubr.f32.mxu0 %v9433_v0 }
 0x1d9   : > { %7543 = vmatmul.mubr.msk.f32.gmra.mrb[2].mxu0 %vm717_vm0, %v7531_v49  ;;  %v10415_v49 = vpack.c.bf16 %v2549_v48, %v2548_v47  ;;  %v7562_v47 = vld [vmem:[%s11830_s7 + $0x20] sm:$0xff]  ;;  %v7564_v48 = vld [vmem:[%s11830_s7 + $0x30] sm:$0x3f] }
 0x1da   : > { %2487 = vmatprep.mubr.f32.mxu0 %v9433_v0 }
 0x1dd   : > { %7544 = vmatmul.mubr.msk.f32.gmra.mrb[4].mxu0 %vm717_vm0, %v7532_v50  ;;  %v2550_v50 = vld [vmem:[%s11828_s5 + $0x70] sm:$0xff] }
 0x1de   : > { %2493 = vmatprep.mubr.f32.mxu0 %v9433_v0 }
 0x1e1   : > { %7545 = vmatmul.mubr.msk.f32.gmra.mrb[6].mxu0 %vm717_vm0, %v7533_v51  ;;  %v2551_v51 = vld [vmem:[%s11828_s5 + $0x78] sm:$0xff] }
 0x1e2   : > { %6200 = vmatprep.mubr.f32.mxu0 %v9433_v0  ;;  %v10425_v52 = vpack.c.bf16 %v2551_v51, %v2550_v50  ;;  %v8378_v50 = vpack.c.bf16 %v7564_v48, %v7562_v47  ;;  %v3076_v51 = vld [vmem:[%s11830_s7 + $0x8] sm:$0xff]  ;;  %v7601_v47 = vld [vmem:[%s11830_s7 + $0xb8] sm:$0x3f] }
 0x2a8   : > { %v2477_v58 = vpop.f32.mrb[0].mxu0 }
 0x2a9   : > { %v2479_v60 = vpop.f32.mrb[1].mxu0  ;;  %v2520_v61 = vadd.f32 %v2513_v57, %v2477_v58 }
 0x2aa   : > { %v2521_v62 = vadd.f32 %v2517_v59, %v2479_v60  ;;  %v2555_v60 = vld [vmem:[%s11828_s5 + $0x98] sm:$0xff] }
 0x2ab   : > { %v2528_v4 = vmax.f32 %v2520_v61, 0.0 }
 0x2ac   : > { %v2483_v63 = vpop.f32.mrb[2].mxu0  ;;  %v2529_v6 = vmax.f32 %v2521_v62, 0.0  ;;  %v10453_v62 = vld [vmem:[%s11828_s5 + $0xa0] sm:$0xff] }
 0x2ad   : > { %v2522_v1 = vadd.f32 %v2513_v57, %v2483_v63  ;;  %v2485_v2 = vpop.f32.mrb[3].mxu0  ;;  %v2557_v63 = vld [vmem:[%s11829_s6] sm:$0xff] }
 0x2ae   : > { %v2523_v3 = vadd.f32 %v2517_v59, %v2485_v2 }
 0x2af   : > { %v2530_v5 = vmax.f32 %v2522_v1, 0.0  ;;  %v2558_v1 = vld [vmem:[%s11829_s6 + $0x8] sm:$0xff] }
 0x2b0   : > { %v2531_v7 = vmax.f32 %v2523_v3, 0.0  ;;  %v2489_v8 = vpop.f32.mrb[4].mxu0  ;;  %v10463_v3 = vpack.c.bf16 %v2558_v1, %v2557_v63 }
 0x2b1   : > { %v2491_v9 = vpop.f32.mrb[5].mxu0  ;;  %v8237_v10 = vpack.c.bf16 %v2530_v5, %v2528_v4  ;;  %v2524_v12 = vadd.f32 %v2513_v57, %v2489_v8  ;;  %v2559_v5 = vld [vmem:[%s11829_s6 + $0x10] sm:$0xff] }
 0x2b2   : > { %v8235_v11 = vpack.c.bf16 %v2531_v7, %v2529_v6  ;;  %v2525_v13 = vadd.f32 %v2517_v59, %v2491_v9  ;;  %v2560_v6 = vld [vmem:[%s11829_s6 + $0x18] sm:$0xff] }
 0x2b3   : > { %v2532_v18 = vmax.f32 %v2524_v12, 0.0  ;;  %v10473_v8 = vpack.c.bf16 %v2560_v6, %v2559_v5 }
 0x2b4   : > { %v2495_v14 = vpop.f32.mrb[6].mxu0  ;;  %8236 = vmatprep.subr.bf16.mxu1 %v8235_v11  ;;  %v2533_v20 = vmax.f32 %v2525_v13, 0.0 }
 0x2b5   : > { %v2526_v15 = vadd.f32 %v2513_v57, %v2495_v14  ;;  %v2497_v16 = vpop.f32.mrb[7].mxu0  ;;  %8238 = vmatpush1.bf16.msra.mxu1 %v8237_v10  ;;  %v2553_v57 = vld [vmem:[%s11828_s5 + $0x88] sm:$0xff]  ;;  %v2563_v14 = vld [vmem:[%s11829_s6 + $0x30] sm:$0xff] }
 0x2b6   : > { %v2527_v17 = vadd.f32 %v2517_v59, %v2497_v16  ;;  %v10435_v58 = vpack.c.bf16 %v2553_v57, %v2552_v55  ;;  %v2554_v59 = vld [vmem:[%s11828_s5 + $0x90] sm:$0xff] }
 0x2b7   : > { %v2534_v19 = vmax.f32 %v2526_v15, 0.0  ;;  %v10445_v61 = vpack.c.bf16 %v2555_v60, %v2554_v59  ;;  %v2564_v15 = vld [vmem:[%s11829_s6 + $0x38] sm:$0xff] }
 0x2b8   : > { %v2535_v21 = vmax.f32 %v2527_v17, 0.0  ;;  %v10499_v17 = vpack.c.bf16 %v2564_v15, %v2563_v14  ;;  %v7575_v14 = vld [vmem:[%s11830_s7 + $0x48] sm:$0xff]  ;;  %v7577_v15 = vld [vmem:[%s11830_s7 + $0x58] sm:$0x3f] }
 0x2b9   : > { %v8242_v22 = vpack.c.bf16 %v2534_v19, %v2532_v18  ;;  %v2565_v19 = vld [vmem:[%s11829_s6 + $0x40] sm:$0xff] }
 0x2ba   : > { %v8239_v23 = vpack.c.bf16 %v2535_v21, %v2533_v20  ;;  %v2566_v20 = vld [vmem:[%s11829_s6 + $0x48] sm:$0xff] }
 0x2bc   : > { %8241 = vmatprep.subr.msk.bf16.mxu1 %vm8240_vm3, %v8239_v23 }
 0x2bd   : > { %8244 = vmatpush1.bf16.msk.msra.mxu1 %vm8240_vm3, %v8242_v22 }
 0x2be   : > { %8246 = vmatprep.subr.bf16.mxu1 %v8235_v11  ;;  %v2562_v11 = vld [vmem:[%s11829_s6 + $0x28] sm:$0xff] }
 0x2c0   : > { %7548 = vmatmul.mubr.msk.f32.vlgmr.msra.gmra.mrb[0].mxu1 %vm2580_vm4, %v2578_v24  ;;  %v2568_v24 = vld [vmem:[%s11829_s6 + $0x58] sm:$0xff] }
 0x2c1   : > { %8248 = vmatpush1.bf16.msra.mxu1 %v8237_v10  ;;  %2664 = vmatprep.mubr.f32.mxu1 %v9433_v0  ;;  %v2561_v10 = vld [vmem:[%s11829_s6 + $0x20] sm:$0xff] }
 0x2c2   : > { %8251 = vmatprep.subr.msk.bf16.mxu1 %vm8240_vm3, %v8239_v23  ;;  %v10485_v12 = vpack.c.bf16 %v2562_v11, %v2561_v10  ;;  %v2567_v23 = vld [vmem:[%s11829_s6 + $0x50] sm:$0xff] }
 0x2c4   : > { %7549 = vmatmul.mubr.msk.f32.gmra.mrb[2].mxu1 %vm2580_vm4, %v2579_v25  ;;  %v10523_v25 = vpack.c.bf16 %v2568_v24, %v2567_v23  ;;  %v8387_v23 = vpack.c.bf16 %v7577_v15, %v7575_v14  ;;  %v7631_v14 = vld [vmem:[%s11830_s7 + $0x128] sm:$0xff]  ;;  %v7633_v15 = vld [vmem:[%s11830_s7 + $0x138] sm:$0x3f] }
 0x2c5   : > { %8254 = vmatpush1.bf16.msk.msra.mxu1 %vm8240_vm3, %v8242_v22  ;;  %2743 = vmatprep.mubr.f32.mxu1 %v9433_v0  ;;  %v10513_v22 = vpack.c.bf16 %v2566_v20, %v2565_v19 }
 0x2c6   : > { %8255 = vmatprep.subr.bf16.mxu1 %v9435_v30 }
 0x2c8   : > { %7552 = vmatmul.mubr.msk.f32.vlgmr.msra.gmra.mrb[4].mxu1 %vm2580_vm4, %v2671_v28  ;;  %v10533_v28 = vpack.c.bf16 %v2570_v27, %v2569_v26  ;;  %v7574_v26 = vld [vmem:[%s11830_s7 + $0x40] sm:$0xff]  ;;  %v7576_v27 = vld [vmem:[%s11830_s7 + $0x50] sm:$0x3f] }
 0x2c9   : > { %2749 = vmatprep.mubr.f32.mxu1 %v9433_v0  ;;  %8257 = vmatpush1.bf16.msra.mxu1 %v10349_v29  ;;  %v8390_v36 = vpack.c.bf16 %v7576_v27, %v7574_v26  ;;  %v7638_v27 = vld [vmem:[%s11830_s7 + $0x140] sm:$0xff] }
 0x2ca   : > { %8258 = vmatprep.subr.bf16.mxu1 %v9435_v30 }
 0x2cc   : > { %7553 = vmatmul.mubr.msk.f32.gmra.mrb[6].mxu1 %vm2580_vm4, %v2672_v33  ;;  %v8307_v33 = vpack.c.bf16 %v2572_v32, %v2571_v31  ;;  %v7583_v32 = vld [vmem:[%s11830_s7 + $0x68] sm:$0xff] }
 0x2cd   : > { %8260 = vmatpush1.bf16.msra.mxu1 %v10364_v34 }
 0x2ce   : > { %8261 = vmatprep.subr.bf16.mxu1 %v9435_v30 }
 0x2d1   : > { %8263 = vmatpush1.bf16.msra.mxu1 %v10375_v37 }
 0x2d2   : > { %8264 = vmatprep.subr.bf16.mxu1 %v9435_v30 }
 0x2d5   : > { %8266 = vmatpush1.bf16.msra.mxu1 %v10385_v40 }
 0x2d6   : > { %8267 = vmatprep.subr.bf16.mxu1 %v9435_v30 }
 0x2d9   : > { %8269 = vmatpush1.bf16.msra.mxu1 %v10395_v43 }
 0x2da   : > { %8270 = vmatprep.subr.bf16.mxu1 %v9435_v30 }
 0x2dd   : > { %8272 = vmatpush1.bf16.msra.mxu1 %v10405_v46 }
 0x2de   : > { %8273 = vmatprep.subr.bf16.mxu1 %v9435_v30 }
 0x2e1   : > { %8275 = vmatpush1.bf16.msra.mxu1 %v10415_v49 }
 0x2e2   : > { %8276 = vmatprep.subr.bf16.mxu1 %v9435_v30 }
 0x2e5   : > { %8278 = vmatpush1.bf16.msra.mxu1 %v10425_v52 }
 0x2e6   : > { %8279 = vmatprep.subr.bf16.mxu1 %v9435_v30 }
 0x2e9   : > { %8281 = vmatpush1.bf16.msra.mxu1 %v10435_v58 }
 0x2ea   : > { %8282 = vmatprep.subr.bf16.mxu1 %v9435_v30 }
 0x2ed   : > { %8284 = vmatpush1.bf16.msra.mxu1 %v10445_v61 }
 0x2ee   : > { %2803 = vmatprep.subr.mxu1 %v9433_v0 }
 0x2f1   : > { %2804 = vmatpush1.msra.mxu1 %v10453_v62 }
 0x2f2   : > { %8285 = vmatprep.subr.bf16.mxu1 %v9435_v30 }
 0x393   : > { %v2660_v2 = vpop.f32.mrb[0].mxu1 }
 0x394   : > { %v2662_v4 = vpop.f32.mrb[1].mxu1 }
 0x395   : > { %7554 = vmatprep.mubr.msk.f32.mxu1 %vm2756_vm5, %v2662_v4 }
 0x396   : > { %2828 = vmatmul.mubr.f32.vlgmr.msra.gmra.mrb[8].mxu1 %v2660_v2 }
 0x397   : > { %8287 = vmatpush1.bf16.msra.mxu1 %v10463_v3  ;;  %v2666_v7 = vpop.f32.mrb[2].mxu1 }
 0x398   : > { %v2668_v9 = vpop.f32.mrb[3].mxu1  ;;  %8288 = vmatprep.subr.bf16.mxu1 %v9435_v30 }
 0x399   : > { %7555 = vmatprep.mubr.msk.f32.mxu1 %vm2756_vm5, %v2668_v9 }
 0x39a   : > { %2833 = vmatmul.mubr.f32.gmra.mrb[10].mxu1 %v2666_v7 }
 0x39b   : > { %8290 = vmatpush1.bf16.msra.mxu1 %v10473_v8  ;;  %7556 = vmatprep.mubr.msk.f32.mxu1 %vm2756_vm5, %v2662_v4  ;;  %v10487_v13 = vpop.f32.mrb[4].mxu1 }
 0x39c   : > { %8291 = vmatprep.subr.bf16.mxu1 %v9435_v30  ;;  %v10496_v16 = vpop.f32.mrb[5].mxu1 }
 0x39f   : > { %8293 = vmatpush1.bf16.msra.mxu1 %v10485_v12  ;;  %v10501_v18 = vpop.f32.mrb[6].mxu1 }
 0x3a0   : > { %8294 = vmatprep.subr.bf16.mxu1 %v9435_v30  ;;  %v10510_v21 = vpop.f32.mrb[7].mxu1 }
 0x3a3   : > { %8296 = vmatpush1.bf16.msra.mxu1 %v10499_v17 }
 0x3a4   : > { %8297 = vmatprep.subr.bf16.mxu1 %v9435_v30 }
 0x3a7   : > { %8299 = vmatpush1.bf16.msra.mxu1 %v10513_v22 }
 0x3a8   : > { %8300 = vmatprep.subr.bf16.mxu1 %v9435_v30 }
 0x3ab   : > { %8302 = vmatpush1.bf16.msra.mxu1 %v10523_v25 }
 0x3ac   : > { %8303 = vmatprep.subr.bf16.mxu1 %v9435_v30 }
 0x3af   : > { %8305 = vmatpush1.bf16.msra.mxu1 %v10533_v28 }
 0x3b0   : > { %8306 = vmatprep.subr.bf16.mxu1 %v9435_v30 }
 0x3b3   : > { %8308 = vmatpush1.bf16.msra.mxu1 %v8307_v33 }
 0x3b4   : > { %8309 = vmatprep.subr.bf16.mxu1 %v9435_v30 }
 0x3b7   : > { %8311 = vmatpush1.bf16.msra.mxu1 %v8310_v38 }
 0x3b8   : > { %8312 = vmatprep.subr.bf16.mxu1 %v9435_v30 }
 0x3bb   : > { %8314 = vmatpush1.bf16.msra.mxu1 %v8313_v42 }
 0x3bc   : > { %2878 = vmatprep.subr.mxu1 %v9433_v0 }
 0x3bf   : > { %2879 = vmatpush1.msra.mxu1 %v2577_v44 }
 0x3c0   : > { %2903 = vmatmul.mubr.f32.vlgmr.msra.gmra.mrb[12].mxu1 %v2660_v2  ;;  %8315 = vmatprep.subr.bf16.mxu1 %v9435_v30 }
 0x3c1   : > { %7557 = vmatprep.mubr.msk.f32.mxu1 %vm2756_vm5, %v2668_v9  ;;  %8317 = vmatpush1.bf16.msra.mxu1 %v10349_v29 }
 0x3c2   : > { %8318 = vmatprep.subr.bf16.mxu1 %v9435_v30 }
 0x3c4   : > { %2908 = vmatmul.mubr.f32.gmra.mrb[14].mxu1 %v2666_v7 }
 0x3c5   : > { %8320 = vmatpush1.bf16.msra.mxu1 %v10364_v34  ;;  %7558 = vmatprep.mubr.msk.f32.mxu1 %vm2756_vm5, %v10496_v16 }
 0x3c6   : > { %8321 = vmatprep.subr.bf16.mxu1 %v9435_v30 }
 0x3c9   : > { %8323 = vmatpush1.bf16.msra.mxu1 %v10375_v37  ;;  %v6064_v37 = vld [vmem:[%s11831_s8] sm:$0x3] }
 0x3ca   : > { %8324 = vmatprep.subr.bf16.mxu1 %v9435_v30 }
 0x3cd   : > { %8326 = vmatpush1.bf16.msra.mxu1 %v10385_v40  ;;  %v7563_v40 = vld [vmem:[%s11830_s7 + $0x28] sm:$0xff] }
 0x3ce   : > { %8327 = vmatprep.subr.bf16.mxu1 %v9435_v30 }
 0x3d1   : > { %8329 = vmatpush1.bf16.msra.mxu1 %v10395_v43  ;;  %v7565_v43 = vld [vmem:[%s11830_s7 + $0x38] sm:$0x3f] }
 0x3d2   : > { %8330 = vmatprep.subr.bf16.mxu1 %v9435_v30 }
 0x3d5   : > { %8332 = vmatpush1.bf16.msra.mxu1 %v10405_v46  ;;  %v8375_v46 = vpack.c.bf16 %v7565_v43, %v7563_v40  ;;  %v7590_v43 = vld [vmem:[%s11830_s7 + $0x80] sm:$0xff] }
 0x3d6   : > { %8333 = vmatprep.subr.bf16.mxu1 %v9435_v30 }
 0x3d9   : > { %8335 = vmatpush1.bf16.msra.mxu1 %v10415_v49 }
 0x3da   : > { %8336 = vmatprep.subr.bf16.mxu1 %v9435_v30 }
 0x3dd   : > { %8338 = vmatpush1.bf16.msra.mxu1 %v10425_v52  ;;  %v3078_v52 = vld [vmem:[%s11830_s7 + $0x18] sm:$0x3f] }
 0x3de   : > { %8339 = vmatprep.subr.bf16.mxu1 %v9435_v30  ;;  %v8381_v55 = vpack.c.bf16 %v3078_v52, %v3076_v51  ;;  %v7600_v51 = vld [vmem:[%s11830_s7 + $0xb0] sm:$0x3f]  ;;  %v7607_v52 = vld [vmem:[%s11830_s7 + $0xc8] sm:$0xff] }
 0x3e1   : > { %8341 = vmatpush1.bf16.msra.mxu1 %v10435_v58 }
 0x3e2   : > { %8342 = vmatprep.subr.bf16.mxu1 %v9435_v30 }
 0x3e5   : > { %8344 = vmatpush1.bf16.msra.mxu1 %v10445_v61 }
 0x3e6   : > { %2961 = vmatprep.subr.mxu1 %v9433_v0 }
 0x3e9   : > { %2962 = vmatpush1.msra.mxu1 %v10453_v62 }
 0x3ea   : > { %2986 = vmatmul.mubr.f32.vlgmr.msra.gmra.mrb[16].mxu1 %v10487_v13  ;;  %8345 = vmatprep.subr.bf16.mxu1 %v9435_v30 }
 0x3eb   : > { %8347 = vmatpush1.bf16.msra.mxu1 %v10463_v3  ;;  %7559 = vmatprep.mubr.msk.f32.mxu1 %vm2756_vm5, %v10510_v21 }
 0x3ec   : > { %8348 = vmatprep.subr.bf16.mxu1 %v9435_v30 }
 0x3ee   : > { %2991 = vmatmul.mubr.f32.gmra.mrb[18].mxu1 %v10501_v18 }
 0x3ef   : > { %8350 = vmatpush1.bf16.msra.mxu1 %v10473_v8  ;;  %7560 = vmatprep.mubr.msk.f32.mxu1 %vm2756_vm5, %v10496_v16 }
 0x3f0   : > { %8351 = vmatprep.subr.bf16.mxu1 %v9435_v30 }
 0x3f3   : > { %8353 = vmatpush1.bf16.msra.mxu1 %v10485_v12  ;;  %v3075_v12 = vld [vmem:[%s11830_s7] sm:$0xff] }
 0x3f4   : > { %8354 = vmatprep.subr.bf16.mxu1 %v9435_v30 }
 0x3f7   : > { %8356 = vmatpush1.bf16.msra.mxu1 %v10499_v17 }
 0x3f8   : > { %8357 = vmatprep.subr.bf16.mxu1 %v9435_v30 }
 0x3fb   : > { %8359 = vmatpush1.bf16.msra.mxu1 %v10513_v22 }
 0x3fc   : > { %8360 = vmatprep.subr.bf16.mxu1 %v9435_v30 }
 0x3ff   : > { %8362 = vmatpush1.bf16.msra.mxu1 %v10523_v25 }
 0x400   : > { %8363 = vmatprep.subr.bf16.mxu1 %v9435_v30 }
 0x403   : > { %8365 = vmatpush1.bf16.msra.mxu1 %v10533_v28 }
 0x404   : > { %8366 = vmatprep.subr.bf16.mxu1 %v9435_v30 }
 0x407   : > { %8368 = vmatpush1.bf16.msra.mxu1 %v8307_v33  ;;  %v7585_v33 = vld [vmem:[%s11830_s7 + $0x78] sm:$0x3f] }
 0x408   : > { %8369 = vmatprep.subr.bf16.mxu1 %v9435_v30 }
 0x40b   : > { %8371 = vmatpush1.bf16.msra.mxu1 %v8310_v38  ;;  %v8393_v38 = vpack.c.bf16 %v7585_v33, %v7583_v32  ;;  %v7647_v32 = vld [vmem:[%s11830_s7 + $0x168] sm:$0xff]  ;;  %v7649_v33 = vld [vmem:[%s11830_s7 + $0x178] sm:$0x3f] }
 0x40c   : > { %8372 = vmatprep.subr.bf16.mxu1 %v9435_v30 }
 0x40f   : > { %8374 = vmatpush1.bf16.msra.mxu1 %v8313_v42  ;;  %v7584_v42 = vld [vmem:[%s11830_s7 + $0x70] sm:$0x3f] }
 0x410   : > { %3036 = vmatprep.subr.mxu1 %v9433_v0 }
 0x413   : > { %3037 = vmatpush1.msra.mxu1 %v2577_v44  ;;  %v7591_v44 = vld [vmem:[%s11830_s7 + $0x88] sm:$0xff] }
 0x414   : > { %3061 = vmatmul.mubr.f32.vlgmr.msra.gmra.mrb[20].mxu1 %v10487_v13  ;;  %8377 = vmatprep.subr.msk.bf16.mxu1 %vm10618_vm7, %v8375_v46  ;;  %v3077_v13 = vld [vmem:[%s11830_s7 + $0x10] sm:$0x3f]  ;;  %v7599_v46 = vld [vmem:[%s11830_s7 + $0xa8] sm:$0xff] }
 0x415   : > { %7561 = vmatprep.mubr.msk.f32.mxu1 %vm2756_vm5, %v10510_v21  ;;  %8380 = vmatpush1.bf16.msk.msra.mxu1 %vm10618_vm7, %v8378_v50  ;;  %v8384_v20 = vpack.c.bf16 %v3077_v13, %v3075_v12  ;;  %v7598_v50 = vld [vmem:[%s11830_s7 + $0xa0] sm:$0xff]  ;;  %v7624_v13 = vld [vmem:[%s11830_s7 + $0x110] sm:$0x3f] }
 0x416   : > { %8383 = vmatprep.subr.msk.bf16.mxu1 %vm10618_vm7, %v8381_v55  ;;  %v7609_v55 = vld [vmem:[%s11830_s7 + $0xd8] sm:$0x3f]  ;;  %v7622_v12 = vld [vmem:[%s11830_s7 + $0x100] sm:$0xff] }
 0x418   : > { %3066 = vmatmul.mubr.f32.gmra.mrb[22].mxu1 %v10501_v18 }
 0x419   : > { %3166 = vmatprep.mubr.f32.mxu1 %v9433_v0 }
 0x469   : > { %v2829_v29 = vpop.f32.mrb[8].mxu1 }
 0x46a   : > { %v2831_v34 = vpop.f32.mrb[9].mxu1 }
 0x46b   : > { %v8396_v34 = vpack.c.bf16 %v7584_v42, %v7582_v41  ;;  %v7648_v41 = vld [vmem:[%s11830_s7 + $0x170] sm:$0x3f] }
 0x46d   : > { %v2834_v45 = vpop.f32.mrb[10].mxu1 }
 0x46e   : > { %v2836_v49 = vpop.f32.mrb[11].mxu1 }
 0x46f   : > { %v8405_v49 = vpack.c.bf16 %v7601_v47, %v7599_v46  ;;  %v7656_v46 = vld [vmem:[%s11830_s7 + $0x190] sm:$0x3f] }
 0x493   : > { %v2904_v57 = vpop.f32.mrb[12].mxu1 }
 0x494   : > { %v2913_v58 = vmax.f32 %v2829_v29, %v2904_v57  ;;  %v2906_v59 = vpop.f32.mrb[13].mxu1  ;;  %v7593_v29 = vld [vmem:[%s11830_s7 + $0x98] sm:$0x3f]  ;;  %v8408_v57 = vpack.c.bf16 %v7600_v51, %v7598_v50 }
 0x495   : > { %v8399_v40 = vpack.c.bf16 %v7593_v29, %v7591_v44  ;;  %v7606_v59 = vld [vmem:[%s11830_s7 + $0xc0] sm:$0xff]  ;;  %v7655_v44 = vld [vmem:[%s11830_s7 + $0x188] sm:$0xff]  ;;  %v7657_v29 = vld [vmem:[%s11830_s7 + $0x198] sm:$0x3f] }
 0x497   : > { %v2909_v60 = vpop.f32.mrb[14].mxu1 }
 0x498   : > { %v2914_v61 = vmax.f32 %v2834_v45, %v2909_v60  ;;  %v2911_v62 = vpop.f32.mrb[15].mxu1  ;;  %v7592_v45 = vld [vmem:[%s11830_s7 + $0x90] sm:$0x3f] }
 0x499   : > { %v8402_v48 = vpack.c.bf16 %v7592_v45, %v7590_v43  ;;  %v7608_v60 = vld [vmem:[%s11830_s7 + $0xd0] sm:$0x3f]  ;;  %v7617_v62 = vld [vmem:[%s11830_s7 + $0xf8] sm:$0x3f]  ;;  %v7654_v45 = vld [vmem:[%s11830_s7 + $0x180] sm:$0xff] }
 0x49a   : > { %v8450_v50 = vpack.c.bf16 %v7656_v46, %v7654_v45  ;;  %v7719_v46 = vld [vmem:[%s11830_s7 + $0x288] sm:$0xff] }
 0x4bd   : > { %v2987_v63 = vpop.f32.mrb[16].mxu1 }
 0x4be   : > { %v2989_v1 = vpop.f32.mrb[17].mxu1 }
 0x4c1   : > { %v2992_v2 = vpop.f32.mrb[18].mxu1 }
 0x4c2   : > { %v2994_v3 = vpop.f32.mrb[19].mxu1 }
 0x4c3   : > { %v7614_v3 = vld [vmem:[%s11830_s7 + $0xe0] sm:$0xff] }
 0x4e7   : > { %v3062_v4 = vpop.f32.mrb[20].mxu1 }
 0x4e8   : > { %v3071_v5 = vmax.f32 %v2987_v63, %v3062_v4  ;;  %v3064_v6 = vpop.f32.mrb[21].mxu1  ;;  %v8414_v63 = vpack.c.bf16 %v7608_v60, %v7606_v59  ;;  %v7616_v4 = vld [vmem:[%s11830_s7 + $0xf0] sm:$0x3f]  ;;  %v7671_v59 = vld [vmem:[%s11830_s7 + $0x1c8] sm:$0xff]  ;;  %v7673_v60 = vld [vmem:[%s11830_s7 + $0x1d8] sm:$0x3f] }
 0x4e9   : > { %v7623_v6 = vld [vmem:[%s11830_s7 + $0x108] sm:$0xff] }
 0x4ea   : > { %v10646_v7 = vmax.f32 %v2913_v58, %v3071_v5  ;;  %v8411_v58 = vpack.c.bf16 %v7609_v55, %v7607_v52  ;;  %v7662_v55 = vld [vmem:[%s11830_s7 + $0x1a0] sm:$0xff] }
 0x4eb   : > { %v3067_v8 = vpop.f32.mrb[22].mxu1 }
 0x4ec   : > { %v3072_v9 = vmax.f32 %v2992_v2, %v3067_v8  ;;  %3569 = vrot.lane.b32.xlu0 %v10646_v7, %s9436_s10  ;;  %v3069_v10 = vpop.f32.mrb[23].mxu1  ;;  %v3087_v16 = vrot.slane %v10646_v7, 1  ;;  %v3271_v18 = vrot.slane %v10646_v7, 2  ;;  %v3371_v25 = vrot.slane %v10646_v7, 3 }
 0x4ed   : > { %v3470_v35 = vrot.slane %v10646_v7, 4  ;;  %v8420_v8 = vpack.c.bf16 %v7616_v4, %v7614_v3  ;;  %v7679_v4 = vld [vmem:[%s11830_s7 + $0x1e8] sm:$0xff] }
 0x4ee   : > { %v10650_v11 = vmax.f32 %v2914_v61, %v3072_v9  ;;  %v7615_v61 = vld [vmem:[%s11830_s7 + $0xe8] sm:$0xff] }
 0x4ef   : > { %v8417_v1 = vpack.c.bf16 %v7617_v62, %v7615_v61  ;;  %v8459_v62 = vpack.c.bf16 %v7673_v60, %v7671_v59 }
 0x4f0   : > { %3571 = vrot.lane.b32.xlu0 %v10650_v11, %s9436_s10  ;;  %v10668_v17 = vrot.slane %v10650_v11, 1  ;;  %v10672_v19 = vrot.slane %v10650_v11, 2  ;;  %v10686_v24 = vrot.slane %v10650_v11, 3  ;;  %v10710_v31 = vrot.slane %v10650_v11, 4 }
 0x4f2   : > { %v10675_v21 = vsel %vm3086_vm8, %v3087_v16, %v10668_v17  ;;  %v10679_v22 = vsel %vm3095_vm6, %v3271_v18, %v10672_v19  ;;  %v10707_v28 = vsel %vm3370_vm10, %v3371_v25, %v10686_v24  ;;  %v10728_v39 = vsel %vm2587_vm1, %v3470_v35, %v10710_v31 }
 0x4f3   : > { %3669 = vrot.lane.b32.xlu1 %v10675_v21, %s9436_s10  ;;  %7568 = vmatmul.mubr.msk.f32.vlgmr.msra.gmra.mrb[24].mxu1 %vm3090_vm9, %v10675_v21  ;;  %v8426_v16 = vpack.c.bf16 %v7624_v13, %v7622_v12  ;;  %v7687_v12 = vld [vmem:[%s11830_s7 + $0x208] sm:$0xff]  ;;  %v7689_v13 = vld [vmem:[%s11830_s7 + $0x218] sm:$0x3f] }
 0x4f4   : > { %3769 = vrot.lane.b32.xlu0 %v10679_v22, %s9436_s10  ;;  %3172 = vmatprep.mubr.f32.mxu1 %v9433_v0 }
 0x4f5   : > { %8386 = vmatpush1.bf16.msk.msra.mxu1 %vm10618_vm7, %v8384_v20  ;;  %v7632_v20 = vld [vmem:[%s11830_s7 + $0x130] sm:$0x3f] }
 0x4f6   : > { %8389 = vmatprep.subr.msk.bf16.mxu1 %vm10618_vm7, %v8387_v23  ;;  %v7641_v23 = vld [vmem:[%s11830_s7 + $0x158] sm:$0x3f] }
 0x4f7   : > { %3671 = vrot.lane.b32.xlu1 %v10668_v17, %s9436_s10  ;;  %7569 = vmatmul.mubr.msk.f32.gmra.mrb[26].mxu1 %vm3090_vm9, %v10668_v17 }
 0x4f8   : > { %3869 = vrot.lane.b32.xlu0 %v10707_v28, %s9436_s10  ;;  %3253 = vmatprep.mubr.f32.mxu1 %v9433_v0 }
 0x4fb   : > { %3771 = vrot.lane.b32.xlu1 %v10672_v19, %s9436_s10  ;;  %7572 = vmatmul.mubr.msk.f32.vlgmr.msra.gmra.mrb[24].mxu1 %vm3090_vm9, %v10646_v7 }
 0x4fc   : > { %3969 = vrot.lane.b32.xlu0 %v10728_v39, %s9436_s10  ;;  %3259 = vmatprep.mubr.f32.mxu1 %v9433_v0 }
 0x4fd   : > { %8392 = vmatpush1.bf16.msk.msra.mxu1 %vm10618_vm7, %v8390_v36  ;;  %v8441_v36 = vpack.c.bf16 %v7649_v33, %v7647_v32 }
 0x4fe   : > { %8395 = vmatprep.subr.msk.bf16.mxu1 %vm10618_vm7, %v8393_v38 }
 0x4ff   : > { %3871 = vrot.lane.b32.xlu1 %v10686_v24, %s9436_s10  ;;  %7573 = vmatmul.mubr.msk.f32.gmra.mrb[26].mxu1 %vm3090_vm9, %v10650_v11 }
 0x500   : > { %4069 = vrot.lane.b32.xlu0 %v10646_v7, %s9437_s22  ;;  %3348 = vmatprep.mubr.f32.mxu1 %v9433_v0 }
 0x503   : > { %3971 = vrot.lane.b32.xlu1 %v10710_v31, %s9436_s10  ;;  %7580 = vmatmul.mubr.msk.f32.vlgmr.msra.gmra.mrb[24].mxu1 %vm3090_vm9, %v10679_v22  ;;  %s11906_s10 = sld [smem:[#allocation26_spill]] }
 0x504   : > { %4169 = vrot.lane.b32.xlu0 %v10675_v21, %s9437_s22  ;;  %3354 = vmatprep.mubr.f32.mxu1 %v9433_v0 }
 0x505   : > { %8398 = vmatpush1.bf16.msk.msra.mxu1 %vm10618_vm7, %v8396_v34 }
 0x506   : > { %8401 = vmatprep.subr.msk.bf16.mxu1 %vm10618_vm7, %v8399_v40  ;;  %v8447_v40 = vpack.c.bf16 %v7657_v29, %v7655_v44 }
 0x507   : > { %4071 = vrot.lane.b32.xlu1 %v10650_v11, %s9437_s22  ;;  %7581 = vmatmul.mubr.msk.f32.gmra.mrb[26].mxu1 %vm3090_vm9, %v10672_v19 }
 0x508   : > { %4269 = vrot.lane.b32.xlu0 %v10679_v22, %s9437_s22  ;;  %3448 = vmatprep.mubr.f32.mxu1 %v9433_v0 }
 0x509   : > { %p11908_p7 = scmp.ne.s32.totalorder %s11906_s10, 0 }
 0x50b   : > { %4171 = vrot.lane.b32.xlu1 %v10668_v17, %s9437_s22  ;;  %7588 = vmatmul.mubr.msk.f32.vlgmr.msra.gmra.mrb[24].mxu1 %vm3090_vm9, %v10707_v28  ;;  %p9346_p8 = pnand %p9345_p4, %p11908_p7 }
 0x50c   : > { %4369 = vrot.lane.b32.xlu0 %v10707_v28, %s9437_s22  ;;  %3454 = vmatprep.mubr.f32.mxu1 %v9433_v0 }
 0x50d   : > { %8404 = vmatpush1.bf16.msk.msra.mxu1 %vm10618_vm7, %v8402_v48  ;;  %v7663_v48 = vld [vmem:[%s11830_s7 + $0x1a8] sm:$0xff]  ;;  %p9347_p11 = pneg %p9346_p8 }
 0x50e   : > { %8407 = vmatprep.subr.msk.bf16.mxu1 %vm10618_vm7, %v8405_v49  ;;  %v7665_v49 = vld [vmem:[%s11830_s7 + $0x1b8] sm:$0x3f] }
 0x50f   : > { %4271 = vrot.lane.b32.xlu1 %v10672_v19, %s9437_s22  ;;  %7589 = vmatmul.mubr.msk.f32.gmra.mrb[26].mxu1 %vm3090_vm9, %v10686_v24  ;;  %v8453_v51 = vpack.c.bf16 %v7665_v49, %v7663_v48 }
 0x510   : > { %4469 = vrot.lane.b32.xlu0 %v10728_v39, %s9437_s22  ;;  %3547 = vmatprep.mubr.f32.mxu1 %v9433_v0 }
 0x513   : > { %4371 = vrot.lane.b32.xlu1 %v10686_v24, %s9437_s22  ;;  %7596 = vmatmul.mubr.msk.f32.vlgmr.msra.gmra.mrb[24].mxu1 %vm3090_vm9, %v10728_v39 }
 0x514   : > { %4569 = vrot.lane.b32.xlu0 %v10646_v7, %s9438_s23  ;;  %3553 = vmatprep.mubr.f32.mxu1 %v9433_v0 }
 0x515   : > { %8410 = vmatpush1.bf16.msk.msra.mxu1 %vm10618_vm7, %v8408_v57  ;;  %v7664_v57 = vld [vmem:[%s11830_s7 + $0x1b0] sm:$0x3f] }
 0x516   : > { %8413 = vmatprep.subr.msk.bf16.mxu1 %vm10618_vm7, %v8411_v58  ;;  %v8456_v61 = vpack.c.bf16 %v7664_v57, %v7662_v55  ;;  %v7727_v57 = vld [vmem:[%s11830_s7 + $0x2a8] sm:$0xff] }
 0x517   : > { %4471 = vrot.lane.b32.xlu1 %v10710_v31, %s9437_s22  ;;  %7597 = vmatmul.mubr.msk.f32.gmra.mrb[26].mxu1 %vm3090_vm9, %v10710_v31  ;;  %s9439_s22 = smov 72  }
 0x518   : > { %4669 = vrot.lane.b32.xlu0 %v10675_v21, %s9438_s23  ;;  %3647 = vmatprep.mubr.f32.mxu1 %v9433_v0 }
 0x51b   : > { %4571 = vrot.lane.b32.xlu1 %v10650_v11, %s9438_s23 }
 0x51c   : > { %4769 = vrot.lane.b32.xlu0 %v10679_v22, %s9438_s23 }
 0x51f   : > { %4671 = vrot.lane.b32.xlu1 %v10668_v17, %s9438_s23 }
 0x520   : > { %4869 = vrot.lane.b32.xlu0 %v10707_v28, %s9438_s23 }
 0x523   : > { %4771 = vrot.lane.b32.xlu1 %v10672_v19, %s9438_s23 }
 0x524   : > { %4969 = vrot.lane.b32.xlu0 %v10728_v39, %s9438_s23 }
 0x527   : > { %4871 = vrot.lane.b32.xlu1 %v10686_v24, %s9438_s23 }
 0x528   : > { %5069 = vrot.lane.b32.xlu0 %v10646_v7, %s9439_s22 }
 0x52b   : > { %4971 = vrot.lane.b32.xlu1 %v10710_v31, %s9438_s23  ;;  %s11903_s23 = sld [smem:[#allocation34_spill]] }
 0x52c   : > { %5169 = vrot.lane.b32.xlu0 %v10675_v21, %s9439_s22 }
 0x52f   : > { %5071 = vrot.lane.b32.xlu1 %v10650_v11, %s9439_s22 }
 0x530   : > { %5269 = vrot.lane.b32.xlu0 %v10679_v22, %s9439_s22 }
 0x533   : > { %5171 = vrot.lane.b32.xlu1 %v10668_v17, %s9439_s22 }
 0x534   : > { %5369 = vrot.lane.b32.xlu0 %v10707_v28, %s9439_s22 }
 0x537   : > { %5271 = vrot.lane.b32.xlu1 %v10672_v19, %s9439_s22 }
 0x538   : > { %5469 = vrot.lane.b32.xlu0 %v10728_v39, %s9439_s22 }
 0x53b   : > { %5371 = vrot.lane.b32.xlu1 %v10686_v24, %s9439_s22 }
 0x53c   : > { %5569 = vrot.lane.b32.xlu0 %v10646_v7, %s9440_s30  ;;  %v7625_v7 = vld [vmem:[%s11830_s7 + $0x118] sm:$0x3f] }
 0x53d   : > { %v8423_v10 = vpack.c.bf16 %v7625_v7, %v7623_v6 }
 0x53f   : > { %5471 = vrot.lane.b32.xlu1 %v10710_v31, %s9439_s22  ;;  %s9350_s22 = scalar_lea.vmem %s9349_s24, 32 }
 0x540   : > { %5669 = vrot.lane.b32.xlu0 %v10675_v21, %s9440_s30  ;;  %p9352_p1 = scmp.lt.s32.totalorder %s9350_s22, %s9344_s2 }
 0x542   : > { %p9353_p0 = por %p9352_p1, %p9351_p13 }
 0x543   : > { %5571 = vrot.lane.b32.xlu1 %v10650_v11, %s9440_s30 }
 0x544   : > { %5769 = vrot.lane.b32.xlu0 %v10679_v22, %s9440_s30  ;;  %v7639_v22 = vld [vmem:[%s11830_s7 + $0x148] sm:$0xff]  ;;  %p9354_p6 = pnand %p9353_p0, %p9347_p11 }
 0x545   : > { %v8435_v25 = vpack.c.bf16 %v7641_v23, %v7639_v22 }
 0x547   : > { %5671 = vrot.lane.b32.xlu1 %v10668_v17, %s9440_s30  ;;  %v8429_v17 = vpack.c.bf16 %v7633_v15, %v7631_v14  ;;  %v8471_v15 = vpack.c.bf16 %v7689_v13, %v7687_v12 }
 0x548   : > { %5869 = vrot.lane.b32.xlu0 %v10707_v28, %s9440_s30  ;;  %v7640_v28 = vld [vmem:[%s11830_s7 + $0x150] sm:$0x3f] }
 0x549   : > { %v8438_v35 = vpack.c.bf16 %v7640_v28, %v7638_v27  ;;  %v7703_v28 = vld [vmem:[%s11830_s7 + $0x248] sm:$0xff] }
 0x54b   : > { %5771 = vrot.lane.b32.xlu1 %v10672_v19, %s9440_s30  ;;  %v7630_v19 = vld [vmem:[%s11830_s7 + $0x120] sm:$0xff] }
 0x54c   : > { %5969 = vrot.lane.b32.xlu0 %v10728_v39, %s9440_s30  ;;  %v7646_v39 = vld [vmem:[%s11830_s7 + $0x160] sm:$0xff] }
 0x54d   : > { %v8444_v34 = vpack.c.bf16 %v7648_v41, %v7646_v39  ;;  %v7711_v41 = vld [vmem:[%s11830_s7 + $0x268] sm:$0xff] }
 0x54f   : > { %5871 = vrot.lane.b32.xlu1 %v10686_v24, %s9440_s30  ;;  %v8432_v24 = vpack.c.bf16 %v7632_v20, %v7630_v19  ;;  %v7695_v20 = vld [vmem:[%s11830_s7 + $0x228] sm:$0xff] }
 0x553   : > { %5971 = vrot.lane.b32.xlu1 %v10710_v31, %s9440_s30 }
 0x55e   : > { %v3570_v2 = vpop.permute.xlu0 %3569 }
 0x55f   : > { %7604 = vmatmul.mubr.msk.f32.vlgmr.msra.gmra.mrb[24].mxu1 %vm3090_vm9, %v3570_v2  ;;  %v7672_v2 = vld [vmem:[%s11830_s7 + $0x1d0] sm:$0x3f] }
 0x560   : > { %3653 = vmatprep.mubr.f32.mxu1 %v9433_v0  ;;  %8416 = vmatpush1.bf16.msk.msra.mxu1 %vm10618_vm7, %v8414_v63 }
 0x561   : > { %8419 = vmatprep.subr.msk.bf16.mxu1 %vm10618_vm7, %v8417_v1  ;;  %v7670_v1 = vld [vmem:[%s11830_s7 + $0x1c0] sm:$0xff] }
 0x562   : > { %v3572_v5 = vpop.permute.xlu0 %3571  ;;  %v8462_v6 = vpack.c.bf16 %v7672_v2, %v7670_v1  ;;  %v7735_v2 = vld [vmem:[%s11830_s7 + $0x2c8] sm:$0xff] }
 0x563   : > { %7605 = vmatmul.mubr.msk.f32.gmra.mrb[26].mxu1 %vm3090_vm9, %v3572_v5  ;;  %v7681_v5 = vld [vmem:[%s11830_s7 + $0x1f8] sm:$0x3f] }
 0x564   : > { %3747 = vmatprep.mubr.f32.mxu1 %v9433_v0  ;;  %v8465_v7 = vpack.c.bf16 %v7681_v5, %v7679_v4 }
 0x565   : > { %v3670_v9 = vpop.permute.xlu1 %3669 }
 0x566   : > { %v3770_v18 = vpop.permute.xlu0 %3769 }
 0x567   : > { %7612 = vmatmul.mubr.msk.f32.vlgmr.msra.gmra.mrb[24].mxu1 %vm3090_vm9, %v3670_v9  ;;  %v7678_v9 = vld [vmem:[%s11830_s7 + $0x1e0] sm:$0xff] }
 0x568   : > { %3753 = vmatprep.mubr.f32.mxu1 %v9433_v0  ;;  %8422 = vmatpush1.bf16.msk.msra.mxu1 %vm10618_vm7, %v8420_v8 }
 0x569   : > { %v3672_v11 = vpop.permute.xlu1 %3671  ;;  %8425 = vmatprep.subr.msk.bf16.mxu1 %vm10618_vm7, %v8423_v10  ;;  %v7680_v10 = vld [vmem:[%s11830_s7 + $0x1f0] sm:$0x3f] }
 0x56a   : > { %v3870_v26 = vpop.permute.xlu0 %3869  ;;  %v8468_v14 = vpack.c.bf16 %v7680_v10, %v7678_v9  ;;  %v7743_v10 = vld [vmem:[%s11830_s7 + $0x2e8] sm:$0xff] }
 0x56b   : > { %7613 = vmatmul.mubr.msk.f32.gmra.mrb[26].mxu1 %vm3090_vm9, %v3672_v11 }
 0x56c   : > { %3847 = vmatprep.mubr.f32.mxu1 %v9433_v0 }
 0x56d   : > { %v3772_v21 = vpop.permute.xlu1 %3771 }
 0x56e   : > { %v3970_v38 = vpop.permute.xlu0 %3969 }
 0x56f   : > { %7620 = vmatmul.mubr.msk.f32.vlgmr.msra.gmra.mrb[24].mxu1 %vm3090_vm9, %v3770_v18  ;;  %v7688_v18 = vld [vmem:[%s11830_s7 + $0x210] sm:$0x3f] }
 0x570   : > { %3853 = vmatprep.mubr.f32.mxu1 %v9433_v0  ;;  %8428 = vmatpush1.bf16.msk.msra.mxu1 %vm10618_vm7, %v8426_v16 }
 0x571   : > { %8431 = vmatprep.subr.msk.bf16.mxu1 %vm10618_vm7, %v8429_v17  ;;  %v3872_v31 = vpop.permute.xlu1 %3871  ;;  %v7686_v17 = vld [vmem:[%s11830_s7 + $0x200] sm:$0xff] }
 0x572   : > { %v4070_v43 = vpop.permute.xlu0 %4069  ;;  %v8474_v22 = vpack.c.bf16 %v7688_v18, %v7686_v17  ;;  %v7751_v18 = vld [vmem:[%s11830_s7 + $0x308] sm:$0xff] }
 0x573   : > { %7621 = vmatmul.mubr.msk.f32.gmra.mrb[26].mxu1 %vm3090_vm9, %v3772_v21  ;;  %v7697_v21 = vld [vmem:[%s11830_s7 + $0x238] sm:$0x3f] }
 0x574   : > { %3947 = vmatprep.mubr.f32.mxu1 %v9433_v0  ;;  %v8477_v23 = vpack.c.bf16 %v7697_v21, %v7695_v20 }
 0x575   : > { %v3972_v42 = vpop.permute.xlu1 %3971 }
 0x576   : > { %v4170_v52 = vpop.permute.xlu0 %4169 }
 0x577   : > { %7628 = vmatmul.mubr.msk.f32.vlgmr.msra.gmra.mrb[24].mxu1 %vm3090_vm9, %v3870_v26  ;;  %v7696_v26 = vld [vmem:[%s11830_s7 + $0x230] sm:$0x3f] }
 0x578   : > { %3953 = vmatprep.mubr.f32.mxu1 %v9433_v0  ;;  %8434 = vmatpush1.bf16.msk.msra.mxu1 %vm10618_vm7, %v8432_v24 }
 0x579   : > { %8437 = vmatprep.subr.msk.bf16.mxu1 %vm10618_vm7, %v8435_v25  ;;  %v4072_v47 = vpop.permute.xlu1 %4071  ;;  %v7694_v25 = vld [vmem:[%s11830_s7 + $0x220] sm:$0xff] }
 0x57a   : > { %v4270_v63 = vpop.permute.xlu0 %4269  ;;  %v8480_v32 = vpack.c.bf16 %v7696_v26, %v7694_v25  ;;  %v7759_v26 = vld [vmem:[%s11830_s7 + $0x328] sm:$0xff] }
 0x57b   : > { %7629 = vmatmul.mubr.msk.f32.gmra.mrb[26].mxu1 %vm3090_vm9, %v3872_v31  ;;  %v7705_v31 = vld [vmem:[%s11830_s7 + $0x258] sm:$0x3f] }
 0x57c   : > { %4047 = vmatprep.mubr.f32.mxu1 %v9433_v0  ;;  %v8483_v33 = vpack.c.bf16 %v7705_v31, %v7703_v28 }
 0x57d   : > { %v4172_v58 = vpop.permute.xlu1 %4171 }
 0x57e   : > { %v4370_v8 = vpop.permute.xlu0 %4369 }
 0x57f   : > { %7636 = vmatmul.mubr.msk.f32.vlgmr.msra.gmra.mrb[24].mxu1 %vm3090_vm9, %v3970_v38  ;;  %v7704_v38 = vld [vmem:[%s11830_s7 + $0x250] sm:$0x3f] }
 0x580   : > { %4053 = vmatprep.mubr.f32.mxu1 %v9433_v0  ;;  %8440 = vmatpush1.bf16.msk.msra.mxu1 %vm10618_vm7, %v8438_v35 }
 0x581   : > { %8443 = vmatprep.subr.msk.bf16.mxu1 %vm10618_vm7, %v8441_v36  ;;  %v4272_v3 = vpop.permute.xlu1 %4271  ;;  %v7702_v36 = vld [vmem:[%s11830_s7 + $0x240] sm:$0xff] }
 0x582   : > { %v4470_v16 = vpop.permute.xlu0 %4469  ;;  %v8486_v44 = vpack.c.bf16 %v7704_v38, %v7702_v36  ;;  %v7767_v38 = vld [vmem:[%s11830_s7 + $0x348] sm:$0xff] }
 0x583   : > { %7637 = vmatmul.mubr.msk.f32.gmra.mrb[26].mxu1 %vm3090_vm9, %v3972_v42  ;;  %v7713_v42 = vld [vmem:[%s11830_s7 + $0x278] sm:$0x3f] }
 0x584   : > { %4147 = vmatprep.mubr.f32.mxu1 %v9433_v0  ;;  %v8489_v29 = vpack.c.bf16 %v7713_v42, %v7711_v41 }
 0x585   : > { %v4372_v11 = vpop.permute.xlu1 %4371 }
 0x586   : > { %v4570_v24 = vpop.permute.xlu0 %4569 }
 0x587   : > { %7644 = vmatmul.mubr.msk.f32.vlgmr.msra.gmra.mrb[24].mxu1 %vm3090_vm9, %v4070_v43  ;;  %v7712_v43 = vld [vmem:[%s11830_s7 + $0x270] sm:$0x3f] }
 0x588   : > { %4153 = vmatprep.mubr.f32.mxu1 %v9433_v0  ;;  %8446 = vmatpush1.bf16.msk.msra.mxu1 %vm10618_vm7, %v8444_v34 }
 0x589   : > { %8449 = vmatprep.subr.msk.bf16.mxu1 %vm10618_vm7, %v8447_v40  ;;  %v4472_v19 = vpop.permute.xlu1 %4471  ;;  %v7710_v40 = vld [vmem:[%s11830_s7 + $0x260] sm:$0xff] }
 0x58a   : > { %v4670_v35 = vpop.permute.xlu0 %4669  ;;  %v8492_v48 = vpack.c.bf16 %v7712_v43, %v7710_v40  ;;  %v7775_v43 = vld [vmem:[%s11830_s7 + $0x368] sm:$0xff] }
 0x58b   : > { %7645 = vmatmul.mubr.msk.f32.gmra.mrb[26].mxu1 %vm3090_vm9, %v4072_v47  ;;  %v7721_v47 = vld [vmem:[%s11830_s7 + $0x298] sm:$0x3f] }
 0x58c   : > { %4247 = vmatprep.mubr.f32.mxu1 %v9433_v0  ;;  %v8495_v49 = vpack.c.bf16 %v7721_v47, %v7719_v46 }
 0x58d   : > { %v4572_v27 = vpop.permute.xlu1 %4571 }
 0x58e   : > { %v4770_v34 = vpop.permute.xlu0 %4769 }
 0x58f   : > { %7652 = vmatmul.mubr.msk.f32.vlgmr.msra.gmra.mrb[24].mxu1 %vm3090_vm9, %v4170_v52  ;;  %v7720_v52 = vld [vmem:[%s11830_s7 + $0x290] sm:$0x3f] }
 0x590   : > { %4253 = vmatprep.mubr.f32.mxu1 %v9433_v0  ;;  %8452 = vmatpush1.bf16.msk.msra.mxu1 %vm10618_vm7, %v8450_v50 }
 0x591   : > { %8455 = vmatprep.subr.msk.bf16.mxu1 %vm10618_vm7, %v8453_v51  ;;  %v4672_v39 = vpop.permute.xlu1 %4671  ;;  %v7718_v51 = vld [vmem:[%s11830_s7 + $0x280] sm:$0xff] }
 0x592   : > { %v4870_v50 = vpop.permute.xlu0 %4869  ;;  %v8498_v59 = vpack.c.bf16 %v7720_v52, %v7718_v51  ;;  %v7783_v52 = vld [vmem:[%s11830_s7 + $0x388] sm:$0xff] }
 0x593   : > { %7653 = vmatmul.mubr.msk.f32.gmra.mrb[26].mxu1 %vm3090_vm9, %v4172_v58  ;;  %v7729_v58 = vld [vmem:[%s11830_s7 + $0x2b8] sm:$0x3f] }
 0x594   : > { %4347 = vmatprep.mubr.f32.mxu1 %v9433_v0  ;;  %v8501_v60 = vpack.c.bf16 %v7729_v58, %v7727_v57 }
 0x595   : > { %v4772_v45 = vpop.permute.xlu1 %4771 }
 0x597   : > { %7660 = vmatmul.mubr.msk.f32.vlgmr.msra.gmra.mrb[24].mxu1 %vm3090_vm9, %v4270_v63  ;;  %v7728_v63 = vld [vmem:[%s11830_s7 + $0x2b0] sm:$0x3f] }
 0x598   : > { %4353 = vmatprep.mubr.f32.mxu1 %v9433_v0  ;;  %8458 = vmatpush1.bf16.msk.msra.mxu1 %vm10618_vm7, %v8456_v61  ;;  %v4970_v61 = vpop.permute.xlu0 %4969 }
 0x599   : > { %8461 = vmatprep.subr.msk.bf16.mxu1 %vm10618_vm7, %v8459_v62  ;;  %v4872_v55 = vpop.permute.xlu1 %4871  ;;  %v7726_v62 = vld [vmem:[%s11830_s7 + $0x2a0] sm:$0xff] }
 0x59a   : > { %v8504_v4 = vpack.c.bf16 %v7728_v63, %v7726_v62  ;;  %v7791_v63 = vld [vmem:[%s11830_s7 + $0x3a8] sm:$0xff] }
 0x59b   : > { %7661 = vmatmul.mubr.msk.f32.gmra.mrb[26].mxu1 %vm3090_vm9, %v4272_v3  ;;  %v7737_v3 = vld [vmem:[%s11830_s7 + $0x2d8] sm:$0x3f] }
 0x59c   : > { %4447 = vmatprep.mubr.f32.mxu1 %v9433_v0  ;;  %v8507_v5 = vpack.c.bf16 %v7737_v3, %v7735_v2 }
 0x59d   : > { %v4972_v1 = vpop.permute.xlu1 %4971 }
 0x59f   : > { %7668 = vmatmul.mubr.msk.f32.vlgmr.msra.gmra.mrb[24].mxu1 %vm3090_vm9, %v4370_v8  ;;  %v7736_v8 = vld [vmem:[%s11830_s7 + $0x2d0] sm:$0x3f] }
 0x5a0   : > { %4453 = vmatprep.mubr.f32.mxu1 %v9433_v0  ;;  %8464 = vmatpush1.bf16.msk.msra.mxu1 %vm10618_vm7, %v8462_v6  ;;  %v5070_v6 = vpop.permute.xlu0 %5069 }
 0x5a1   : > { %8467 = vmatprep.subr.msk.bf16.mxu1 %vm10618_vm7, %v8465_v7  ;;  %v7734_v7 = vld [vmem:[%s11830_s7 + $0x2c0] sm:$0xff]  ;;  %v5072_v9 = vpop.permute.xlu1 %5071 }
 0x5a2   : > { %v8510_v12 = vpack.c.bf16 %v7736_v8, %v7734_v7 }
 0x5a3   : > { %7669 = vmatmul.mubr.msk.f32.gmra.mrb[26].mxu1 %vm3090_vm9, %v4372_v11  ;;  %v7745_v11 = vld [vmem:[%s11830_s7 + $0x2f8] sm:$0x3f] }
 0x5a4   : > { %4547 = vmatprep.mubr.f32.mxu1 %v9433_v0  ;;  %v8513_v13 = vpack.c.bf16 %v7745_v11, %v7743_v10 }
 0x5a5   : > { %v5172_v17 = vpop.permute.xlu1 %5171 }
 0x5a7   : > { %7676 = vmatmul.mubr.msk.f32.vlgmr.msra.gmra.mrb[24].mxu1 %vm3090_vm9, %v4470_v16  ;;  %v7744_v16 = vld [vmem:[%s11830_s7 + $0x2f0] sm:$0x3f] }
 0x5a8   : > { %4553 = vmatprep.mubr.f32.mxu1 %v9433_v0  ;;  %8470 = vmatpush1.bf16.msk.msra.mxu1 %vm10618_vm7, %v8468_v14  ;;  %v5170_v14 = vpop.permute.xlu0 %5169 }
 0x5a9   : > { %8473 = vmatprep.subr.msk.bf16.mxu1 %vm10618_vm7, %v8471_v15  ;;  %v7742_v15 = vld [vmem:[%s11830_s7 + $0x2e0] sm:$0xff]  ;;  %v5272_v25 = vpop.permute.xlu1 %5271 }
 0x5aa   : > { %v8516_v20 = vpack.c.bf16 %v7744_v16, %v7742_v15  ;;  %v6073_v15 = vrot.slane %v6064_v37, %v2516_v56  ;;  %v6084_v56 = vld [vmem:[%s11834_s11] sm:$0xff] }
 0x5ab   : > { %7677 = vmatmul.mubr.msk.f32.gmra.mrb[26].mxu1 %vm3090_vm9, %v4472_v19  ;;  %v7753_v19 = vld [vmem:[%s11830_s7 + $0x318] sm:$0x3f] }
 0x5ac   : > { %4647 = vmatprep.mubr.f32.mxu1 %v9433_v0  ;;  %v8519_v21 = vpack.c.bf16 %v7753_v19, %v7751_v18 }
 0x5ad   : > { %v5372_v36 = vpop.permute.xlu1 %5371 }
 0x5af   : > { %7684 = vmatmul.mubr.msk.f32.vlgmr.msra.gmra.mrb[24].mxu1 %vm3090_vm9, %v4570_v24  ;;  %v7752_v24 = vld [vmem:[%s11830_s7 + $0x310] sm:$0x3f] }
 0x5b0   : > { %4653 = vmatprep.mubr.f32.mxu1 %v9433_v0  ;;  %8476 = vmatpush1.bf16.msk.msra.mxu1 %vm10618_vm7, %v8474_v22  ;;  %v5270_v22 = vpop.permute.xlu0 %5269 }
 0x5b1   : > { %8479 = vmatprep.subr.msk.bf16.mxu1 %vm10618_vm7, %v8477_v23  ;;  %v7750_v23 = vld [vmem:[%s11830_s7 + $0x300] sm:$0xff]  ;;  %v5472_v40 = vpop.permute.xlu1 %5471 }
 0x5b2   : > { %v8522_v28 = vpack.c.bf16 %v7752_v24, %v7750_v23 }
 0x5b3   : > { %7685 = vmatmul.mubr.msk.f32.gmra.mrb[26].mxu1 %vm3090_vm9, %v4572_v27  ;;  %v7761_v27 = vld [vmem:[%s11830_s7 + $0x338] sm:$0x3f] }
 0x5b4   : > { %4747 = vmatprep.mubr.f32.mxu1 %v9433_v0  ;;  %v8525_v31 = vpack.c.bf16 %v7761_v27, %v7759_v26 }
 0x5b5   : > { %v5572_v51 = vpop.permute.xlu1 %5571 }
 0x5b7   : > { %7692 = vmatmul.mubr.msk.f32.vlgmr.msra.gmra.mrb[24].mxu1 %vm3090_vm9, %v4670_v35  ;;  %v7760_v35 = vld [vmem:[%s11830_s7 + $0x330] sm:$0x3f] }
 0x5b8   : > { %4753 = vmatprep.mubr.f32.mxu1 %v9433_v0  ;;  %8482 = vmatpush1.bf16.msk.msra.mxu1 %vm10618_vm7, %v8480_v32  ;;  %v5370_v32 = vpop.permute.xlu0 %5369 }
 0x5b9   : > { %8485 = vmatprep.subr.msk.bf16.mxu1 %vm10618_vm7, %v8483_v33  ;;  %v7758_v33 = vld [vmem:[%s11830_s7 + $0x320] sm:$0xff]  ;;  %v5672_v62 = vpop.permute.xlu1 %5671 }
 0x5ba   : > { %v8528_v41 = vpack.c.bf16 %v7760_v35, %v7758_v33  ;;  %v6086_v33 = vld [vmem:[%s11834_s11 + $0x10] sm:$0xff]  ;;  %v6087_v35 = vld [vmem:[%s11834_s11 + $0x18] sm:$0xff] }
 0x5bb   : > { %7693 = vmatmul.mubr.msk.f32.gmra.mrb[26].mxu1 %vm3090_vm9, %v4672_v39  ;;  %v7769_v39 = vld [vmem:[%s11830_s7 + $0x358] sm:$0x3f] }
 0x5bc   : > { %4847 = vmatprep.mubr.f32.mxu1 %v9433_v0  ;;  %v8531_v42 = vpack.c.bf16 %v7769_v39, %v7767_v38  ;;  %v6088_v38 = vld [vmem:[%s11834_s11 + $0x20] sm:$0xff]  ;;  %v6089_v39 = vld [vmem:[%s11834_s11 + $0x28] sm:$0xff] }
 0x5bd   : > { %v5772_v7 = vpop.permute.xlu1 %5771 }
 0x5bf   : > { %7700 = vmatmul.mubr.msk.f32.vlgmr.msra.gmra.mrb[24].mxu1 %vm3090_vm9, %v4770_v34  ;;  %v7768_v34 = vld [vmem:[%s11830_s7 + $0x350] sm:$0x3f] }
 0x5c0   : > { %4853 = vmatprep.mubr.f32.mxu1 %v9433_v0  ;;  %8488 = vmatpush1.bf16.msk.msra.mxu1 %vm10618_vm7, %v8486_v44  ;;  %v5470_v44 = vpop.permute.xlu0 %5469 }
 0x5c1   : > { %8491 = vmatprep.subr.msk.bf16.mxu1 %vm10618_vm7, %v8489_v29  ;;  %v7766_v29 = vld [vmem:[%s11830_s7 + $0x340] sm:$0xff]  ;;  %v5872_v10 = vpop.permute.xlu1 %5871 }
 0x5c2   : > { %v8534_v46 = vpack.c.bf16 %v7768_v34, %v7766_v29  ;;  %v6092_v34 = vld [vmem:[%s11834_s11 + $0x40] sm:$0xff] }
 0x5c3   : > { %7701 = vmatmul.mubr.msk.f32.gmra.mrb[26].mxu1 %vm3090_vm9, %v4772_v45  ;;  %v7777_v45 = vld [vmem:[%s11830_s7 + $0x378] sm:$0x3f] }
 0x5c4   : > { %4947 = vmatprep.mubr.f32.mxu1 %v9433_v0  ;;  %v8537_v47 = vpack.c.bf16 %v7777_v45, %v7775_v43  ;;  %v6094_v45 = vld [vmem:[%s11834_s11 + $0x50] sm:$0xff] }
 0x5c7   : > { %7708 = vmatmul.mubr.msk.f32.vlgmr.msra.gmra.mrb[24].mxu1 %vm3090_vm9, %v4870_v50  ;;  %v7776_v50 = vld [vmem:[%s11830_s7 + $0x370] sm:$0x3f] }
 0x5c8   : > { %4953 = vmatprep.mubr.f32.mxu1 %v9433_v0  ;;  %8494 = vmatpush1.bf16.msk.msra.mxu1 %vm10618_vm7, %v8492_v48  ;;  %v5570_v48 = vpop.permute.xlu0 %5569 }
 0x5c9   : > { %8497 = vmatprep.subr.msk.bf16.mxu1 %vm10618_vm7, %v8495_v49  ;;  %v7774_v49 = vld [vmem:[%s11830_s7 + $0x360] sm:$0xff] }
 0x5ca   : > { %v8540_v57 = vpack.c.bf16 %v7776_v50, %v7774_v49  ;;  %v6097_v49 = vld [vmem:[%s11834_s11 + $0x68] sm:$0xff] }
 0x5cb   : > { %7709 = vmatmul.mubr.msk.f32.gmra.mrb[26].mxu1 %vm3090_vm9, %v4872_v55  ;;  %v7785_v55 = vld [vmem:[%s11830_s7 + $0x398] sm:$0x3f] }
 0x5cc   : > { %5047 = vmatprep.mubr.f32.mxu1 %v9433_v0  ;;  %v8543_v58 = vpack.c.bf16 %v7785_v55, %v7783_v52  ;;  %v6099_v52 = vld [vmem:[%s11834_s11 + $0x78] sm:$0xff] }
 0x5cf   : > { %7716 = vmatmul.mubr.msk.f32.vlgmr.msra.gmra.mrb[24].mxu1 %vm3090_vm9, %v4970_v61  ;;  %v7784_v61 = vld [vmem:[%s11830_s7 + $0x390] sm:$0x3f] }
 0x5d0   : > { %5053 = vmatprep.mubr.f32.mxu1 %v9433_v0  ;;  %8500 = vmatpush1.bf16.msk.msra.mxu1 %vm10618_vm7, %v8498_v59  ;;  %v5670_v59 = vpop.permute.xlu0 %5669 }
 0x5d1   : > { %8503 = vmatprep.subr.msk.bf16.mxu1 %vm10618_vm7, %v8501_v60  ;;  %v7782_v60 = vld [vmem:[%s11830_s7 + $0x380] sm:$0xff] }
 0x5d2   : > { %v8546_v2 = vpack.c.bf16 %v7784_v61, %v7782_v60  ;;  %v6102_v60 = vld [vmem:[%s11834_s11 + $0x90] sm:$0xff]  ;;  %v6103_v61 = vld [vmem:[%s11834_s11 + $0x98] sm:$0xff] }
 0x5d3   : > { %7717 = vmatmul.mubr.msk.f32.gmra.mrb[26].mxu1 %vm3090_vm9, %v4972_v1  ;;  %v7793_v1 = vld [vmem:[%s11830_s7 + $0x3b8] sm:$0x3f] }
 0x5d4   : > { %5147 = vmatprep.mubr.f32.mxu1 %v9433_v0  ;;  %v8549_v3 = vpack.c.bf16 %v7793_v1, %v7791_v63  ;;  %v6104_v63 = vld [vmem:[#allocation7] sm:$0xff]  ;;  %v6105_v1 = vld [vmem:[#allocation7 + $0x8] sm:$0xff] }
 0x5d7   : > { %7724 = vmatmul.mubr.msk.f32.vlgmr.msra.gmra.mrb[24].mxu1 %vm3090_vm9, %v5070_v6  ;;  %v7792_v6 = vld [vmem:[%s11830_s7 + $0x3b0] sm:$0x3f] }
 0x5d8   : > { %5153 = vmatprep.mubr.f32.mxu1 %v9433_v0  ;;  %8506 = vmatpush1.bf16.msk.msra.mxu1 %vm10618_vm7, %v8504_v4  ;;  %v5770_v4 = vpop.permute.xlu0 %5769 }
 0x5d9   : > { %8509 = vmatprep.subr.msk.bf16.mxu1 %vm10618_vm7, %v8507_v5  ;;  %v7790_v5 = vld [vmem:[%s11830_s7 + $0x3a0] sm:$0xff] }
 0x5da   : > { %v8552_v8 = vpack.c.bf16 %v7792_v6, %v7790_v5  ;;  %v6106_v5 = vld [vmem:[#allocation7 + $0x10] sm:$0xff]  ;;  %v6107_v6 = vld [vmem:[#allocation7 + $0x18] sm:$0xff] }
 0x5db   : > { %7725 = vmatmul.mubr.msk.f32.gmra.mrb[26].mxu1 %vm3090_vm9, %v5072_v9 }
 0x5dc   : > { %5247 = vmatprep.mubr.f32.mxu1 %v9433_v0  ;;  %v5870_v9 = vpop.permute.xlu0 %5869 }
 0x5df   : > { %7732 = vmatmul.mubr.msk.f32.vlgmr.msra.gmra.mrb[24].mxu1 %vm3090_vm9, %v5170_v14 }
 0x5e0   : > { %5253 = vmatprep.mubr.f32.mxu1 %v9433_v0  ;;  %8512 = vmatpush1.bf16.msk.msra.mxu1 %vm10618_vm7, %v8510_v12  ;;  %v5970_v11 = vpop.permute.xlu0 %5969  ;;  %v5972_v12 = vpop.permute.xlu1 %5971 }
 0x5e1   : > { %8515 = vmatprep.subr.msk.bf16.mxu1 %vm10618_vm7, %v8513_v13  ;;  %v6069_v13 = vrot.slane %v6064_v37, %v2512_v54  ;;  %v6110_v37 = vld [vmem:[#allocation7 + $0x30] sm:$0xff] }
 0x5e3   : > { %7733 = vmatmul.mubr.msk.f32.gmra.mrb[26].mxu1 %vm3090_vm9, %v5172_v17 }
 0x5e4   : > { %5347 = vmatprep.mubr.f32.mxu1 %v9433_v0 }
 0x5e7   : > { %7740 = vmatmul.mubr.msk.f32.vlgmr.msra.gmra.mrb[24].mxu1 %vm3090_vm9, %v5270_v22 }
 0x5e8   : > { %5353 = vmatprep.mubr.f32.mxu1 %v9433_v0  ;;  %8518 = vmatpush1.bf16.msk.msra.mxu1 %vm10618_vm7, %v8516_v20 }
 0x5e9   : > { %8521 = vmatprep.subr.msk.bf16.mxu1 %vm10618_vm7, %v8519_v21 }
 0x5eb   : > { %7741 = vmatmul.mubr.msk.f32.gmra.mrb[26].mxu1 %vm3090_vm9, %v5272_v25 }
 0x5ec   : > { %5447 = vmatprep.mubr.f32.mxu1 %v9433_v0 }
 0x5ef   : > { %7748 = vmatmul.mubr.msk.f32.vlgmr.msra.gmra.mrb[24].mxu1 %vm3090_vm9, %v5370_v32 }
 0x5f0   : > { %5453 = vmatprep.mubr.f32.mxu1 %v9433_v0  ;;  %8524 = vmatpush1.bf16.msk.msra.mxu1 %vm10618_vm7, %v8522_v28  ;;  %v6085_v28 = vld [vmem:[%s11834_s11 + $0x8] sm:$0xff] }
 0x5f1   : > { %8527 = vmatprep.subr.msk.bf16.mxu1 %vm10618_vm7, %v8525_v31  ;;  %v6207_v31 = vld [vmem:[%s11902_s14] sm:$0x1f]  ;;  %v11354_v32 = vpack.c.bf16 %v6085_v28, %v6084_v56  ;;  %s11907_s14 = sld [smem:[#allocation37_spill]] }
 0x5f2   : > { %v6122_v56 = vld [vmem:[#allocation7 + $0x90] sm:$0xff]  ;;  %v6123_v28 = vld [vmem:[#allocation7 + $0x98] sm:$0xff] }
 0x5f3   : > { %7749 = vmatmul.mubr.msk.f32.gmra.mrb[26].mxu1 %vm3090_vm9, %v5372_v36  ;;  %v11364_v36 = vpack.c.bf16 %v6087_v35, %v6086_v33  ;;  %v6572_v33 = vld [vmem:[%s11903_s23 + $0x8] sm:$0xff]  ;;  %v7808_v35 = vld [vmem:[%s11903_s23 + $0x50] sm:$0xff] }
 0x5f4   : > { %5547 = vmatprep.mubr.f32.mxu1 %v9433_v0 }
 0x5f7   : > { %7756 = vmatmul.mubr.msk.f32.vlgmr.msra.gmra.mrb[24].mxu1 %vm3090_vm9, %v5470_v44  ;;  %v6091_v44 = vld [vmem:[%s11834_s11 + $0x38] sm:$0xff]  ;;  %s11781_s28 = scalar_lea.hbm %s11907_s14, %s7856_s26 }
 0x5f8   : > { %5553 = vmatprep.mubr.f32.mxu1 %v9433_v0  ;;  %8530 = vmatpush1.bf16.msk.msra.mxu1 %vm10618_vm7, %v8528_v41  ;;  %v11374_v41 = vpack.c.bf16 %v6089_v39, %v6088_v38  ;;  %v7809_v38 = vld [vmem:[%s11903_s23 + $0x58] sm:$0xff]  ;;  %v6573_v39 = vld [vmem:[%s11903_s23 + $0x10] sm:$0xff] }
 0x5f9   : > { %8533 = vmatprep.subr.msk.bf16.mxu1 %vm10618_vm7, %v8531_v42  ;;  %v6090_v42 = vld [vmem:[%s11834_s11 + $0x30] sm:$0xff] }
 0x5fa   : > { %v11384_v29 = vpack.c.bf16 %v6091_v44, %v6090_v42  ;;  %v8688_v42 = vpack.c.bf16 %v7809_v38, %v7808_v35  ;;  %v7810_v44 = vld [vmem:[%s11903_s23 + $0x60] sm:$0xff]  ;;  %v7840_v38 = vld [vmem:[%s11903_s23 + $0x138] sm:$0xff] }
 0x5fb   : > { %7757 = vmatmul.mubr.msk.f32.gmra.mrb[26].mxu1 %vm3090_vm9, %v5472_v40  ;;  %v6093_v40 = vld [vmem:[%s11834_s11 + $0x48] sm:$0xff] }
 0x5fc   : > { %5647 = vmatprep.mubr.f32.mxu1 %v9433_v0  ;;  %v11394_v43 = vpack.c.bf16 %v6093_v40, %v6092_v34 }
 0x5ff   : > { %7764 = vmatmul.mubr.msk.f32.vlgmr.msra.gmra.mrb[24].mxu1 %vm3090_vm9, %v5570_v48  ;;  %v6096_v48 = vld [vmem:[%s11834_s11 + $0x60] sm:$0xff] }
 0x600   : > { %5653 = vmatprep.mubr.f32.mxu1 %v9433_v0  ;;  %8536 = vmatpush1.bf16.msk.msra.mxu1 %vm10618_vm7, %v8534_v46  ;;  %v6095_v46 = vld [vmem:[%s11834_s11 + $0x58] sm:$0xff]  ;;  %v11414_v50 = vpack.c.bf16 %v6097_v49, %v6096_v48 }
 0x601   : > { %8539 = vmatprep.subr.msk.bf16.mxu1 %vm10618_vm7, %v8537_v47  ;;  %v11404_v47 = vpack.c.bf16 %v6095_v46, %v6094_v45  ;;  %v6576_v45 = vld [vmem:[%s11903_s23 + $0x28] sm:$0xff]  ;;  %v7812_v46 = vld [vmem:[%s11903_s23 + $0x70] sm:$0xff] }
 0x603   : > { %7765 = vmatmul.mubr.msk.f32.gmra.mrb[26].mxu1 %vm3090_vm9, %v5572_v51  ;;  %v6098_v51 = vld [vmem:[%s11834_s11 + $0x70] sm:$0xff] }
 0x604   : > { %5747 = vmatprep.mubr.f32.mxu1 %v9433_v0  ;;  %v11424_v55 = vpack.c.bf16 %v6099_v52, %v6098_v51  ;;  %v6578_v51 = vld [vmem:[%s11903_s23 + $0x38] sm:$0xff]  ;;  %v7814_v52 = vld [vmem:[%s11903_s23 + $0x80] sm:$0xff] }
 0x607   : > { %7772 = vmatmul.mubr.msk.f32.vlgmr.msra.gmra.mrb[24].mxu1 %vm3090_vm9, %v5670_v59 }
 0x608   : > { %5753 = vmatprep.mubr.f32.mxu1 %v9433_v0  ;;  %8542 = vmatpush1.bf16.msk.msra.mxu1 %vm10618_vm7, %v8540_v57  ;;  %v6100_v57 = vld [vmem:[%s11834_s11 + $0x80] sm:$0xff] }
 0x609   : > { %8545 = vmatprep.subr.msk.bf16.mxu1 %vm10618_vm7, %v8543_v58  ;;  %v6101_v58 = vld [vmem:[%s11834_s11 + $0x88] sm:$0xff] }
 0x60a   : > { %v11434_v59 = vpack.c.bf16 %v6101_v58, %v6100_v57 }
 0x60b   : > { %7773 = vmatmul.mubr.msk.f32.gmra.mrb[26].mxu1 %vm3090_vm9, %v5672_v62  ;;  %v11444_v62 = vpack.c.bf16 %v6103_v61, %v6102_v60  ;;  %v6580_v60 = vld [vmem:[%s11903_s23 + $0x48] sm:$0xff] }
 0x60c   : > { %5847 = vmatprep.mubr.f32.mxu1 %v9433_v0 }
 0x60f   : > { %7780 = vmatmul.mubr.msk.f32.vlgmr.msra.gmra.mrb[24].mxu1 %vm3090_vm9, %v5770_v4 }
 0x610   : > { %5853 = vmatprep.mubr.f32.mxu1 %v9433_v0  ;;  %8548 = vmatpush1.bf16.msk.msra.mxu1 %vm10618_vm7, %v8546_v2 }
 0x611   : > { %8551 = vmatprep.subr.msk.bf16.mxu1 %vm10618_vm7, %v8549_v3  ;;  %v11449_v3 = vpack.c.bf16 %v6105_v1, %v6104_v63  ;;  %v7817_v63 = vld [vmem:[%s11903_s23 + $0x98] sm:$0xff] }
 0x613   : > { %7781 = vmatmul.mubr.msk.f32.gmra.mrb[26].mxu1 %vm3090_vm9, %v5772_v7  ;;  %v11453_v7 = vpack.c.bf16 %v6107_v6, %v6106_v5 }
 0x614   : > { %5947 = vmatprep.mubr.f32.mxu1 %v9433_v0 }
 0x617   : > { %7788 = vmatmul.mubr.msk.f32.vlgmr.msra.gmra.mrb[24].mxu1 %vm3090_vm9, %v5870_v9  ;;  %v6108_v9 = vld [vmem:[#allocation7 + $0x20] sm:$0xff] }
 0x618   : > { %5953 = vmatprep.mubr.f32.mxu1 %v9433_v0  ;;  %8554 = vmatpush1.bf16.msk.msra.mxu1 %vm10618_vm7, %v8552_v8 }
 0x619   : > { %8702 = vmatprep.subr.bf16.mxu1 %v9435_v30 }
 0x61b   : > { %7789 = vmatmul.mubr.msk.f32.gmra.mrb[26].mxu1 %vm3090_vm9, %v5872_v10  ;;  %v6109_v10 = vld [vmem:[#allocation7 + $0x28] sm:$0xff] }
 0x61c   : > { %6047 = vmatprep.mubr.f32.mxu1 %v9433_v0 }
 0x61f   : > { %7796 = vmatmul.mubr.msk.f32.vlgmr.msra.gmra.mrb[24].mxu1 %vm3090_vm9, %v5970_v11 }
 0x620   : > { %6053 = vmatprep.mubr.f32.mxu1 %v9433_v0 }
 0x623   : > { %7797 = vmatmul.mubr.msk.f32.gmra.mrb[26].mxu1 %vm3090_vm9, %v5972_v12  ;;  %v11462_v12 = vpack.c.bf16 %v6109_v10, %v6108_v9  ;;  %v7831_v9 = vld [vmem:[%s11903_s23 + $0xf0] sm:$0xff]  ;;  %v7832_v10 = vld [vmem:[%s11903_s23 + $0xf8] sm:$0xff] }
 0x624   : > { %7985 = vmatprep.mubr.msk.f32.mxu1 %vm9441_vm14, %v9433_v0 }
 0x6f2   : > { %v6049_v14 = vpop.f32.mrb[24].mxu1 }
 0x6f3   : > { %v6051_v16 = vpop.f32.mrb[25].mxu1  ;;  %v6076_v17 = vadd.f32 %v6069_v13, %v6049_v14 }
 0x6f4   : > { %v6077_v18 = vadd.f32 %v6073_v15, %v6051_v16  ;;  %v6113_v16 = vld [vmem:[#allocation7 + $0x48] sm:$0xff] }
 0x6f5   : > { %v6080_v23 = vmax.f32 %v6076_v17, 0.0 }
 0x6f6   : > { %v6055_v19 = vpop.f32.mrb[26].mxu1  ;;  %v6081_v25 = vmax.f32 %v6077_v18, 0.0  ;;  %v6114_v18 = vld [vmem:[#allocation7 + $0x50] sm:$0xff] }
 0x6f7   : > { %v6078_v20 = vadd.f32 %v6069_v13, %v6055_v19  ;;  %v6057_v21 = vpop.f32.mrb[27].mxu1  ;;  %v6111_v13 = vld [vmem:[#allocation7 + $0x38] sm:$0xff] }
 0x6f8   : > { %v6079_v22 = vadd.f32 %v6073_v15, %v6057_v21  ;;  %v11466_v14 = vpack.c.bf16 %v6111_v13, %v6110_v37  ;;  %v6112_v15 = vld [vmem:[#allocation7 + $0x40] sm:$0xff]  ;;  %v6115_v19 = vld [vmem:[#allocation7 + $0x58] sm:$0xff] }
 0x6f9   : > { %v6082_v24 = vmax.f32 %v6078_v20, 0.0  ;;  %v8610_v17 = vpack.c.bf16 %v6113_v16, %v6112_v15  ;;  %v8613_v20 = vpack.c.bf16 %v6115_v19, %v6114_v18  ;;  %v6116_v21 = vld [vmem:[#allocation7 + $0x60] sm:$0xff]  ;;  %v7820_v13 = vld [vmem:[%s11903_s23 + $0xa0] sm:$0xff]  ;;  %v8733_v15 = vpack.c.bf16 %v7832_v10, %v7831_v9  ;;  %v7004_v10 = vld [vmem:[%s11904_s25 + $0x38] sm:$0xff] }
 0x6fa   : > { %v6083_v26 = vmax.f32 %v6079_v22, 0.0  ;;  %v6117_v22 = vld [vmem:[#allocation7 + $0x68] sm:$0xff]  ;;  %v7834_v18 = vld [vmem:[%s11903_s23 + $0x108] sm:$0xff] }
 0x6fb   : > { %v8558_v27 = vpack.c.bf16 %v6082_v24, %v6080_v23  ;;  %v8616_v23 = vpack.c.bf16 %v6117_v22, %v6116_v21  ;;  %v6118_v24 = vld [vmem:[#allocation7 + $0x70] sm:$0xff]  ;;  %v7822_v21 = vld [vmem:[%s11903_s23 + $0xb0] sm:$0xff] }
 0x6fc   : > { %v8555_v54 = vpack.c.bf16 %v6083_v26, %v6081_v25  ;;  %v6119_v25 = vld [vmem:[#allocation7 + $0x78] sm:$0xff]  ;;  %v7823_v22 = vld [vmem:[%s11903_s23 + $0xb8] sm:$0xff]  ;;  %v7003_v9 = vld [vmem:[%s11904_s25 + $0x30] sm:$0xff] }
 0x6fd   : > { %v8619_v26 = vpack.c.bf16 %v6119_v25, %v6118_v24  ;;  %v7835_v24 = vld [vmem:[%s11903_s23 + $0x110] sm:$0xff]  ;;  %v7836_v25 = vld [vmem:[%s11903_s23 + $0x118] sm:$0xff] }
 0x6fe   : > { %8557 = vmatprep.subr.msk.bf16.mxu0 %vm8556_vm12, %v8555_v54 }
 0x6ff   : > { %8560 = vmatpush1.bf16.msk.msra.mxu0 %vm8556_vm12, %v8558_v27 }
 0x700   : > { %8563 = vmatprep.subr.msk.bf16.mxu0 %vm8556_vm12, %v8555_v54  ;;  %v6121_v54 = vld [vmem:[#allocation7 + $0x88] sm:$0xff] }
 0x702   : > { %7800 = vmatmul.mubr.msk.f32.vlgmr.msra.gmra.mrb[8].mxu0 %vm6125_vm13, %v6124_v53 }
 0x703   : > { %8566 = vmatpush1.bf16.msk.msra.mxu0 %vm8556_vm12, %v8558_v27  ;;  %6275 = vmatprep.mubr.f32.mxu0 %v9433_v0  ;;  %v6120_v27 = vld [vmem:[#allocation7 + $0x80] sm:$0xff] }
 0x704   : > { %8567 = vmatprep.subr.bf16.mxu0 %v9435_v30  ;;  %v8622_v53 = vpack.c.bf16 %v6121_v54, %v6120_v27  ;;  %v7824_v27 = vld [vmem:[%s11903_s23 + $0xc0] sm:$0xff]  ;;  %v7825_v54 = vld [vmem:[%s11903_s23 + $0xc8] sm:$0xff] }
 0x706   : > { %7803 = vmatmul.mubr.msk.f32.vlgmr.msra.gmra.mrb[10].mxu0 %vm6125_vm13, %v6207_v31  ;;  %v8625_v31 = vpack.c.bf16 %v6123_v28, %v6122_v56  ;;  %v7837_v56 = vld [vmem:[%s11903_s23 + $0x120] sm:$0xff]  ;;  %v7838_v28 = vld [vmem:[%s11903_s23 + $0x128] sm:$0xff] }
 0x707   : > { %8569 = vmatpush1.bf16.msra.mxu0 %v11354_v32  ;;  %v8742_v35 = vpack.c.bf16 %v7838_v28, %v7837_v56  ;;  %v7094_v56 = vld [vmem:[#allocation11 + $0x30] sm:$0xff]  ;;  %v7095_v28 = vld [vmem:[#allocation11 + $0x38] sm:$0xff] }
 0x708   : > { %8570 = vmatprep.subr.bf16.mxu0 %v9435_v30 }
 0x70b   : > { %8572 = vmatpush1.bf16.msra.mxu0 %v11364_v36 }
 0x70c   : > { %8573 = vmatprep.subr.bf16.mxu0 %v9435_v30 }
 0x70f   : > { %8575 = vmatpush1.bf16.msra.mxu0 %v11374_v41 }
 0x710   : > { %8576 = vmatprep.subr.bf16.mxu0 %v9435_v30 }
 0x713   : > { %8578 = vmatpush1.bf16.msra.mxu0 %v11384_v29 }
 0x714   : > { %8579 = vmatprep.subr.bf16.mxu0 %v9435_v30 }
 0x717   : > { %8581 = vmatpush1.bf16.msra.mxu0 %v11394_v43 }
 0x718   : > { %8582 = vmatprep.subr.bf16.mxu0 %v9435_v30 }
 0x71b   : > { %8584 = vmatpush1.bf16.msra.mxu0 %v11404_v47 }
 0x71c   : > { %8585 = vmatprep.subr.bf16.mxu0 %v9435_v30 }
 0x71f   : > { %8587 = vmatpush1.bf16.msra.mxu0 %v11414_v50 }
 0x720   : > { %8588 = vmatprep.subr.bf16.mxu0 %v9435_v30 }
 0x723   : > { %8590 = vmatpush1.bf16.msra.mxu0 %v11424_v55 }
 0x724   : > { %8591 = vmatprep.subr.bf16.mxu0 %v9435_v30 }
 0x727   : > { %8593 = vmatpush1.bf16.msra.mxu0 %v11434_v59 }
 0x728   : > { %8594 = vmatprep.subr.bf16.mxu0 %v9435_v30 }
 0x72b   : > { %8596 = vmatpush1.bf16.msra.mxu0 %v11444_v62 }
 0x72c   : > { %8597 = vmatprep.subr.bf16.mxu0 %v9435_v30 }
 0x7d5   : > { %v6202_v2 = vpop.f32.mrb[8].mxu0 }
 0x7d6   : > { %v6204_v4 = vpop.f32.mrb[9].mxu0 }
 0x7d7   : > { %7804 = vmatprep.mubr.msk.f32.mxu0 %vm717_vm0, %v6204_v4 }
 0x7d8   : > { %6350 = vmatmul.mubr.f32.vlgmr.msra.gmra.mrb[12].mxu0 %v6202_v2 }
 0x7d9   : > { %8599 = vmatpush1.bf16.msra.mxu0 %v11449_v3  ;;  %7805 = vmatprep.mubr.msk.f32.mxu0 %vm717_vm0, %v6204_v4  ;;  %v11456_v8 = vpop.f32.mrb[10].mxu0 }
 0x7da   : > { %8600 = vmatprep.subr.bf16.mxu0 %v9435_v30  ;;  %v11459_v11 = vpop.f32.mrb[11].mxu0 }
 0x7dd   : > { %8602 = vmatpush1.bf16.msra.mxu0 %v11453_v7 }
 0x7de   : > { %8603 = vmatprep.subr.bf16.mxu0 %v9435_v30 }
 0x7e1   : > { %8605 = vmatpush1.bf16.msra.mxu0 %v11462_v12 }
 0x7e2   : > { %8606 = vmatprep.subr.bf16.mxu0 %v9435_v30 }
 0x7e5   : > { %8608 = vmatpush1.bf16.msra.mxu0 %v11466_v14 }
 0x7e6   : > { %8609 = vmatprep.subr.bf16.mxu0 %v9435_v30 }
 0x7e9   : > { %8611 = vmatpush1.bf16.msra.mxu0 %v8610_v17 }
 0x7ea   : > { %8612 = vmatprep.subr.bf16.mxu0 %v9435_v30 }
 0x7ed   : > { %8614 = vmatpush1.bf16.msra.mxu0 %v8613_v20 }
 0x7ee   : > { %8615 = vmatprep.subr.bf16.mxu0 %v9435_v30 }
 0x7f1   : > { %8617 = vmatpush1.bf16.msra.mxu0 %v8616_v23 }
 0x7f2   : > { %8618 = vmatprep.subr.bf16.mxu0 %v9435_v30 }
 0x7f5   : > { %8620 = vmatpush1.bf16.msra.mxu0 %v8619_v26 }
 0x7f6   : > { %8621 = vmatprep.subr.bf16.mxu0 %v9435_v30 }
 0x7f9   : > { %8623 = vmatpush1.bf16.msra.mxu0 %v8622_v53 }
 0x7fa   : > { %8624 = vmatprep.subr.bf16.mxu0 %v9435_v30 }
 0x7fd   : > { %8626 = vmatpush1.bf16.msra.mxu0 %v8625_v31 }
 0x7fe   : > { %8627 = vmatprep.subr.bf16.mxu0 %v9435_v30 }
 0x800   : > { %6420 = vmatmul.mubr.f32.vlgmr.msra.gmra.mrb[14].mxu0 %v6202_v2 }
 0x801   : > { %8629 = vmatpush1.bf16.msra.mxu0 %v11354_v32  ;;  %7806 = vmatprep.mubr.msk.f32.mxu0 %vm717_vm0, %v11459_v11  ;;  %v6571_v32 = vld [vmem:[%s11903_s23] sm:$0xff] }
 0x802   : > { %8630 = vmatprep.subr.bf16.mxu0 %v9435_v30 }
 0x805   : > { %8632 = vmatpush1.bf16.msra.mxu0 %v11364_v36  ;;  %v8703_v36 = vpack.c.bf16 %v6572_v33, %v6571_v32  ;;  %v7826_v32 = vld [vmem:[%s11903_s23 + $0xd0] sm:$0xff]  ;;  %v7827_v33 = vld [vmem:[%s11903_s23 + $0xd8] sm:$0xff] }
 0x806   : > { %8633 = vmatprep.subr.bf16.mxu0 %v9435_v30 }
 0x807   : > { %8704 = vmatpush3.bf16.msra.mxu1 %v8703_v36  ;;  %v7839_v36 = vld [vmem:[%s11903_s23 + $0x130] sm:$0xff] }
 0x808   : > { %8705 = vmatprep.subr.bf16.mxu1 %v9435_v30 }
 0x809   : > { %8635 = vmatpush1.bf16.msra.mxu0 %v11374_v41  ;;  %v6574_v41 = vld [vmem:[%s11903_s23 + $0x18] sm:$0xff] }
 0x80a   : > { %8636 = vmatprep.subr.bf16.mxu0 %v9435_v30  ;;  %v8706_v34 = vpack.c.bf16 %v6574_v41, %v6573_v39  ;;  %v8727_v39 = vpack.c.bf16 %v7827_v33, %v7826_v32  ;;  %v7828_v41 = vld [vmem:[%s11903_s23 + $0xe0] sm:$0xff] }
 0x80c   : > { %8707 = vmatpush3.bf16.msra.mxu1 %v8706_v34  ;;  %v7842_v34 = vld [vmem:[%s11903_s23 + $0x140] sm:$0xff] }
 0x80d   : > { %8638 = vmatpush1.bf16.msra.mxu0 %v11384_v29  ;;  %v7811_v29 = vld [vmem:[%s11903_s23 + $0x68] sm:$0xff]  ;;  %8708 = vmatprep.subr.bf16.mxu1 %v9435_v30 }
 0x80e   : > { %8639 = vmatprep.subr.bf16.mxu0 %v9435_v30  ;;  %v8691_v40 = vpack.c.bf16 %v7811_v29, %v7810_v44  ;;  %v8745_v44 = vpack.c.bf16 %v7840_v38, %v7839_v36 }
 0x811   : > { %8641 = vmatpush1.bf16.msra.mxu0 %v11394_v43  ;;  %v6575_v43 = vld [vmem:[%s11903_s23 + $0x20] sm:$0xff] }
 0x812   : > { %8642 = vmatprep.subr.bf16.mxu0 %v9435_v30  ;;  %v8709_v48 = vpack.c.bf16 %v6576_v45, %v6575_v43 }
 0x814   : > { %8710 = vmatpush3.bf16.msra.mxu1 %v8709_v48  ;;  %v7845_v48 = vld [vmem:[%s11903_s23 + $0x158] sm:$0xff] }
 0x815   : > { %8644 = vmatpush1.bf16.msra.mxu0 %v11404_v47  ;;  %v7813_v47 = vld [vmem:[%s11903_s23 + $0x78] sm:$0xff]  ;;  %8711 = vmatprep.subr.bf16.mxu1 %v9435_v30 }
 0x816   : > { %8645 = vmatprep.subr.bf16.mxu0 %v9435_v30  ;;  %v8694_v49 = vpack.c.bf16 %v7813_v47, %v7812_v46  ;;  %v7844_v47 = vld [vmem:[%s11903_s23 + $0x150] sm:$0xff] }
 0x819   : > { %8647 = vmatpush1.bf16.msra.mxu0 %v11414_v50  ;;  %v6577_v50 = vld [vmem:[%s11903_s23 + $0x30] sm:$0xff] }
 0x81a   : > { %8648 = vmatprep.subr.bf16.mxu0 %v9435_v30  ;;  %v8712_v57 = vpack.c.bf16 %v6578_v51, %v6577_v50  ;;  %v7846_v50 = vld [vmem:[%s11903_s23 + $0x160] sm:$0xff]  ;;  %v7847_v51 = vld [vmem:[%s11903_s23 + $0x168] sm:$0xff] }
 0x81c   : > { %8713 = vmatpush3.bf16.msra.mxu1 %v8712_v57  ;;  %v7849_v57 = vld [vmem:[%s11903_s23 + $0x178] sm:$0xff] }
 0x81d   : > { %8650 = vmatpush1.bf16.msra.mxu0 %v11424_v55  ;;  %v7815_v55 = vld [vmem:[%s11903_s23 + $0x88] sm:$0xff]  ;;  %8714 = vmatprep.subr.bf16.mxu1 %v9435_v30 }
 0x81e   : > { %8651 = vmatprep.subr.bf16.mxu0 %v9435_v30  ;;  %v8697_v58 = vpack.c.bf16 %v7815_v55, %v7814_v52  ;;  %v8754_v52 = vpack.c.bf16 %v7847_v51, %v7846_v50  ;;  %v7848_v55 = vld [vmem:[%s11903_s23 + $0x170] sm:$0xff]  ;;  %v7098_v51 = vld [vmem:[#allocation11 + $0x50] sm:$0xf] }
 0x821   : > { %8653 = vmatpush1.bf16.msra.mxu0 %v11434_v59  ;;  %v6579_v59 = vld [vmem:[%s11903_s23 + $0x40] sm:$0xff] }
 0x822   : > { %8654 = vmatprep.subr.bf16.mxu0 %v9435_v30  ;;  %v8715_v61 = vpack.c.bf16 %v6580_v60, %v6579_v59  ;;  %v7850_v59 = vld [vmem:[%s11903_s23 + $0x180] sm:$0xff]  ;;  %v7851_v60 = vld [vmem:[%s11903_s23 + $0x188] sm:$0xff] }
 0x824   : > { %8716 = vmatpush3.bf16.msra.mxu1 %v8715_v61  ;;  %v8760_v61 = vpack.c.bf16 %v7851_v60, %v7850_v59  ;;  %v7099_v60 = vld [vmem:[#allocation13] sm:$0x1] }
 0x825   : > { %8656 = vmatpush1.bf16.msra.mxu0 %v11444_v62  ;;  %v7816_v62 = vld [vmem:[%s11903_s23 + $0x90] sm:$0xff]  ;;  %8732 = vmatprep.subr.bf16.mxu1 %v9435_v30 }
 0x826   : > { %8657 = vmatprep.subr.bf16.mxu0 %v9435_v30  ;;  %v8700_v1 = vpack.c.bf16 %v7817_v63, %v7816_v62  ;;  %v6997_v63 = vld [vmem:[%s11904_s25] sm:$0xff] }
 0x828   : > { %6494 = vmatmul.mubr.f32.vlgmr.msra.gmra.mrb[16].mxu0 %v11456_v8 }
 0x829   : > { %8659 = vmatpush1.bf16.msra.mxu0 %v11449_v3  ;;  %7807 = vmatprep.mubr.msk.f32.mxu0 %vm717_vm0, %v11459_v11  ;;  %vm7013_vm0 = vcmask 982016  }
 0x82a   : > { %8660 = vmatprep.subr.bf16.mxu0 %v9435_v30 }
 0x82d   : > { %8662 = vmatpush1.bf16.msra.mxu0 %v11453_v7 }
 0x82e   : > { %8663 = vmatprep.subr.bf16.mxu0 %v9435_v30 }
 0x831   : > { %8665 = vmatpush1.bf16.msra.mxu0 %v11462_v12 }
 0x832   : > { %8666 = vmatprep.subr.bf16.mxu0 %v9435_v30 }
 0x835   : > { %8668 = vmatpush1.bf16.msra.mxu0 %v11466_v14  ;;  %v7821_v14 = vld [vmem:[%s11903_s23 + $0xa8] sm:$0xff] }
 0x836   : > { %8669 = vmatprep.subr.bf16.mxu0 %v9435_v30  ;;  %v8718_v19 = vpack.c.bf16 %v7821_v14, %v7820_v13  ;;  %v7007_v14 = vld [vmem:[%s11904_s25 + $0x50] sm:$0xff] }
 0x839   : > { %8671 = vmatpush1.bf16.msra.mxu0 %v8610_v17  ;;  %v7833_v17 = vld [vmem:[%s11903_s23 + $0x100] sm:$0xff] }
 0x83a   : > { %8672 = vmatprep.subr.bf16.mxu0 %v9435_v30 }
 0x83d   : > { %8674 = vmatpush1.bf16.msra.mxu0 %v8613_v20 }
 0x83e   : > { %8675 = vmatprep.subr.bf16.mxu0 %v9435_v30 }
 0x841   : > { %8677 = vmatpush1.bf16.msra.mxu0 %v8616_v23  ;;  %v8736_v23 = vpack.c.bf16 %v7834_v18, %v7833_v17  ;;  %v7009_v17 = vld [vmem:[%s11904_s25 + $0x60] sm:$0xff]  ;;  %v7010_v18 = vld [vmem:[%s11904_s25 + $0x68] sm:$0xff] }
 0x842   : > { %8678 = vmatprep.subr.bf16.mxu0 %v9435_v30 }
 0x845   : > { %8680 = vmatpush1.bf16.msra.mxu0 %v8619_v26  ;;  %v8721_v26 = vpack.c.bf16 %v7823_v22, %v7822_v21  ;;  %v7088_v21 = vld [vmem:[#allocation11] sm:$0xff]  ;;  %v7089_v22 = vld [vmem:[#allocation11 + $0x8] sm:$0xff] }
 0x846   : > { %8681 = vmatprep.subr.bf16.mxu0 %v9435_v30 }
 0x849   : > { %8683 = vmatpush1.bf16.msra.mxu0 %v8622_v53  ;;  %v8739_v53 = vpack.c.bf16 %v7836_v25, %v7835_v24  ;;  %v8784_v24 = vpack.c.bf16 %v7089_v22, %v7088_v21  ;;  %v7091_v25 = vld [vmem:[#allocation11 + $0x18] sm:$0xff] }
 0x84a   : > { %8684 = vmatprep.subr.bf16.mxu0 %v9435_v30 }
 0x84d   : > { %8686 = vmatpush1.bf16.msra.mxu0 %v8625_v31  ;;  %v8724_v31 = vpack.c.bf16 %v7825_v54, %v7824_v27  ;;  %v7092_v27 = vld [vmem:[#allocation11 + $0x20] sm:$0xff]  ;;  %v7093_v54 = vld [vmem:[#allocation11 + $0x28] sm:$0xff] }
 0x84e   : > { %8687 = vmatprep.subr.bf16.mxu0 %v9435_v30 }
 0x850   : > { %6564 = vmatmul.mubr.f32.vlgmr.msra.gmra.mrb[18].mxu0 %v11456_v8 }
 0x851   : > { %8689 = vmatpush3.bf16.msra.mxu0 %v8688_v42  ;;  %7962 = vmatprep.mubr.msk.f32.mxu0 %vm9441_vm14, %v9433_v0  ;;  %v7829_v42 = vld [vmem:[%s11903_s23 + $0xe8] sm:$0xff] }
 0x852   : > { %8690 = vmatprep.subr.bf16.mxu0 %v9435_v30  ;;  %v8730_v29 = vpack.c.bf16 %v7829_v42, %v7828_v41 }
 0x855   : > { %8692 = vmatpush3.bf16.msra.mxu0 %v8691_v40  ;;  %v7843_v40 = vld [vmem:[%s11903_s23 + $0x148] sm:$0xff] }
 0x856   : > { %8693 = vmatprep.subr.bf16.mxu0 %v9435_v30  ;;  %v8748_v45 = vpack.c.bf16 %v7843_v40, %v7842_v34 }
 0x859   : > { %8695 = vmatpush3.bf16.msra.mxu0 %v8694_v49  ;;  %v8751_v49 = vpack.c.bf16 %v7845_v48, %v7844_v47 }
 0x85a   : > { %8696 = vmatprep.subr.bf16.mxu0 %v9435_v30 }
 0x85d   : > { %8698 = vmatpush3.bf16.msra.mxu0 %v8697_v58  ;;  %v8757_v58 = vpack.c.bf16 %v7849_v57, %v7848_v55 }
 0x85e   : > { %8699 = vmatprep.subr.bf16.mxu0 %v9435_v30 }
 0x861   : > { %8701 = vmatpush3.bf16.msra.mxu0 %v8700_v1  ;;  %v6998_v1 = vld [vmem:[%s11904_s25 + $0x8] sm:$0xff] }
 0x862   : > { %8717 = vmatprep.subr.bf16.mxu0 %v9435_v30 }
 0x8ab   : > { %v6351_v2 = vpop.f32.mrb[12].mxu0 }
 0x8ac   : > { %v6353_v3 = vpop.f32.mrb[13].mxu0 }
 0x8ad   : > { %v6999_v3 = vld [vmem:[%s11904_s25 + $0x10] sm:$0xff] }
 0x8d3   : > { %v6421_v4 = vpop.f32.mrb[14].mxu0 }
 0x8d4   : > { %v6425_v5 = vmax.f32 %v6351_v2, %v6421_v4  ;;  %v6423_v6 = vpop.f32.mrb[15].mxu0  ;;  %v8763_v2 = vpack.c.bf16 %v6998_v1, %v6997_v63  ;;  %v7000_v4 = vld [vmem:[%s11904_s25 + $0x18] sm:$0xff] }
 0x8d5   : > { %v7001_v6 = vld [vmem:[%s11904_s25 + $0x20] sm:$0xff] }
 0x8fb   : > { %v6495_v7 = vpop.f32.mrb[16].mxu0 }
 0x8fc   : > { %v6497_v8 = vpop.f32.mrb[17].mxu0 }
 0x923   : > { %v6565_v11 = vpop.f32.mrb[18].mxu0 }
 0x924   : > { %v6569_v12 = vmax.f32 %v6495_v7, %v6565_v11  ;;  %v6567_v37 = vpop.f32.mrb[19].mxu0  ;;  %v7002_v7 = vld [vmem:[%s11904_s25 + $0x28] sm:$0xff]  ;;  %v8772_v11 = vpack.c.bf16 %v7004_v10, %v7003_v9 }
 0x925   : > { %v8769_v8 = vpack.c.bf16 %v7002_v7, %v7001_v6  ;;  %v7006_v37 = vld [vmem:[%s11904_s25 + $0x48] sm:$0xff] }
 0x926   : > { %v11603_v16 = vmax.f32 %v6425_v5, %v6569_v12  ;;  %v8766_v5 = vpack.c.bf16 %v7000_v4, %v6999_v3  ;;  %v7005_v12 = vld [vmem:[%s11904_s25 + $0x40] sm:$0xff] }
 0x927   : > { %v8775_v13 = vpack.c.bf16 %v7006_v37, %v7005_v12 }
 0x928   : > { %7986 = vmatmul.mubr.msk.f32.vlgmr.msra.gmra.mrb[28].mxu1 %vm6594_vm15, %v11603_v16  ;;  %v6593_v20 = vrot.slane %v11603_v16, 1  ;;  %v6835_v43 = vrot.slane %v11603_v16, 3  ;;  %v6750_v46 = vrot.slane %v11603_v16, 2  ;;  %v6920_v62 = vrot.slane %v11603_v16, 4 }
 0x929   : > { %8734 = vmatpush3.bf16.msra.mxu1 %v8733_v15  ;;  %8031 = vmatprep.mubr.msk.f32.mxu1 %vm9441_vm14, %v9433_v0  ;;  %v7008_v15 = vld [vmem:[%s11904_s25 + $0x58] sm:$0xff] }
 0x92a   : > { %7963 = vmatmul.mubr.msk.f32.vlgmr.msra.gmra.mrb[20].mxu0 %vm6594_vm15, %v6593_v20  ;;  %8735 = vmatprep.subr.bf16.mxu1 %v9435_v30  ;;  %v8778_v16 = vpack.c.bf16 %v7008_v15, %v7007_v14  ;;  %v7011_v20 = vld [vmem:[%s11904_s25 + $0x70] sm:$0xff] }
 0x92b   : > { %8719 = vmatpush3.bf16.msra.mxu0 %v8718_v19  ;;  %8008 = vmatprep.mubr.msk.f32.mxu0 %vm9441_vm14, %v9433_v0  ;;  %v8781_v19 = vpack.c.bf16 %v7010_v18, %v7009_v17 }
 0x92c   : > { %8720 = vmatprep.subr.bf16.mxu0 %v9435_v30 }
 0x92d   : > { %8737 = vmatpush3.bf16.msra.mxu1 %v8736_v23  ;;  %v7090_v23 = vld [vmem:[#allocation11 + $0x10] sm:$0xff] }
 0x92e   : > { %8738 = vmatprep.subr.bf16.mxu1 %v9435_v30 }
 0x92f   : > { %8722 = vmatpush3.bf16.msra.mxu0 %v8721_v26  ;;  %v8787_v26 = vpack.c.bf16 %v7091_v25, %v7090_v23 }
 0x930   : > { %8723 = vmatprep.subr.bf16.mxu0 %v9435_v30 }
 0x931   : > { %8740 = vmatpush3.bf16.msra.mxu1 %v8739_v53  ;;  %v8790_v53 = vpack.c.bf16 %v7093_v54, %v7092_v27 }
 0x932   : > { %8741 = vmatprep.subr.bf16.mxu1 %v9435_v30 }
 0x933   : > { %8725 = vmatpush3.bf16.msra.mxu0 %v8724_v31  ;;  %v8793_v31 = vpack.c.bf16 %v7095_v28, %v7094_v56 }
 0x934   : > { %8726 = vmatprep.subr.bf16.mxu0 %v9435_v30 }
 0x935   : > { %8743 = vmatpush3.bf16.msra.mxu1 %v8742_v35 }
 0x936   : > { %8744 = vmatprep.subr.bf16.mxu1 %v9435_v30 }
 0x937   : > { %8728 = vmatpush3.bf16.msra.mxu0 %v8727_v39 }
 0x938   : > { %8729 = vmatprep.subr.bf16.mxu0 %v9435_v30 }
 0x939   : > { %8746 = vmatpush3.bf16.msra.mxu1 %v8745_v44 }
 0x93a   : > { %8762 = vmatprep.subr.bf16.mxu1 %v9435_v30 }
 0x93b   : > { %8731 = vmatpush3.bf16.msra.mxu0 %v8730_v29 }
 0x93c   : > { %8032 = vmatmul.mubr.msk.f32.vlgmr.msra.gmra.mrb[30].mxu1 %vm6594_vm15, %v6835_v43  ;;  %8747 = vmatprep.subr.bf16.mxu0 %v9435_v30  ;;  %v6994_v43 = vld [vmem:[#allocation8] sm:$0x1] }
 0x93d   : > { %8087 = vmatprep.mubr.msk.f32.mxu1 %vm9441_vm14, %v9433_v0  ;;  %8764 = vmatpush3.bf16.msra.mxu1 %v8763_v2 }
 0x93e   : > { %8009 = vmatmul.mubr.msk.f32.vlgmr.msra.gmra.mrb[22].mxu0 %vm6594_vm15, %v6750_v46  ;;  %8765 = vmatprep.subr.bf16.mxu1 %v9435_v30 }
 0x93f   : > { %8749 = vmatpush3.bf16.msra.mxu0 %v8748_v45  ;;  %8054 = vmatprep.mubr.msk.f32.mxu0 %vm9441_vm14, %v9433_v0 }
 0x940   : > { %8750 = vmatprep.subr.bf16.mxu0 %v9435_v30 }
 0x941   : > { %8767 = vmatpush3.bf16.msra.mxu1 %v8766_v5 }
 0x942   : > { %8768 = vmatprep.subr.bf16.mxu1 %v9435_v30 }
 0x943   : > { %8752 = vmatpush3.bf16.msra.mxu0 %v8751_v49  ;;  %v7097_v49 = vld [vmem:[#allocation11 + $0x48] sm:$0xff] }
 0x944   : > { %8753 = vmatprep.subr.bf16.mxu0 %v9435_v30 }
 0x945   : > { %8770 = vmatpush3.bf16.msra.mxu1 %v8769_v8 }
 0x946   : > { %8771 = vmatprep.subr.bf16.mxu1 %v9435_v30 }
 0x947   : > { %8755 = vmatpush3.bf16.msra.mxu0 %v8754_v52  ;;  %v7012_v52 = vld [vmem:[#allocation10] sm:$0x1] }
 0x948   : > { %8756 = vmatprep.subr.bf16.mxu0 %v9435_v30 }
 0x949   : > { %8773 = vmatpush3.bf16.msra.mxu1 %v8772_v11 }
 0x94a   : > { %8774 = vmatprep.subr.bf16.mxu1 %v9435_v30 }
 0x94b   : > { %8758 = vmatpush3.bf16.msra.mxu0 %v8757_v58 }
 0x94c   : > { %8759 = vmatprep.subr.bf16.mxu0 %v9435_v30 }
 0x94d   : > { %8776 = vmatpush3.bf16.msra.mxu1 %v8775_v13 }
 0x94e   : > { %8777 = vmatprep.subr.bf16.mxu1 %v9435_v30 }
 0x94f   : > { %8761 = vmatpush3.bf16.msra.mxu0 %v8760_v61 }
 0x950   : > { %8783 = vmatprep.subr.bf16.mxu0 %v9435_v30 }
 0x951   : > { %8779 = vmatpush3.bf16.msra.mxu1 %v8778_v16 }
 0x952   : > { %8055 = vmatmul.mubr.msk.f32.vlgmr.msra.gmra.mrb[24].mxu0 %vm6594_vm15, %v6920_v62  ;;  %8780 = vmatprep.subr.bf16.mxu1 %v9435_v30 }
 0x953   : > { %8112 = vmatprep.mubr.msk.f32.mxu0 %vm9441_vm14, %v9433_v0  ;;  %8785 = vmatpush3.bf16.msra.mxu0 %v8784_v24 }
 0x954   : > { %8786 = vmatprep.subr.bf16.mxu0 %v9435_v30 }
 0x955   : > { %8782 = vmatpush3.bf16.msra.mxu1 %v8781_v19 }
 0x956   : > { %8085 = vmatprep.subr.mxu1 %v9433_v0 }
 0x957   : > { %8788 = vmatpush3.bf16.msra.mxu0 %v8787_v26 }
 0x958   : > { %8789 = vmatprep.subr.bf16.mxu0 %v9435_v30 }
 0x959   : > { %8086 = vmatpush3.msra.mxu1 %v7011_v20 }
 0x95b   : > { %8791 = vmatpush3.bf16.msra.mxu0 %v8790_v53 }
 0x95c   : > { %8792 = vmatprep.subr.bf16.mxu0 %v9435_v30 }
 0x95f   : > { %8794 = vmatpush3.bf16.msra.mxu0 %v8793_v31 }
 0x960   : > { %8795 = vmatprep.subr.bf16.mxu0 %v9435_v30  ;;  %v7096_v30 = vld [vmem:[#allocation11 + $0x40] sm:$0xff] }
 0x961   : > { %v8796_v50 = vpack.c.bf16 %v7097_v49, %v7096_v30 }
 0x963   : > { %8797 = vmatpush3.bf16.msra.mxu0 %v8796_v50 }
 0x964   : > { %8110 = vmatprep.subr.mxu0 %v9433_v0 }
 0x967   : > { %8111 = vmatpush3.msk.msra.mxu0 %vm2587_vm1, %v7098_v51 }
 0x9fb   : > { %v6735_v32 = vpop.f32.mrb[28].mxu1 }
 0x9fc   : > { %v7987_v33 = vpop.f32.mrb[29].mxu1 }
 0x9fd   : > { %v6663_v35 = vpop.f32.mrb[20].mxu0 }
 0x9fe   : > { %v6736_v36 = vadd.f32 %v6735_v32, %v6663_v35  ;;  %v7964_v38 = vpop.f32.mrb[21].mxu0 }
 0xa0f   : > { %v6904_v39 = vpop.f32.mrb[30].mxu1 }
 0xa10   : > { %v8033_v41 = vpop.f32.mrb[31].mxu1 }
 0xa11   : > { %v6819_v42 = vpop.f32.mrb[22].mxu0 }
 0xa12   : > { %v6823_v44 = vadd.f32 %v6819_v42, %v6736_v36  ;;  %v8010_v29 = vpop.f32.mrb[23].mxu0 }
 0xa14   : > { %v6908_v34 = vadd.f32 %v6904_v39, %v6823_v44 }
 0xa25   : > { %v6989_v40 = vpop.f32.mrb[24].mxu0 }
 0xa26   : > { %v6993_v45 = vadd.f32 %v6989_v40, %v6908_v34  ;;  %v8056_v46 = vpop.f32.mrb[25].mxu0 }
 0xa28   : > { %v6995_v47 = vadd.f32 %v6994_v43, %v6993_v45 }
 0xa2a   : > { %v6996_v48 = vmax.f32 %v6995_v47, 0.0 }
 0xa2c   : > { %8088 = vmatmul.mubr.msk.f32.vlgmr.msra.gmra.mrb[32].mxu1 %vm7013_vm0, %v6996_v48 }
 0xaff   : > { %v7083_v55 = vpop.f32.mrb[32].mxu1 }
 0xb00   : > { %v7084_v57 = vadd.f32 %v7083_v55, %v7012_v52  ;;  %v8089_v58 = vpop.f32.mrb[33].mxu1 }
 0xb02   : > { %v7087_v59 = vmax.f32 %v7084_v57, 0.0 }
 0xb04   : > { %8113 = vmatmul.mubr.msk.f32.vlgmr.msra.gmra.mrb[26].mxu0 %vm7100_vm2, %v7087_v59 }
 0xbd7   : > { %v7173_v61 = vpop.f32.mrb[26].mxu0 }
 0xbd8   : > { %v7174_v62 = vadd.f32 %v7173_v61, %v7099_v60  ;;  %v8114_v63 = vpop.f32.mrb[27].mxu0 }
 0xbda   : > { %7177 = vst [vmem:[%s686_s20] sm:$0x1] %v7174_v62 }
 0xbdb   : > { %9357 = shalt.err (!%p9354_p6)
}
 0xbdc   : > { %s9358_s30 = scalar_lea.hbm %s11781_s28, 16  ;;  %s9362_s26 = scalar_lea.hbm %s11907_s14, 32 }
 0xbdd   : > { %p9359_p5 = scmp.ne.s32.totalorder %s11781_s28, %s9358_s30  ;;  %p9363_p10 = scmp.lt.u32.totalorder %s11781_s28, %s11907_s14 }
 0xbde   : > { %p9364_p2 = scmp.lt.u32.totalorder %s9362_s26, %s9358_s30  ;;  %p9366_p4 = scmp.lt.u32.totalorder %s9358_s30, %s11781_s28 }
 0xbdf   : > { %p9360_p9 = pnand %p9359_p5, %p11908_p7 }
 0xbe0   : > { %p9365_p3 = por %p9364_p2, %p9363_p10 }
 0xbe1   : > { %p9361_p12 = pneg %p9360_p9 }
 0xbe2   : > { %p9367_p8 = por %p9366_p4, %p9365_p3 }
 0xbe4   : > { %p9368_p11 = pnand %p9367_p8, %p9361_p12 }
 0xbe6   : > { %9371 = shalt.err (!%p9368_p11)
}
 0xbe7   : > { %9055 = dma.vmem_to_hbm [thread:$0]  (%p11908_p7), %s11783_s13, 16, %s11781_s28, %s7179_s21  }
 0xbe8 PF: > { %s11909_s19 = sld [smem:[#allocation23_spill]]  ;;  %s11910_s2 = sld [smem:[#allocation20_spill]] }
 0xbe9   : > { %s11911_s1 = sld [smem:[#allocation27_spill]] }
 0xbee   : > { %p9097_p13 = scmp.ge.s32.totalorder %s11909_s19, 2  ;;  %s7203_s24 = sand.u32 1, %s11910_s2  }
 0xbef   : > { %p11912_p1 = scmp.ne.s32.totalorder %s11911_s1, 0  ;;  %s7204_s22 = scalar_lea.sflag [#allocation4], %s7203_s24 }
 0xbf1   : > { %p9080_p0 = pnand %p9097_p13, %p11912_p1 }
 0xbf3   : > { %9405 = dma.done.wait (!%p9080_p0), %s7204_s22, 16  }
 0xbf4   : > { %9407 = vsyncadd (!%p9080_p0), %s7204_s22, 4294967280  ;;  %s11913_s21 = sld [smem:[#allocation24_spill]]  ;;  %s11914_s0 = sld [smem:[#allocation21_spill]] }
 0xbf5   : > { %s11915_s30 = sld [smem:[#allocation22_spill]]  ;;  %s11916_s20 = sld [smem:[#allocation25_spill]] }
 0xbfa   : > { %p33_p6 = scmp.ge.s32.totalorder %s11913_s21, 4  }
 0xbfc   :  { %35 = sbr.rel (!%p33_p6) target bundleno = 18 (0x12), region = 209 }
 0xc03   :  { %7208 = vsyncpa [#allocation3], 1 }
 0xc04   :  { %7210 = vsyncpa [#allocation3 + $0x1], 1 }
 0xc05   :  { %7211 = vsyncpa [#allocation6], 1 }
 0xc06   :  { %7212 = vsyncpa [#allocation9], 1 }
 0xc07   :  { %7213 = vsyncpa [#allocation12], 1 }
 0xc08   :  { %7214 = vsyncpa [#allocation4], 1 }
 0xc09   :  { %7216 = vsyncpa [#allocation4 + $0x1], 1 }

</bundles_post_ra>
